<compile_context>
chip_gen: v5e
topology: v5e:2x2
jax: 0.10.0
libtpu: 0.0.40
codegen_flags: <defaults>
</compile_context>

<pallas_src>
import math

import jax
import jax.numpy as jnp
from jax.experimental import pallas as pl
from jax.experimental.pallas import tpu as pltpu


# ----------------------------------------------------------------------------
# Pallas kernel: block-diagonal attention over NB windows per grid step.
# Input / output blocks are (1, C, L) slabs with L = NB * S on the lane axis.
# ----------------------------------------------------------------------------
def _make_attn_kernel(scale, mm_precision):
    def attn_kernel(x_ref, bias_ref, o_ref):
        xt = x_ref[0]                                       # (C, L), input dtype
        # Scores: contract over channels directly (trans-A matmul, no explicit
        # transpose); accumulate / softmax in f32 regardless of input dtype.
        s = jnp.einsum("cs,ct->st", xt, xt,
                       preferred_element_type=jnp.float32,
                       precision=mm_precision)              # (L, L) f32
        s = s * scale + bias_ref[...]                       # block-diag window mask
        m = jnp.max(s, axis=-1, keepdims=True)
        p = jnp.exp(s - m)
        denom = jnp.sum(p, axis=-1, keepdims=True)
        attn = p * pl.reciprocal(denom, approx=True)        # EUP recip, no VPU div
        # Weighted sum, contracting over key positions (trans-B matmul);
        # probabilities are cast back to the input dtype for the MXU.
        o = jnp.einsum("ct,st->cs", xt, attn.astype(xt.dtype),
                       preferred_element_type=jnp.float32,
                       precision=mm_precision)              # (C, L) f32
        o_ref[0] = o.astype(o_ref.dtype)

    return attn_kernel


def _choose_windows_per_block(NW, S, C, itemsize):
    """Pick NB (windows per grid step): NB | NW, VMEM-safe, lane-dense, >=2 steps."""
    budget = 8 * 1024 * 1024  # per-step working set (scores/probs/mask + io blocks)

    def cost(nb):
        L = nb * S
        return 4 * L * L * 4 + 4 * C * L * itemsize

    divisors = [d for d in range(1, NW + 1) if NW % d == 0]
    feasible = [d for d in divisors if cost(d) <= budget] or [1]
    # Prefer >= 2 grid steps so v7x can shard across both TensorCores.
    multi = [d for d in feasible if NW // d >= 2] or feasible
    # Keep the lane axis (NB*S) at a moderate size (>=128 ideally, <= ~512).
    capped = [d for d in multi if d * S <= 512] or [min(multi)]
    return max(capped)


# ----------------------------------------------------------------------------
# Forward: shift folded into the window gather (glue) -> Pallas attention.
# ----------------------------------------------------------------------------
def swmsa_forward(x_nchw: jax.Array, window_size: int) -> jax.Array:
    B, C, H, W = x_nchw.shape
    M = window_size
    assert H % M == 0 and W % M == 0, "spatial dims must be divisible by window"
    disp = -window_size // 2                     # matches CyclicShift(-ws // 2)
    nWh, nWw = H // M, W // M
    NW, S = B * nWh * nWw, M * M

    NB = _choose_windows_per_block(NW, S, C, jnp.dtype(x_nchw.dtype).itemsize)
    NWB = NW // NB
    L = NB * S

    # --- glue: cyclic shift folded into the window gather (fused by XLA) ----
    xr = jnp.roll(x_nchw, shift=(disp, disp), axis=(2, 3))
    xw = jnp.transpose(xr.reshape(B, C, nWh, M, nWw, M), (0, 2, 4, 1, 3, 5))
    xw = xw.reshape(NW, C, S).reshape(NWB, NB, C, S)
    slab = jnp.transpose(xw, (0, 2, 1, 3)).reshape(NWB, C, L)   # lane-dense slabs

    # Additive block-diagonal mask: 0 within a window, -1e30 across windows.
    wid = jnp.arange(L, dtype=jnp.int32) // S
    bias = jnp.where(wid[:, None] == wid[None, :], 0.0, -1e30).astype(jnp.float32)

    scale = 1.0 / math.sqrt(C)
    mm_precision = (jax.lax.Precision.HIGHEST
                    if x_nchw.dtype == jnp.float32 else jax.lax.Precision.DEFAULT)

    out_slab = pl.pallas_call(
        _make_attn_kernel(scale, mm_precision),
        out_shape=jax.ShapeDtypeStruct((NWB, C, L), x_nchw.dtype),
        grid=(NWB,),
        in_specs=[
            pl.BlockSpec((1, C, L), lambda g: (g, 0, 0)),   # window slab
            pl.BlockSpec((L, L), lambda g: (0, 0)),         # resident mask bias
        ],
        out_specs=pl.BlockSpec((1, C, L), lambda g: (g, 0, 0)),
        compiler_params=pltpu.CompilerParams(
            dimension_semantics=("parallel",),
            vmem_limit_bytes=32 * 1024 * 1024,              # explicit; v7x-safe
        ),
    )(slab, bias)

    # --- glue: undo the slab layout -> (NW, S, C) per-window sequences ------
    out = out_slab.reshape(NWB, C, NB, S)
    out = jnp.transpose(out, (0, 2, 3, 1)).reshape(NW, S, C)
    return out


# ----------------------------------------------------------------------------
# Pure-JAX reference (same semantics, NCHW input)
# ----------------------------------------------------------------------------
def ref_forward(x_nchw: jax.Array, M: int) -> jax.Array:
    disp = -M // 2
    x = jnp.roll(x_nchw, shift=(disp, disp), axis=(2, 3))
    B, C, H, W = x.shape
    xs = x.reshape(B, C, H // M, M, W // M, M)
    xs = jnp.transpose(xs, (0, 2, 4, 3, 5, 1)).reshape(-1, M * M, C)
    scale = 1.0 / math.sqrt(C)
    s = jnp.einsum("nsc,ntc->nst", xs, xs, precision="highest") * scale
    p = jax.nn.softmax(s, axis=-1)
    return jnp.einsum("nst,ntc->nsc", p, xs, precision="highest")


if __name__ == "__main__":
    key = jax.random.PRNGKey(0)
    B, C, H, W, M = 2, 4, 16, 16, 4
    x = jax.random.normal(key, (B, C, H, W), dtype=jnp.float32)

    fwd = jax.jit(swmsa_forward, static_argnames="window_size")
    out = jax.block_until_ready(fwd(x, window_size=M))
    ref = jax.block_until_ready(ref_forward(x, M))

    assert out.shape == (B * (H // M) * (W // M), M * M, C), out.shape
    assert jnp.allclose(out, ref, atol=2e-3, rtol=2e-3), (
        float(jnp.max(jnp.abs(out - ref)))
    )
    print("KERNEL_OK")
</pallas_src>

<mosaic_0001>
module attributes {stable_mosaic.version = 11 : i64} {
  func.func @attn_kernel(%arg0: i32, %arg1: memref<1x4x256xf32, #tpu.memory_space<vmem>>, %arg2: memref<256x256xf32, #tpu.memory_space<vmem>>, %arg3: memref<1x4x256xf32, #tpu.memory_space<vmem>>) attributes {dimension_semantics = [#tpu.dimension_semantics<parallel>], iteration_bounds = array<i64: 2>, scalar_prefetch = 0 : i64, scratch_operands = 0 : i64, tpu.core_type = #tpu.core_type<tc>, window_params = [{transform_indices = @transform_0, window_bounds = array<i64: 1, 4, 256>}, {pipeline_mode = #tpu.pipeline_mode<synchronous>, transform_indices = @transform_1, window_bounds = array<i64: 256, 256>}, {transform_indices = @transform_2, window_bounds = array<i64: 1, 4, 256>}]} {
    %c0 = arith.constant 0 : index
    %c0_0 = arith.constant 0 : index
    %c0_1 = arith.constant 0 : index
    %0 = vector.load %arg1[%c0, %c0_0, %c0_1] : memref<1x4x256xf32, #tpu.memory_space<vmem>>, vector<1x4x256xf32>
    %1 = vector.shape_cast %0 : vector<1x4x256xf32> to vector<4x256xf32>
    "tpu.trace_start"() <{level = 10 : i32, message = "cs,ct->st"}> : () -> ()
    %cst = arith.constant dense<0.000000e+00> : vector<256x256xf32>
    %2 = tpu.matmul %1, %1, %cst {dimension_numbers = #tpu.dot_dimension_numbers<[0], [0], [1], [1], [0, 1, 1, 1], [], []>, precision = #tpu.contract_precision<fp32>} : vector<4x256xf32>, vector<4x256xf32>, vector<256x256xf32> -> vector<256x256xf32>
    "tpu.trace_stop"() : () -> ()
    %cst_2 = arith.constant 5.000000e-01 : f32
    %3 = vector.broadcast %cst_2 : f32 to vector<256x256xf32>
    %4 = arith.mulf %2, %3 : vector<256x256xf32>
    %c0_3 = arith.constant 0 : index
    %c0_4 = arith.constant 0 : index
    %5 = vector.load %arg2[%c0_3, %c0_4] : memref<256x256xf32, #tpu.memory_space<vmem>>, vector<256x256xf32>
    %6 = arith.addf %4, %5 : vector<256x256xf32>
    %cst_5 = arith.constant dense<0xFF800000> : vector<256xf32>
    %7 = vector.multi_reduction <maximumf>, %6, %cst_5 [1] : vector<256x256xf32> to vector<256xf32>
    %8 = vector.shape_cast %7 : vector<256xf32> to vector<256x1xf32>
    %9 = vector.broadcast %8 : vector<256x1xf32> to vector<256x256xf32>
    %10 = arith.subf %6, %9 : vector<256x256xf32>
    %11 = math.exp %10 : vector<256x256xf32>
    %cst_6 = arith.constant dense<0.000000e+00> : vector<256xf32>
    %12 = vector.multi_reduction <add>, %11, %cst_6 [1] : vector<256x256xf32> to vector<256xf32>
    %13 = vector.shape_cast %12 : vector<256xf32> to vector<256x1xf32>
    %14 = tpu.reciprocal %13 {approx = true} : vector<256x1xf32> -> vector<256x1xf32>
    %15 = vector.broadcast %14 : vector<256x1xf32> to vector<256x256xf32>
    %16 = arith.mulf %11, %15 : vector<256x256xf32>
    "tpu.trace_start"() <{level = 10 : i32, message = "ct,st->cs"}> : () -> ()
    %cst_7 = arith.constant dense<0.000000e+00> : vector<4x256xf32>
    %17 = tpu.matmul %1, %16, %cst_7 {dimension_numbers = #tpu.dot_dimension_numbers<[1], [1], [0], [0], [0, 0, 1, 0], [], []>, precision = #tpu.contract_precision<fp32>} : vector<4x256xf32>, vector<256x256xf32>, vector<4x256xf32> -> vector<4x256xf32>
    "tpu.trace_stop"() : () -> ()
    %c0_8 = arith.constant 0 : index
    %c0_9 = arith.constant 0 : index
    %c0_10 = arith.constant 0 : index
    %18 = vector.load %arg3[%c0_8, %c0_9, %c0_10] : memref<1x4x256xf32, #tpu.memory_space<vmem>>, vector<1x4x256xf32>
    %19 = vector.shape_cast %18 : vector<1x4x256xf32> to vector<4x256xf32>
    %20 = vector.shape_cast %17 : vector<4x256xf32> to vector<1x4x256xf32>
    tpu.vector_store %arg3[%c0_8, %c0_9, %c0_10], %20 {strides = array<i32>} : memref<1x4x256xf32, #tpu.memory_space<vmem>>, vector<1x4x256xf32>,
    return
  }
  func.func @transform_0(%arg0: i32) -> (i32, i32, i32) {
    %c0_i32 = arith.constant 0 : i32
    %c0_i32_0 = arith.constant 0 : i32
    %c0_i32_1 = arith.constant 0 : i32
    return %arg0, %c0_i32, %c0_i32_0 : i32, i32, i32
  }
  func.func @transform_1(%arg0: i32) -> (i32, i32) {
    %c0_i32 = arith.constant 0 : i32
    %c0_i32_0 = arith.constant 0 : i32
    %c0_i32_1 = arith.constant 0 : i32
    return %c0_i32, %c0_i32_0 : i32, i32
  }
  func.func @transform_2(%arg0: i32) -> (i32, i32, i32) {
    %c0_i32 = arith.constant 0 : i32
    %c0_i32_0 = arith.constant 0 : i32
    %c0_i32_1 = arith.constant 0 : i32
    return %arg0, %c0_i32, %c0_i32_0 : i32, i32, i32
  }
}

</mosaic_0001>

<bundles_post_ra>
// kernel: swmsa_forward.1
= control target key start
LH: loop header
LB: loop body
LE: loop exit
PB: predicated region body
PF: predicated region fallthrough
CT: control target
= control target key end

     0   :  { %s4873_s9 = smov 0   ;;  %s7916_s0 = inlined_call_operand.vmem [shape: f32[2,4,256], index: 0, kind: input, shape index: {}]   ;;  %s7917_s1 = inlined_call_operand.vmem [shape: f32[256,256], index: 1, kind: input, shape index: {}]   ;;  %s7918_s2 = inlined_call_operand.vmem [shape: f32[2,4,256], index: 2, kind: output, shape index: {}]  }
   0x1 LB: > { %s4636_s10 = sadd.s32 4294967295, %s4856_s9   ;;  %p4640_p0 = scmp.ge.s32.totalorder %s4856_s9, 1  ;;  %s4856_s9 = sphi %s4873_s9, %s12_s9  }
   0x2   : > { %p112_p1 = scmp.lt.s32.totalorder %s4856_s9, 3 }
   0x4   : > { %p113_p2 = pnand %p4640_p0, %p112_p1 }
   0x6   : > { %116 = sbr.rel (%p113_p2) target bundleno = 1757 (0x6dd), region = 28 }
   0xb   : > { %p134_p3 = scmp.lt.s32.totalorder %s4636_s10, 1  ;;  %vm315_vm0 = vcmask 1043456   ;;  %vm218_vm1 = vcmask 31744  }
   0xd   : > { %s8586_s10 = smov (!%p134_p3, %s4636_s10), 1 }
   0xe   : > { %s4647_s11 = sshll.u32 %s8586_s10, 3 }
   0xf   : > { %s138_s14 = scalar_lea.vmem %s7916_s0, %s4647_s11  ;;  %s143_s20 = scalar_lea.vmem %s7918_s2, %s4647_s11 }
  0x10   : > { %v4889_v0 = vld [vmem:[%s138_s14] sm:$0xff] }
  0x11   : > { %146 = vst [vmem:[#allocation1] ss:$2 sm:$0xff] %v4889_v0 }
  0x18   : > { %v147_v1 = vld.sshfl [vmem:[#allocation1] sm:$0xff pattern:$0x75316420]  ;;  %v148_v2 = vld.sshfl [vmem:[#allocation1 + $0x8] sm:$0xff pattern:$0x75316420] }
  0x19   : > { %151 = vxpose.xlu0.b32.start.end [1/1] (short) %v147_v1, 128  ;;  %215 = vst [vmem:[#allocation1] ss:$2 sm:$0xff] %v4889_v0 }
  0x20   : > { %v216_v3 = vld.sshfl [vmem:[#allocation1] sm:$0xff pattern:$0x75316420] }
  0x21   : > { %v316_v4 = vsel %vm315_vm0, %v216_v3, 0 }
  0x22   : > { %v335_v5 = vand.u32 4294901760, %v316_v4 }
  0x24   : > { %v610_v6 = vsub.f32 %v316_v4, %v335_v5  ;;  %939 = vmatpush.msra.mxu3 %v335_v5  ;;  %336 = vmatpush.msra.mxu0 %v335_v5 }
  0x26   : > { %v611_v7 = vand.u32 4294901760, %v610_v6  ;;  %761 = vmatpush.msra.mxu2 %v610_v6 }
  0x28   : > { %v612_v8 = vsub.f32 %v610_v6, %v611_v7  ;;  %1151 = vmatpush.msrb.mxu0 %v611_v7 }
  0x2a   : > { %v613_v9 = vand.u32 4294901760, %v612_v8 }
  0x2c   : > { %614 = vmatpush.msra.mxu1 %v613_v9 }
  0x2e   : > { %1297 = vmatpush.msrb.mxu1 %v335_v5 }
  0x99   : > { %183 = vxpose.xlu0.b32.start.end [1/1] (short) %v148_v2, 128 }
  0xbd   : > { %v167_v10 = vpop.trf.xlu0 }
  0xbe   : > { %v220_v11 = vsel %vm218_vm1, %v167_v10, 0 }
  0xbf   : > { %v4895_v12 = vand.u32 4294901760, %v220_v11 }
  0xc1   : > { %v4898_v13 = vsub.f32 %v220_v11, %v4895_v12  ;;  %616 = vmatmul.f32.vlgmr.msra.gmra.mxu1 %v4895_v12 }
  0xc3   : > { %8113 = vst [vmem:[#allocation2_spill] sm:$0xff] %v4898_v13  ;;  %764 = vmatmul.f32.vlgmr.msra.gmra.mxu2 %v4898_v13  ;;  %v4903_v14 = vand.u32 4294901760, %v4898_v13 }
  0xc5   : > { %8114 = vst [vmem:[#allocation3_spill] sm:$0xff] %v4903_v14  ;;  %v168_v15 = vpop.trf.xlu0  ;;  %943 = vmatmul.f32.vlgmr.msra.gmra.mxu3 %v4903_v14  ;;  %v340_v16 = vsub.f32 %v4898_v13, %v4903_v14 }
  0xc6   : > { %v223_v17 = vsel %vm218_vm1, %v168_v15, 0 }
  0xc7   : > { %v4909_v18 = vand.u32 4294901760, %v223_v17  ;;  %v4911_v19 = vand.u32 4294901760, %v340_v16 }
  0xc9   : > { %v4914_v20 = vsub.f32 %v223_v17, %v4909_v18  ;;  %342 = vmatmul.f32.vlgmr.msra.gmra.mxu0 %v4911_v19  ;;  %620 = vmatmul.f32.gmra.mxu1 %v4909_v18 }
  0xcb   : > { %8115 = vst [vmem:[#allocation4_spill] sm:$0xff] %v4914_v20  ;;  %769 = vmatmul.f32.gmra.mxu2 %v4914_v20  ;;  %v4920_v21 = vand.u32 4294901760, %v4914_v20 }
  0xcd   : > { %8116 = vst [vmem:[#allocation5_spill] sm:$0xff] %v4920_v21  ;;  %v169_v22 = vpop.trf.xlu0  ;;  %949 = vmatmul.f32.gmra.mxu3 %v4920_v21  ;;  %v348_v23 = vsub.f32 %v4914_v20, %v4920_v21 }
  0xce   : > { %v226_v24 = vsel %vm218_vm1, %v169_v22, 0 }
  0xcf   : > { %v4926_v25 = vand.u32 4294901760, %v226_v24  ;;  %v4928_v26 = vand.u32 4294901760, %v348_v23 }
  0xd1   : > { %v4931_v27 = vsub.f32 %v226_v24, %v4926_v25  ;;  %350 = vmatmul.f32.gmra.mxu0 %v4928_v26  ;;  %624 = vmatmul.f32.gmra.mxu1 %v4926_v25 }
  0xd3   : > { %8117 = vst [vmem:[#allocation6_spill] sm:$0xff] %v4931_v27  ;;  %774 = vmatmul.f32.gmra.mxu2 %v4931_v27  ;;  %v4937_v28 = vand.u32 4294901760, %v4931_v27 }
  0xd5   : > { %8118 = vst [vmem:[#allocation7_spill] sm:$0xff] %v4937_v28  ;;  %v170_v29 = vpop.trf.xlu0  ;;  %955 = vmatmul.f32.gmra.mxu3 %v4937_v28  ;;  %v356_v30 = vsub.f32 %v4931_v27, %v4937_v28 }
  0xd6   : > { %v229_v31 = vsel %vm218_vm1, %v170_v29, 0 }
  0xd7   : > { %v4943_v32 = vand.u32 4294901760, %v229_v31  ;;  %v4945_v33 = vand.u32 4294901760, %v356_v30 }
  0xd9   : > { %v4948_v34 = vsub.f32 %v229_v31, %v4943_v32  ;;  %358 = vmatmul.f32.gmra.mxu0 %v4945_v33  ;;  %628 = vmatmul.f32.gmra.mxu1 %v4943_v32 }
  0xdb   : > { %8119 = vst [vmem:[#allocation8_spill] sm:$0xff] %v4948_v34  ;;  %779 = vmatmul.f32.gmra.mxu2 %v4948_v34  ;;  %v4954_v35 = vand.u32 4294901760, %v4948_v34 }
  0xdd   : > { %8120 = vst [vmem:[#allocation9_spill] sm:$0xff] %v4954_v35  ;;  %v171_v36 = vpop.trf.xlu0  ;;  %961 = vmatmul.f32.gmra.mxu3 %v4954_v35  ;;  %v364_v37 = vsub.f32 %v4948_v34, %v4954_v35 }
  0xde   : > { %v232_v38 = vsel %vm218_vm1, %v171_v36, 0 }
  0xdf   : > { %v4960_v39 = vand.u32 4294901760, %v232_v38  ;;  %v4962_v40 = vand.u32 4294901760, %v364_v37 }
  0xe1   : > { %v4965_v41 = vsub.f32 %v232_v38, %v4960_v39  ;;  %366 = vmatmul.f32.gmra.mxu0 %v4962_v40  ;;  %632 = vmatmul.f32.gmra.mxu1 %v4960_v39 }
  0xe3   : > { %8121 = vst [vmem:[#allocation10_spill] sm:$0xff] %v4965_v41  ;;  %784 = vmatmul.f32.gmra.mxu2 %v4965_v41  ;;  %v4971_v42 = vand.u32 4294901760, %v4965_v41 }
  0xe5   : > { %8122 = vst [vmem:[#allocation11_spill] sm:$0xff] %v4971_v42  ;;  %v172_v43 = vpop.trf.xlu0  ;;  %967 = vmatmul.f32.gmra.mxu3 %v4971_v42  ;;  %v372_v44 = vsub.f32 %v4965_v41, %v4971_v42 }
  0xe6   : > { %v235_v45 = vsel %vm218_vm1, %v172_v43, 0 }
  0xe7   : > { %v4977_v46 = vand.u32 4294901760, %v235_v45  ;;  %v4979_v47 = vand.u32 4294901760, %v372_v44 }
  0xe9   : > { %v4982_v48 = vsub.f32 %v235_v45, %v4977_v46  ;;  %374 = vmatmul.f32.gmra.mxu0 %v4979_v47  ;;  %636 = vmatmul.f32.gmra.mxu1 %v4977_v46 }
  0xeb   : > { %8123 = vst [vmem:[#allocation12_spill] sm:$0xff] %v4982_v48  ;;  %789 = vmatmul.f32.gmra.mxu2 %v4982_v48  ;;  %v4988_v49 = vand.u32 4294901760, %v4982_v48 }
  0xed   : > { %8124 = vst [vmem:[#allocation13_spill] sm:$0xff] %v4988_v49  ;;  %v173_v50 = vpop.trf.xlu0  ;;  %973 = vmatmul.f32.gmra.mxu3 %v4988_v49  ;;  %v380_v51 = vsub.f32 %v4982_v48, %v4988_v49 }
  0xee   : > { %v238_v52 = vsel %vm218_vm1, %v173_v50, 0 }
  0xef   : > { %v4994_v53 = vand.u32 4294901760, %v238_v52  ;;  %v4996_v54 = vand.u32 4294901760, %v380_v51  ;;  %v217_v51 = vld.sshfl [vmem:[#allocation1 + $0x8] sm:$0xff pattern:$0x75316420] }
  0xf0   : > { %3206 = vst [vmem:[#allocation1] ss:$2 sm:$0xff] %v4889_v0 }
  0xf1   : > { %v4999_v55 = vsub.f32 %v238_v52, %v4994_v53  ;;  %382 = vmatmul.f32.gmra.mxu0 %v4996_v54  ;;  %640 = vmatmul.f32.gmra.mxu1 %v4994_v53  ;;  %v318_v52 = vsel %vm315_vm0, %v217_v51, 0 }
  0xf3   : > { %8125 = vst [vmem:[#allocation14_spill] sm:$0xff] %v4999_v55  ;;  %794 = vmatmul.f32.gmra.mxu2 %v4999_v55  ;;  %v5005_v56 = vand.u32 4294901760, %v4999_v55 }
  0xf5   : > { %8126 = vst [vmem:[#allocation15_spill] sm:$0xff] %v5005_v56  ;;  %v174_v57 = vpop.trf.xlu0  ;;  %979 = vmatmul.f32.gmra.mxu3 %v5005_v56  ;;  %v388_v58 = vsub.f32 %v4999_v55, %v5005_v56 }
  0xf6   : > { %v241_v59 = vsel %vm218_vm1, %v174_v57, 0 }
  0xf7   : > { %v5011_v60 = vand.u32 4294901760, %v241_v59  ;;  %v5013_v61 = vand.u32 4294901760, %v388_v58  ;;  %v1442_v58 = vand.u32 4294901760, %v318_v52 }
  0xf9   : > { %v5016_v62 = vsub.f32 %v241_v59, %v5011_v60  ;;  %390 = vmatmul.f32.gmra.mxu0 %v5013_v61  ;;  %644 = vmatmul.f32.gmra.mxu1 %v5011_v60 }
  0xfa   : > { %1443 = vmatpush.msrb.mxu2 %v1442_v58  ;;  %2046 = vmatpush.msra.mxu1 %v1442_v58 }
  0xfb   : > { %8127 = vst [vmem:[#allocation16_spill] sm:$0xff] %v5016_v62  ;;  %799 = vmatmul.f32.gmra.mxu2 %v5016_v62  ;;  %v5022_v63 = vand.u32 4294901760, %v5016_v62 }
  0xfd   : > { %8128 = vst [vmem:[#allocation17_spill] sm:$0xff] %v5022_v63  ;;  %v175_v1 = vpop.trf.xlu0  ;;  %985 = vmatmul.f32.gmra.mxu3 %v5022_v63  ;;  %v396_v2 = vsub.f32 %v5016_v62, %v5022_v63 }
  0xfe   : > { %v244_v3 = vsel %vm218_vm1, %v175_v1, 0 }
  0xff   : > { %v5028_v4 = vand.u32 4294901760, %v244_v3  ;;  %v5030_v5 = vand.u32 4294901760, %v396_v2  ;;  %v1717_v2 = vsub.f32 %v318_v52, %v1442_v58 }
 0x101   : > { %v5033_v6 = vsub.f32 %v244_v3, %v5028_v4  ;;  %398 = vmatmul.f32.gmra.mxu0 %v5030_v5  ;;  %648 = vmatmul.f32.gmra.mxu1 %v5028_v4 }
 0x102   : > { %1868 = vmatpush.msra.mxu0 %v1717_v2 }
 0x103   : > { %8129 = vst [vmem:[#allocation18_spill] sm:$0xff] %v5033_v6  ;;  %804 = vmatmul.f32.gmra.mxu2 %v5033_v6  ;;  %v5039_v7 = vand.u32 4294901760, %v5033_v6 }
 0x105   : > { %8130 = vst [vmem:[#allocation19_spill] sm:$0xff] %v5039_v7  ;;  %v176_v8 = vpop.trf.xlu0  ;;  %991 = vmatmul.f32.gmra.mxu3 %v5039_v7  ;;  %v404_v9 = vsub.f32 %v5033_v6, %v5039_v7 }
 0x106   : > { %v247_v10 = vsel %vm218_vm1, %v176_v8, 0 }
 0x107   : > { %v5045_v11 = vand.u32 4294901760, %v247_v10  ;;  %v5047_v15 = vand.u32 4294901760, %v404_v9  ;;  %v1718_v9 = vand.u32 4294901760, %v1717_v2 }
 0x109   : > { %v5050_v16 = vsub.f32 %v247_v10, %v5045_v11  ;;  %406 = vmatmul.f32.gmra.mxu0 %v5047_v15  ;;  %652 = vmatmul.f32.gmra.mxu1 %v5045_v11 }
 0x10a   : > { %2258 = vmatpush.msra.mxu2 %v1718_v9 }
 0x10b   : > { %8131 = vst [vmem:[#allocation20_spill] sm:$0xff] %v5050_v16  ;;  %809 = vmatmul.f32.gmra.mxu2 %v5050_v16  ;;  %v5056_v17 = vand.u32 4294901760, %v5050_v16 }
 0x10d   : > { %8132 = vst [vmem:[#allocation21_spill] sm:$0xff] %v5056_v17  ;;  %v177_v22 = vpop.trf.xlu0  ;;  %997 = vmatmul.f32.gmra.mxu3 %v5056_v17  ;;  %v412_v23 = vsub.f32 %v5050_v16, %v5056_v17 }
 0x10e   : > { %v250_v24 = vsel %vm218_vm1, %v177_v22, 0  ;;  %v1719_v22 = vsub.f32 %v1717_v2, %v1718_v9 }
 0x10f   : > { %v5062_v29 = vand.u32 4294901760, %v250_v24  ;;  %v5064_v30 = vand.u32 4294901760, %v412_v23 }
 0x111   : > { %v5067_v31 = vsub.f32 %v250_v24, %v5062_v29  ;;  %414 = vmatmul.f32.gmra.mxu0 %v5064_v30  ;;  %656 = vmatmul.f32.gmra.mxu1 %v5062_v29  ;;  %v1720_v24 = vand.u32 4294901760, %v1719_v22 }
 0x113   : > { %8133 = vst [vmem:[#allocation22_spill] sm:$0xff] %v5067_v31  ;;  %814 = vmatmul.f32.gmra.mxu2 %v5067_v31  ;;  %v5073_v36 = vand.u32 4294901760, %v5067_v31  ;;  %1721 = vmatpush.msrb.mxu3 %v1720_v24 }
 0x115   : > { %8134 = vst [vmem:[#allocation23_spill] sm:$0xff] %v5073_v36  ;;  %v178_v37 = vpop.trf.xlu0  ;;  %1003 = vmatmul.f32.gmra.mxu3 %v5073_v36  ;;  %v420_v38 = vsub.f32 %v5067_v31, %v5073_v36 }
 0x116   : > { %v253_v43 = vsel %vm218_vm1, %v178_v37, 0  ;;  %2404 = vmatpush.msra.mxu3 %v1442_v58 }
 0x117   : > { %v5079_v44 = vand.u32 4294901760, %v253_v43  ;;  %v5081_v45 = vand.u32 4294901760, %v420_v38 }
 0x119   : > { %v5084_v50 = vsub.f32 %v253_v43, %v5079_v44  ;;  %422 = vmatmul.f32.gmra.mxu0 %v5081_v45  ;;  %660 = vmatmul.f32.gmra.mxu1 %v5079_v44 }
 0x11b   : > { %8135 = vst [vmem:[#allocation24_spill] sm:$0xff] %v5084_v50  ;;  %819 = vmatmul.f32.gmra.mxu2 %v5084_v50  ;;  %v5092_v57 = vand.u32 4294901760, %v5084_v50 }
 0x11d   : > { %8136 = vst [vmem:[#allocation25_spill] sm:$0xff] %v5092_v57  ;;  %v179_v59 = vpop.trf.xlu0  ;;  %1009 = vmatmul.f32.gmra.mxu3 %v5092_v57  ;;  %v428_v1 = vsub.f32 %v5084_v50, %v5092_v57 }
 0x11e   : > { %v256_v3 = vsel %vm218_vm1, %v179_v59, 0 }
 0x11f   : > { %v5098_v8 = vand.u32 4294901760, %v256_v3  ;;  %v5100_v0 = vand.u32 4294901760, %v428_v1 }
 0x121   : > { %v5103_v10 = vsub.f32 %v256_v3, %v5098_v8  ;;  %430 = vmatmul.f32.gmra.mxu0 %v5100_v0  ;;  %664 = vmatmul.f32.gmra.mxu1 %v5098_v8 }
 0x123   : > { %8137 = vst [vmem:[#allocation26_spill] sm:$0xff] %v5103_v10  ;;  %824 = vmatmul.f32.gmra.mxu2 %v5103_v10  ;;  %v5109_v23 = vand.u32 4294901760, %v5103_v10 }
 0x125   : > { %8138 = vst [vmem:[#allocation27_spill] sm:$0xff] %v5109_v23  ;;  %v180_v37 = vpop.trf.xlu0  ;;  %1015 = vmatmul.f32.gmra.mxu3 %v5109_v23  ;;  %v436_v38 = vsub.f32 %v5103_v10, %v5109_v23 }
 0x126   : > { %v259_v43 = vsel %vm218_vm1, %v180_v37, 0 }
 0x127   : > { %v5115_v51 = vand.u32 4294901760, %v259_v43  ;;  %v5117_v52 = vand.u32 4294901760, %v436_v38 }
 0x129   : > { %v5120_v59 = vsub.f32 %v259_v43, %v5115_v51  ;;  %438 = vmatmul.f32.gmra.mxu0 %v5117_v52  ;;  %668 = vmatmul.f32.gmra.mxu1 %v5115_v51 }
 0x12b   : > { %8139 = vst [vmem:[#allocation28_spill] sm:$0xff] %v5120_v59  ;;  %829 = vmatmul.f32.gmra.mxu2 %v5120_v59  ;;  %v5126_v1 = vand.u32 4294901760, %v5120_v59 }
 0x12d   : > { %8140 = vst [vmem:[#allocation29_spill] sm:$0xff] %v5126_v1  ;;  %v181_v2 = vpop.trf.xlu0  ;;  %1021 = vmatmul.f32.gmra.mxu3 %v5126_v1  ;;  %v444_v3 = vsub.f32 %v5120_v59, %v5126_v1 }
 0x12e   : > { %v262_v58 = vsel %vm218_vm1, %v181_v2, 0 }
 0x12f   : > { %v5132_v9 = vand.u32 4294901760, %v262_v58  ;;  %v5134_v22 = vand.u32 4294901760, %v444_v3 }
 0x131   : > { %v5137_v24 = vsub.f32 %v262_v58, %v5132_v9  ;;  %446 = vmatmul.f32.gmra.mxu0 %v5134_v22  ;;  %672 = vmatmul.f32.gmra.mxu1 %v5132_v9 }
 0x133   : > { %8141 = vst [vmem:[#allocation30_spill] sm:$0xff] %v5137_v24  ;;  %834 = vmatmul.f32.gmra.mxu2 %v5137_v24  ;;  %v5143_v37 = vand.u32 4294901760, %v5137_v24 }
 0x135   : > { %8142 = vst [vmem:[#allocation31_spill] sm:$0xff] %v5143_v37  ;;  %v182_v38 = vpop.trf.xlu0  ;;  %1027 = vmatmul.f32.gmra.mxu3 %v5143_v37  ;;  %v452_v43 = vsub.f32 %v5137_v24, %v5143_v37 }
 0x136   : > { %v265_v2 = vsel %vm218_vm1, %v182_v38, 0 }
 0x137   : > { %v5149_v3 = vand.u32 4294901760, %v265_v2  ;;  %v5151_v58 = vand.u32 4294901760, %v452_v43 }
 0x139   : > { %v5154_v59 = vsub.f32 %v265_v2, %v5149_v3  ;;  %454 = vmatmul.f32.gmra.mxu0 %v5151_v58  ;;  %676 = vmatmul.f32.gmra.mxu1 %v5149_v3 }
 0x13b   : > { %8143 = vst [vmem:[#allocation32_spill] sm:$0xff] %v5154_v59  ;;  %839 = vmatmul.f32.gmra.mxu2 %v5154_v59  ;;  %v5160_v1 = vand.u32 4294901760, %v5154_v59 }
 0x13d   : > { %8144 = vst [vmem:[#allocation33_spill] sm:$0xff] %v5160_v1  ;;  %v199_v10 = vpop.trf.xlu0  ;;  %1033 = vmatmul.f32.gmra.mxu3 %v5160_v1  ;;  %v460_v38 = vsub.f32 %v5154_v59, %v5160_v1 }
 0x13e   : > { %v268_v43 = vsel %vm218_vm1, %v199_v10, 0  ;;  %v617_v24 = vpop.f32.mrf.mxu1 }
 0x13f   : > { %v5166_v2 = vand.u32 4294901760, %v268_v43  ;;  %v5168_v37 = vand.u32 4294901760, %v460_v38 }
 0x141   : > { %v5171_v23 = vsub.f32 %v268_v43, %v5166_v2  ;;  %462 = vmatmul.f32.gmra.mxu0 %v5168_v37  ;;  %680 = vmatmul.f32.gmra.mxu1 %v5166_v2 }
 0x143   : > { %8145 = vst [vmem:[#allocation34_spill] sm:$0xff] %v5171_v23  ;;  %844 = vmatmul.f32.gmra.mxu2 %v5171_v23  ;;  %v5177_v50 = vand.u32 4294901760, %v5171_v23 }
 0x145   : > { %8146 = vst [vmem:[#allocation35_spill] sm:$0xff] %v5177_v50  ;;  %v200_v59 = vpop.trf.xlu0  ;;  %1039 = vmatmul.f32.gmra.mxu3 %v5177_v50  ;;  %v468_v10 = vsub.f32 %v5171_v23, %v5177_v50 }
 0x146   : > { %v271_v38 = vsel %vm218_vm1, %v200_v59, 0  ;;  %v343_v1 = vpop.f32.mrf.mxu0  ;;  %v621_v43 = vpop.f32.mrf.mxu1 }
 0x147   : > { %v5183_v57 = vand.u32 4294901760, %v271_v38  ;;  %v618_v31 = vadd.f32 %v617_v24, %v343_v1  ;;  %v765_v36 = vpop.f32.mrf.mxu2  ;;  %v5185_v16 = vand.u32 4294901760, %v468_v10 }
 0x148   : > { %v944_v17 = vpop.f32.mrf.mxu3 }
 0x149   : > { %v5188_v6 = vsub.f32 %v271_v38, %v5183_v57  ;;  %v766_v7 = vadd.f32 %v765_v36, %v618_v31  ;;  %470 = vmatmul.f32.gmra.mxu0 %v5185_v16  ;;  %684 = vmatmul.f32.gmra.mxu1 %v5183_v57 }
 0x14b   : > { %8147 = vst [vmem:[#allocation36_spill] sm:$0xff] %v5188_v6  ;;  %v5192_v23 = vadd.f32 %v944_v17, %v766_v7  ;;  %849 = vmatmul.f32.gmra.mxu2 %v5188_v6  ;;  %v5196_v59 = vand.u32 4294901760, %v5188_v6 }
 0x14d   : > { %8148 = vst [vmem:[#allocation37_spill] sm:$0xff] %v5196_v59  ;;  %v201_v1 = vpop.trf.xlu0  ;;  %1045 = vmatmul.f32.gmra.mxu3 %v5196_v59  ;;  %v476_v24 = vsub.f32 %v5188_v6, %v5196_v59 }
 0x14e   : > { %v274_v10 = vsel %vm218_vm1, %v201_v1, 0  ;;  %v351_v31 = vpop.f32.mrf.mxu0  ;;  %v625_v36 = vpop.f32.mrf.mxu1 }
 0x14f   : > { %v5202_v38 = vand.u32 4294901760, %v274_v10  ;;  %v622_v50 = vadd.f32 %v621_v43, %v351_v31  ;;  %v770_v7 = vpop.f32.mrf.mxu2  ;;  %v5204_v17 = vand.u32 4294901760, %v476_v24 }
 0x150   : > { %v950_v62 = vpop.f32.mrf.mxu3 }
 0x151   : > { %v5207_v63 = vsub.f32 %v274_v10, %v5202_v38  ;;  %v771_v55 = vadd.f32 %v770_v7, %v622_v50  ;;  %478 = vmatmul.f32.gmra.mxu0 %v5204_v17  ;;  %688 = vmatmul.f32.gmra.mxu1 %v5202_v38 }
 0x153   : > { %8149 = vst [vmem:[#allocation38_spill] sm:$0xff] %v5207_v63  ;;  %v5211_v6 = vadd.f32 %v950_v62, %v771_v55  ;;  %854 = vmatmul.f32.gmra.mxu2 %v5207_v63  ;;  %v5215_v1 = vand.u32 4294901760, %v5207_v63 }
 0x155   : > { %8150 = vst [vmem:[#allocation39_spill] sm:$0xff] %v5215_v1  ;;  %v202_v43 = vpop.trf.xlu0  ;;  %1051 = vmatmul.f32.gmra.mxu3 %v5215_v1  ;;  %v484_v24 = vsub.f32 %v5207_v63, %v5215_v1 }
 0x156   : > { %v277_v10 = vsel %vm218_vm1, %v202_v43, 0  ;;  %v359_v50 = vpop.f32.mrf.mxu0  ;;  %v629_v31 = vpop.f32.mrf.mxu1 }
 0x157   : > { %v5221_v7 = vand.u32 4294901760, %v277_v10  ;;  %v626_v59 = vadd.f32 %v625_v36, %v359_v50  ;;  %v775_v55 = vpop.f32.mrf.mxu2  ;;  %v5223_v62 = vand.u32 4294901760, %v484_v24 }
 0x158   : > { %v956_v56 = vpop.f32.mrf.mxu3 }
 0x159   : > { %v5226_v48 = vsub.f32 %v277_v10, %v5221_v7  ;;  %v776_v49 = vadd.f32 %v775_v55, %v626_v59  ;;  %486 = vmatmul.f32.gmra.mxu0 %v5223_v62  ;;  %692 = vmatmul.f32.gmra.mxu1 %v5221_v7 }
 0x15b   : > { %8151 = vst [vmem:[#allocation40_spill] sm:$0xff] %v5226_v48  ;;  %v5230_v63 = vadd.f32 %v956_v56, %v776_v49  ;;  %859 = vmatmul.f32.gmra.mxu2 %v5226_v48  ;;  %v5234_v43 = vand.u32 4294901760, %v5226_v48 }
 0x15d   : > { %8152 = vst [vmem:[#allocation41_spill] sm:$0xff] %v5234_v43  ;;  %v203_v36 = vpop.trf.xlu0  ;;  %1057 = vmatmul.f32.gmra.mxu3 %v5234_v43  ;;  %v492_v24 = vsub.f32 %v5226_v48, %v5234_v43 }
 0x15e   : > { %v280_v10 = vsel %vm218_vm1, %v203_v36, 0  ;;  %v367_v59 = vpop.f32.mrf.mxu0  ;;  %v633_v50 = vpop.f32.mrf.mxu1 }
 0x15f   : > { %v5240_v55 = vand.u32 4294901760, %v280_v10  ;;  %v630_v1 = vadd.f32 %v629_v31, %v367_v59  ;;  %v780_v49 = vpop.f32.mrf.mxu2  ;;  %v5242_v56 = vand.u32 4294901760, %v492_v24 }
 0x160   : > { %v962_v41 = vpop.f32.mrf.mxu3 }
 0x161   : > { %v5245_v42 = vsub.f32 %v280_v10, %v5240_v55  ;;  %v781_v34 = vadd.f32 %v780_v49, %v630_v1  ;;  %494 = vmatmul.f32.gmra.mxu0 %v5242_v56  ;;  %696 = vmatmul.f32.gmra.mxu1 %v5240_v55 }
 0x163   : > { %8153 = vst [vmem:[#allocation42_spill] sm:$0xff] %v5245_v42  ;;  %v5249_v48 = vadd.f32 %v962_v41, %v781_v34  ;;  %864 = vmatmul.f32.gmra.mxu2 %v5245_v42  ;;  %v5253_v36 = vand.u32 4294901760, %v5245_v42 }
 0x165   : > { %8154 = vst [vmem:[#allocation43_spill] sm:$0xff] %v5253_v36  ;;  %v204_v31 = vpop.trf.xlu0  ;;  %1063 = vmatmul.f32.gmra.mxu3 %v5253_v36  ;;  %v500_v24 = vsub.f32 %v5245_v42, %v5253_v36 }
 0x166   : > { %v283_v10 = vsel %vm218_vm1, %v204_v31, 0  ;;  %v375_v1 = vpop.f32.mrf.mxu0  ;;  %v637_v59 = vpop.f32.mrf.mxu1 }
 0x167   : > { %v5259_v49 = vand.u32 4294901760, %v283_v10  ;;  %v634_v43 = vadd.f32 %v633_v50, %v375_v1  ;;  %v785_v34 = vpop.f32.mrf.mxu2  ;;  %v5261_v41 = vand.u32 4294901760, %v500_v24 }
 0x168   : > { %v968_v35 = vpop.f32.mrf.mxu3 }
 0x169   : > { %8155 = vst [vmem:[#allocation44_spill] sm:$0xff] %v5259_v49  ;;  %v5264_v27 = vsub.f32 %v283_v10, %v5259_v49  ;;  %v786_v28 = vadd.f32 %v785_v34, %v634_v43  ;;  %502 = vmatmul.f32.gmra.mxu0 %v5261_v41  ;;  %700 = vmatmul.f32.gmra.mxu1 %v5259_v49 }
 0x16b   : > { %8156 = vst [vmem:[#allocation45_spill] sm:$0xff] %v5264_v27  ;;  %v5268_v42 = vadd.f32 %v968_v35, %v786_v28  ;;  %869 = vmatmul.f32.gmra.mxu2 %v5264_v27  ;;  %v5272_v31 = vand.u32 4294901760, %v5264_v27 }
 0x16d   : > { %8157 = vst [vmem:[#allocation46_spill] sm:$0xff] %v5272_v31  ;;  %v205_v50 = vpop.trf.xlu0  ;;  %1069 = vmatmul.f32.gmra.mxu3 %v5272_v31  ;;  %v508_v24 = vsub.f32 %v5264_v27, %v5272_v31 }
 0x16e   : > { %v286_v10 = vsel %vm218_vm1, %v205_v50, 0  ;;  %v383_v43 = vpop.f32.mrf.mxu0  ;;  %v641_v1 = vpop.f32.mrf.mxu1 }
 0x16f   : > { %v5278_v34 = vand.u32 4294901760, %v286_v10  ;;  %v638_v36 = vadd.f32 %v637_v59, %v383_v43  ;;  %v790_v28 = vpop.f32.mrf.mxu2  ;;  %v5280_v35 = vand.u32 4294901760, %v508_v24 }
 0x170   : > { %v974_v20 = vpop.f32.mrf.mxu3 }
 0x171   : > { %8158 = vst [vmem:[#allocation47_spill] sm:$0xff] %v5278_v34  ;;  %v5283_v21 = vsub.f32 %v286_v10, %v5278_v34  ;;  %v791_v13 = vadd.f32 %v790_v28, %v638_v36  ;;  %510 = vmatmul.f32.gmra.mxu0 %v5280_v35  ;;  %704 = vmatmul.f32.gmra.mxu1 %v5278_v34 }
 0x173   : > { %8159 = vst [vmem:[#allocation48_spill] sm:$0xff] %v5283_v21  ;;  %v5287_v27 = vadd.f32 %v974_v20, %v791_v13  ;;  %874 = vmatmul.f32.gmra.mxu2 %v5283_v21  ;;  %v5291_v50 = vand.u32 4294901760, %v5283_v21 }
 0x175   : > { %8160 = vst [vmem:[#allocation49_spill] sm:$0xff] %v5287_v27  ;;  %v206_v59 = vpop.trf.xlu0  ;;  %1075 = vmatmul.f32.gmra.mxu3 %v5291_v50  ;;  %v516_v24 = vsub.f32 %v5283_v21, %v5291_v50 }
 0x176   : > { %8161 = vst [vmem:[#allocation50_spill] sm:$0xff] %v5291_v50  ;;  %v289_v10 = vsel %vm218_vm1, %v206_v59, 0  ;;  %v391_v36 = vpop.f32.mrf.mxu0  ;;  %v645_v43 = vpop.f32.mrf.mxu1 }
 0x177   : > { %v5297_v28 = vand.u32 4294901760, %v289_v10  ;;  %v642_v31 = vadd.f32 %v641_v1, %v391_v36  ;;  %v795_v13 = vpop.f32.mrf.mxu2  ;;  %v5299_v20 = vand.u32 4294901760, %v516_v24 }
 0x178   : > { %v980_v14 = vpop.f32.mrf.mxu3 }
 0x179   : > { %8162 = vst [vmem:[#allocation51_spill] sm:$0xff] %v5297_v28  ;;  %v5302_v34 = vsub.f32 %v289_v10, %v5297_v28  ;;  %v796_v27 = vadd.f32 %v795_v13, %v642_v31  ;;  %518 = vmatmul.f32.gmra.mxu0 %v5299_v20  ;;  %708 = vmatmul.f32.gmra.mxu1 %v5297_v28 }
 0x17a   : > { %8163 = vst [vmem:[#allocation52_spill] sm:$0xff] %v5299_v20 }
 0x17b   : > { %8164 = vst [vmem:[#allocation53_spill] sm:$0xff] %v5302_v34  ;;  %v5306_v21 = vadd.f32 %v980_v14, %v796_v27  ;;  %879 = vmatmul.f32.gmra.mxu2 %v5302_v34  ;;  %v5310_v59 = vand.u32 4294901760, %v5302_v34 }
 0x17d   : > { %8165 = vst [vmem:[#allocation54_spill] sm:$0xff] %v5306_v21  ;;  %v207_v1 = vpop.trf.xlu0  ;;  %1081 = vmatmul.f32.gmra.mxu3 %v5310_v59  ;;  %v524_v24 = vsub.f32 %v5302_v34, %v5310_v59 }
 0x17e   : > { %8166 = vst [vmem:[#allocation55_spill] sm:$0xff] %v5310_v59  ;;  %v292_v10 = vsel %vm218_vm1, %v207_v1, 0  ;;  %v399_v31 = vpop.f32.mrf.mxu0  ;;  %v649_v36 = vpop.f32.mrf.mxu1 }
 0x17f   : > { %v5316_v13 = vand.u32 4294901760, %v292_v10  ;;  %v646_v50 = vadd.f32 %v645_v43, %v399_v31  ;;  %v800_v14 = vpop.f32.mrf.mxu2  ;;  %v5318_v27 = vand.u32 4294901760, %v524_v24 }
 0x180   : > { %v986_v28 = vpop.f32.mrf.mxu3 }
 0x181   : > { %8167 = vst [vmem:[#allocation56_spill] sm:$0xff] %v5316_v13  ;;  %v5321_v21 = vsub.f32 %v292_v10, %v5316_v13  ;;  %v801_v20 = vadd.f32 %v800_v14, %v646_v50  ;;  %526 = vmatmul.f32.gmra.mxu0 %v5318_v27  ;;  %712 = vmatmul.f32.gmra.mxu1 %v5316_v13 }
 0x182   : > { %8168 = vst [vmem:[#allocation57_spill] sm:$0xff] %v5318_v27 }
 0x183   : > { %8169 = vst [vmem:[#allocation58_spill] sm:$0xff] %v5321_v21  ;;  %v5325_v34 = vadd.f32 %v986_v28, %v801_v20  ;;  %884 = vmatmul.f32.gmra.mxu2 %v5321_v21  ;;  %v5329_v1 = vand.u32 4294901760, %v5321_v21 }
 0x185   : > { %8170 = vst [vmem:[#allocation59_spill] sm:$0xff] %v5325_v34  ;;  %v208_v43 = vpop.trf.xlu0  ;;  %1087 = vmatmul.f32.gmra.mxu3 %v5329_v1  ;;  %v532_v24 = vsub.f32 %v5321_v21, %v5329_v1 }
 0x186   : > { %8171 = vst [vmem:[#allocation60_spill] sm:$0xff] %v5329_v1  ;;  %v295_v10 = vsel %vm218_vm1, %v208_v43, 0  ;;  %v407_v50 = vpop.f32.mrf.mxu0  ;;  %v653_v31 = vpop.f32.mrf.mxu1 }
 0x187   : > { %v5335_v14 = vand.u32 4294901760, %v295_v10  ;;  %v650_v59 = vadd.f32 %v649_v36, %v407_v50  ;;  %v805_v28 = vpop.f32.mrf.mxu2  ;;  %v5337_v20 = vand.u32 4294901760, %v532_v24 }
 0x188   : > { %v992_v13 = vpop.f32.mrf.mxu3 }
 0x189   : > { %8172 = vst [vmem:[#allocation61_spill] sm:$0xff] %v5335_v14  ;;  %v5340_v34 = vsub.f32 %v295_v10, %v5335_v14  ;;  %v806_v27 = vadd.f32 %v805_v28, %v650_v59  ;;  %534 = vmatmul.f32.gmra.mxu0 %v5337_v20  ;;  %716 = vmatmul.f32.gmra.mxu1 %v5335_v14 }
 0x18a   : > { %8173 = vst [vmem:[#allocation62_spill] sm:$0xff] %v5337_v20 }
 0x18b   : > { %8174 = vst [vmem:[#allocation63_spill] sm:$0xff] %v5340_v34  ;;  %v5344_v21 = vadd.f32 %v992_v13, %v806_v27  ;;  %889 = vmatmul.f32.gmra.mxu2 %v5340_v34  ;;  %v5348_v43 = vand.u32 4294901760, %v5340_v34 }
 0x18d   : > { %8175 = vst [vmem:[#allocation64_spill] sm:$0xff] %v5344_v21  ;;  %v209_v36 = vpop.trf.xlu0  ;;  %1093 = vmatmul.f32.gmra.mxu3 %v5348_v43  ;;  %v540_v24 = vsub.f32 %v5340_v34, %v5348_v43 }
 0x18e   : > { %8176 = vst [vmem:[#allocation65_spill] sm:$0xff] %v5348_v43  ;;  %v298_v10 = vsel %vm218_vm1, %v209_v36, 0  ;;  %v415_v59 = vpop.f32.mrf.mxu0  ;;  %v657_v50 = vpop.f32.mrf.mxu1 }
 0x18f   : > { %v5354_v28 = vand.u32 4294901760, %v298_v10  ;;  %v654_v1 = vadd.f32 %v653_v31, %v415_v59  ;;  %v810_v13 = vpop.f32.mrf.mxu2  ;;  %v5356_v27 = vand.u32 4294901760, %v540_v24 }
 0x190   : > { %v998_v14 = vpop.f32.mrf.mxu3 }
 0x191   : > { %8177 = vst [vmem:[#allocation66_spill] sm:$0xff] %v5354_v28  ;;  %v5359_v21 = vsub.f32 %v298_v10, %v5354_v28  ;;  %v811_v20 = vadd.f32 %v810_v13, %v654_v1  ;;  %542 = vmatmul.f32.gmra.mxu0 %v5356_v27  ;;  %720 = vmatmul.f32.gmra.mxu1 %v5354_v28 }
 0x192   : > { %8178 = vst [vmem:[#allocation67_spill] sm:$0xff] %v5356_v27 }
 0x193   : > { %8179 = vst [vmem:[#allocation68_spill] sm:$0xff] %v5359_v21  ;;  %v5363_v34 = vadd.f32 %v998_v14, %v811_v20  ;;  %894 = vmatmul.f32.gmra.mxu2 %v5359_v21  ;;  %v5367_v36 = vand.u32 4294901760, %v5359_v21 }
 0x195   : > { %8180 = vst [vmem:[#allocation69_spill] sm:$0xff] %v5363_v34  ;;  %v210_v31 = vpop.trf.xlu0  ;;  %1099 = vmatmul.f32.gmra.mxu3 %v5367_v36  ;;  %v548_v24 = vsub.f32 %v5359_v21, %v5367_v36 }
 0x196   : > { %8181 = vst [vmem:[#allocation70_spill] sm:$0xff] %v5367_v36  ;;  %v301_v10 = vsel %vm218_vm1, %v210_v31, 0  ;;  %v423_v1 = vpop.f32.mrf.mxu0  ;;  %v661_v59 = vpop.f32.mrf.mxu1 }
 0x197   : > { %v5373_v13 = vand.u32 4294901760, %v301_v10  ;;  %v658_v43 = vadd.f32 %v657_v50, %v423_v1  ;;  %v815_v14 = vpop.f32.mrf.mxu2  ;;  %v5375_v20 = vand.u32 4294901760, %v548_v24 }
 0x198   : > { %v1004_v28 = vpop.f32.mrf.mxu3 }
 0x199   : > { %8182 = vst [vmem:[#allocation71_spill] sm:$0xff] %v5373_v13  ;;  %v5378_v34 = vsub.f32 %v301_v10, %v5373_v13  ;;  %v816_v27 = vadd.f32 %v815_v14, %v658_v43  ;;  %550 = vmatmul.f32.gmra.mxu0 %v5375_v20  ;;  %724 = vmatmul.f32.gmra.mxu1 %v5373_v13 }
 0x19a   : > { %8183 = vst [vmem:[#allocation72_spill] sm:$0xff] %v5375_v20 }
 0x19b   : > { %8184 = vst [vmem:[#allocation73_spill] sm:$0xff] %v5378_v34  ;;  %v5382_v21 = vadd.f32 %v1004_v28, %v816_v27  ;;  %899 = vmatmul.f32.gmra.mxu2 %v5378_v34  ;;  %v5386_v31 = vand.u32 4294901760, %v5378_v34 }
 0x19d   : > { %8185 = vst [vmem:[#allocation74_spill] sm:$0xff] %v5382_v21  ;;  %v211_v50 = vpop.trf.xlu0  ;;  %1105 = vmatmul.f32.gmra.mxu3 %v5386_v31  ;;  %v556_v24 = vsub.f32 %v5378_v34, %v5386_v31 }
 0x19e   : > { %8186 = vst [vmem:[#allocation75_spill] sm:$0xff] %v5386_v31  ;;  %v304_v10 = vsel %vm218_vm1, %v211_v50, 0  ;;  %v431_v43 = vpop.f32.mrf.mxu0  ;;  %v665_v1 = vpop.f32.mrf.mxu1 }
 0x19f   : > { %v5392_v14 = vand.u32 4294901760, %v304_v10  ;;  %v662_v36 = vadd.f32 %v661_v59, %v431_v43  ;;  %v820_v28 = vpop.f32.mrf.mxu2  ;;  %v5394_v27 = vand.u32 4294901760, %v556_v24 }
 0x1a0   : > { %v1010_v13 = vpop.f32.mrf.mxu3 }
 0x1a1   : > { %8187 = vst [vmem:[#allocation76_spill] sm:$0xff] %v5392_v14  ;;  %v5397_v21 = vsub.f32 %v304_v10, %v5392_v14  ;;  %v821_v20 = vadd.f32 %v820_v28, %v662_v36  ;;  %558 = vmatmul.f32.gmra.mxu0 %v5394_v27  ;;  %728 = vmatmul.f32.gmra.mxu1 %v5392_v14 }
 0x1a2   : > { %8188 = vst [vmem:[#allocation77_spill] sm:$0xff] %v5394_v27 }
 0x1a3   : > { %8189 = vst [vmem:[#allocation78_spill] sm:$0xff] %v5397_v21  ;;  %v5401_v34 = vadd.f32 %v1010_v13, %v821_v20  ;;  %904 = vmatmul.f32.gmra.mxu2 %v5397_v21  ;;  %v5405_v50 = vand.u32 4294901760, %v5397_v21 }
 0x1a5   : > { %8190 = vst [vmem:[#allocation79_spill] sm:$0xff] %v5401_v34  ;;  %v212_v59 = vpop.trf.xlu0  ;;  %1111 = vmatmul.f32.gmra.mxu3 %v5405_v50  ;;  %v564_v24 = vsub.f32 %v5397_v21, %v5405_v50 }
 0x1a6   : > { %8191 = vst [vmem:[#allocation80_spill] sm:$0xff] %v5405_v50  ;;  %v307_v10 = vsel %vm218_vm1, %v212_v59, 0  ;;  %v439_v36 = vpop.f32.mrf.mxu0  ;;  %v669_v43 = vpop.f32.mrf.mxu1 }
 0x1a7   : > { %v5411_v28 = vand.u32 4294901760, %v307_v10  ;;  %v666_v31 = vadd.f32 %v665_v1, %v439_v36  ;;  %v825_v13 = vpop.f32.mrf.mxu2  ;;  %v5413_v20 = vand.u32 4294901760, %v564_v24 }
 0x1a8   : > { %v1016_v14 = vpop.f32.mrf.mxu3 }
 0x1a9   : > { %8192 = vst [vmem:[#allocation81_spill] sm:$0xff] %v5411_v28  ;;  %v5416_v34 = vsub.f32 %v307_v10, %v5411_v28  ;;  %v826_v27 = vadd.f32 %v825_v13, %v666_v31  ;;  %566 = vmatmul.f32.gmra.mxu0 %v5413_v20  ;;  %732 = vmatmul.f32.gmra.mxu1 %v5411_v28 }
 0x1aa   : > { %8193 = vst [vmem:[#allocation82_spill] sm:$0xff] %v5413_v20 }
 0x1ab   : > { %8194 = vst [vmem:[#allocation83_spill] sm:$0xff] %v5416_v34  ;;  %v5420_v21 = vadd.f32 %v1016_v14, %v826_v27  ;;  %909 = vmatmul.f32.gmra.mxu2 %v5416_v34  ;;  %v5424_v59 = vand.u32 4294901760, %v5416_v34 }
 0x1ad   : > { %8195 = vst [vmem:[#allocation84_spill] sm:$0xff] %v5420_v21  ;;  %v213_v1 = vpop.trf.xlu0  ;;  %1117 = vmatmul.f32.gmra.mxu3 %v5424_v59  ;;  %v572_v24 = vsub.f32 %v5416_v34, %v5424_v59 }
 0x1ae   : > { %8196 = vst [vmem:[#allocation85_spill] sm:$0xff] %v5424_v59  ;;  %v310_v10 = vsel %vm218_vm1, %v213_v1, 0  ;;  %v447_v31 = vpop.f32.mrf.mxu0  ;;  %v673_v36 = vpop.f32.mrf.mxu1 }
 0x1af   : > { %v5430_v13 = vand.u32 4294901760, %v310_v10  ;;  %v670_v50 = vadd.f32 %v669_v43, %v447_v31  ;;  %v830_v14 = vpop.f32.mrf.mxu2  ;;  %v5432_v27 = vand.u32 4294901760, %v572_v24 }
 0x1b0   : > { %v1022_v28 = vpop.f32.mrf.mxu3 }
 0x1b1   : > { %8197 = vst [vmem:[#allocation86_spill] sm:$0xff] %v5430_v13  ;;  %v5435_v21 = vsub.f32 %v310_v10, %v5430_v13  ;;  %v831_v20 = vadd.f32 %v830_v14, %v670_v50  ;;  %574 = vmatmul.f32.gmra.mxu0 %v5432_v27  ;;  %736 = vmatmul.f32.gmra.mxu1 %v5430_v13 }
 0x1b2   : > { %8198 = vst [vmem:[#allocation87_spill] sm:$0xff] %v5432_v27 }
 0x1b3   : > { %8199 = vst [vmem:[#allocation88_spill] sm:$0xff] %v5435_v21  ;;  %v5439_v34 = vadd.f32 %v1022_v28, %v831_v20  ;;  %914 = vmatmul.f32.gmra.mxu2 %v5435_v21  ;;  %v5443_v1 = vand.u32 4294901760, %v5435_v21 }
 0x1b5   : > { %8200 = vst [vmem:[#allocation89_spill] sm:$0xff] %v5439_v34  ;;  %v214_v43 = vpop.trf.xlu0  ;;  %1123 = vmatmul.f32.gmra.mxu3 %v5443_v1  ;;  %v580_v24 = vsub.f32 %v5435_v21, %v5443_v1 }
 0x1b6   : > { %8201 = vst [vmem:[#allocation90_spill] sm:$0xff] %v5443_v1  ;;  %v313_v10 = vsel %vm218_vm1, %v214_v43, 0  ;;  %v455_v50 = vpop.f32.mrf.mxu0  ;;  %v677_v31 = vpop.f32.mrf.mxu1 }
 0x1b7   : > { %v5449_v14 = vand.u32 4294901760, %v313_v10  ;;  %v674_v59 = vadd.f32 %v673_v36, %v455_v50  ;;  %v835_v28 = vpop.f32.mrf.mxu2  ;;  %v5451_v20 = vand.u32 4294901760, %v580_v24 }
 0x1b8   : > { %v1028_v13 = vpop.f32.mrf.mxu3 }
 0x1b9   : > { %8202 = vst [vmem:[#allocation91_spill] sm:$0xff] %v5449_v14  ;;  %v5454_v34 = vsub.f32 %v313_v10, %v5449_v14  ;;  %v836_v27 = vadd.f32 %v835_v28, %v674_v59  ;;  %582 = vmatmul.f32.gmra.mxu0 %v5451_v20  ;;  %740 = vmatmul.f32.gmra.mxu1 %v5449_v14 }
 0x1bb   : > { %8203 = vst [vmem:[#allocation92_spill] sm:$0xff] %v5454_v34  ;;  %v5458_v21 = vadd.f32 %v1028_v13, %v836_v27  ;;  %919 = vmatmul.f32.gmra.mxu2 %v5454_v34  ;;  %v5462_v43 = vand.u32 4294901760, %v5454_v34 }
 0x1bd   : > { %8204 = vst [vmem:[#allocation93_spill] sm:$0xff] %v5458_v21  ;;  %1129 = vmatmul.f32.gmra.mxu3 %v5462_v43  ;;  %v588_v36 = vsub.f32 %v5454_v34, %v5462_v43 }
 0x1be   : > { %8205 = vst [vmem:[#allocation94_spill] sm:$0xff] %v5462_v43  ;;  %v463_v24 = vpop.f32.mrf.mxu0  ;;  %v681_v10 = vpop.f32.mrf.mxu1 }
 0x1bf   : > { %v678_v50 = vadd.f32 %v677_v31, %v463_v24  ;;  %v840_v59 = vpop.f32.mrf.mxu2  ;;  %v5467_v28 = vand.u32 4294901760, %v588_v36 }
 0x1c0   : > { %v1034_v1 = vpop.f32.mrf.mxu3 }
 0x1c1   : > { %v841_v14 = vadd.f32 %v840_v59, %v678_v50  ;;  %590 = vmatmul.f32.gmra.mxu0 %v5467_v28  ;;  %1299 = vmatmul.f32.vlgmr.msrb.gmra.mxu1 %v4895_v12 }
 0x1c3   : > { %v5471_v13 = vadd.f32 %v1034_v1, %v841_v14  ;;  %1449 = vmatmul.f32.vlgmr.msrb.gmra.mxu2 %v4911_v19 }
 0x1c5   : > { %8206 = vst [vmem:[#allocation95_spill] sm:$0xff] %v5471_v13  ;;  %1723 = vmatmul.f32.vlgmr.msrb.gmra.mxu3 %v4895_v12 }
 0x1c6   : > { %v471_v27 = vpop.f32.mrf.mxu0  ;;  %v685_v34 = vpop.f32.mrf.mxu1 }
 0x1c7   : > { %v682_v43 = vadd.f32 %v681_v10, %v471_v27  ;;  %v845_v21 = vpop.f32.mrf.mxu2 }
 0x1c8   : > { %v1040_v31 = vpop.f32.mrf.mxu3 }
 0x1c9   : > { %v846_v24 = vadd.f32 %v845_v21, %v682_v43  ;;  %1153 = vmatmul.f32.vlgmr.msrb.gmra.mxu0 %v4895_v12  ;;  %1303 = vmatmul.f32.gmra.mxu1 %v4909_v18 }
 0x1cb   : > { %v5477_v36 = vadd.f32 %v1040_v31, %v846_v24  ;;  %1457 = vmatmul.f32.gmra.mxu2 %v4928_v26 }
 0x1cd   : > { %1727 = vmatmul.f32.gmra.mxu3 %v4909_v18 }
 0x1ce   : > { %v479_v1 = vpop.f32.mrf.mxu0  ;;  %v689_v19 = vpop.f32.mrf.mxu1 }
 0x1cf   : > { %v686_v14 = vadd.f32 %v685_v34, %v479_v1  ;;  %v850_v50 = vpop.f32.mrf.mxu2 }
 0x1d0   : > { %v1046_v59 = vpop.f32.mrf.mxu3 }
 0x1d1   : > { %v851_v13 = vadd.f32 %v850_v50, %v686_v14  ;;  %1157 = vmatmul.f32.gmra.mxu0 %v4909_v18  ;;  %1307 = vmatmul.f32.gmra.mxu1 %v4926_v25 }
 0x1d3   : > { %v5483_v21 = vadd.f32 %v1046_v59, %v851_v13  ;;  %1465 = vmatmul.f32.gmra.mxu2 %v4945_v33 }
 0x1d5   : > { %1731 = vmatmul.f32.gmra.mxu3 %v4926_v25 }
 0x1d6   : > { %v487_v43 = vpop.f32.mrf.mxu0  ;;  %v693_v26 = vpop.f32.mrf.mxu1 }
 0x1d7   : > { %v690_v10 = vadd.f32 %v689_v19, %v487_v43  ;;  %v855_v27 = vpop.f32.mrf.mxu2 }
 0x1d8   : > { %v1052_v31 = vpop.f32.mrf.mxu3 }
 0x1d9   : > { %v856_v24 = vadd.f32 %v855_v27, %v690_v10  ;;  %1161 = vmatmul.f32.gmra.mxu0 %v4926_v25  ;;  %1311 = vmatmul.f32.gmra.mxu1 %v4943_v32 }
 0x1db   : > { %v5489_v34 = vadd.f32 %v1052_v31, %v856_v24  ;;  %1473 = vmatmul.f32.gmra.mxu2 %v4962_v40 }
 0x1dd   : > { %1735 = vmatmul.f32.gmra.mxu3 %v4943_v32 }
 0x1de   : > { %v495_v13 = vpop.f32.mrf.mxu0  ;;  %v697_v33 = vpop.f32.mrf.mxu1 }
 0x1df   : > { %v694_v1 = vadd.f32 %v693_v26, %v495_v13  ;;  %v860_v14 = vpop.f32.mrf.mxu2 }
 0x1e0   : > { %v1058_v50 = vpop.f32.mrf.mxu3 }
 0x1e1   : > { %v861_v59 = vadd.f32 %v860_v14, %v694_v1  ;;  %1165 = vmatmul.f32.gmra.mxu0 %v4943_v32  ;;  %1315 = vmatmul.f32.gmra.mxu1 %v4960_v39 }
 0x1e3   : > { %v5495_v19 = vadd.f32 %v1058_v50, %v861_v59  ;;  %1481 = vmatmul.f32.gmra.mxu2 %v4979_v47 }
 0x1e5   : > { %1739 = vmatmul.f32.gmra.mxu3 %v4960_v39 }
 0x1e6   : > { %v503_v43 = vpop.f32.mrf.mxu0  ;;  %v701_v40 = vpop.f32.mrf.mxu1 }
 0x1e7   : > { %v698_v10 = vadd.f32 %v697_v33, %v503_v43  ;;  %v865_v27 = vpop.f32.mrf.mxu2 }
 0x1e8   : > { %v1064_v31 = vpop.f32.mrf.mxu3 }
 0x1e9   : > { %v866_v24 = vadd.f32 %v865_v27, %v698_v10  ;;  %1169 = vmatmul.f32.gmra.mxu0 %v4960_v39  ;;  %1319 = vmatmul.f32.gmra.mxu1 %v4977_v46 }
 0x1eb   : > { %v5501_v26 = vadd.f32 %v1064_v31, %v866_v24  ;;  %1489 = vmatmul.f32.gmra.mxu2 %v4996_v54 }
 0x1ed   : > { %1743 = vmatmul.f32.gmra.mxu3 %v4977_v46 }
 0x1ee   : > { %v511_v13 = vpop.f32.mrf.mxu0  ;;  %v705_v47 = vpop.f32.mrf.mxu1 }
 0x1ef   : > { %v702_v1 = vadd.f32 %v701_v40, %v511_v13  ;;  %v870_v14 = vpop.f32.mrf.mxu2 }
 0x1f0   : > { %v1070_v50 = vpop.f32.mrf.mxu3 }
 0x1f1   : > { %v871_v59 = vadd.f32 %v870_v14, %v702_v1  ;;  %1173 = vmatmul.f32.gmra.mxu0 %v4977_v46  ;;  %1323 = vmatmul.f32.gmra.mxu1 %v4994_v53 }
 0x1f3   : > { %v5507_v33 = vadd.f32 %v1070_v50, %v871_v59  ;;  %1497 = vmatmul.f32.gmra.mxu2 %v5013_v61 }
 0x1f5   : > { %1747 = vmatmul.f32.gmra.mxu3 %v4994_v53 }
 0x1f6   : > { %v519_v43 = vpop.f32.mrf.mxu0  ;;  %v709_v54 = vpop.f32.mrf.mxu1 }
 0x1f7   : > { %v706_v10 = vadd.f32 %v705_v47, %v519_v43  ;;  %v875_v27 = vpop.f32.mrf.mxu2 }
 0x1f8   : > { %v1076_v31 = vpop.f32.mrf.mxu3 }
 0x1f9   : > { %v876_v24 = vadd.f32 %v875_v27, %v706_v10  ;;  %1177 = vmatmul.f32.gmra.mxu0 %v4994_v53  ;;  %1327 = vmatmul.f32.gmra.mxu1 %v5011_v60 }
 0x1fb   : > { %v5513_v40 = vadd.f32 %v1076_v31, %v876_v24  ;;  %1505 = vmatmul.f32.gmra.mxu2 %v5030_v5 }
 0x1fd   : > { %1751 = vmatmul.f32.gmra.mxu3 %v5011_v60 }
 0x1fe   : > { %v527_v13 = vpop.f32.mrf.mxu0  ;;  %v713_v61 = vpop.f32.mrf.mxu1 }
 0x1ff   : > { %v710_v1 = vadd.f32 %v709_v54, %v527_v13  ;;  %v880_v14 = vpop.f32.mrf.mxu2 }
 0x200   : > { %v1082_v50 = vpop.f32.mrf.mxu3 }
 0x201   : > { %v881_v59 = vadd.f32 %v880_v14, %v710_v1  ;;  %1181 = vmatmul.f32.gmra.mxu0 %v5011_v60  ;;  %1331 = vmatmul.f32.gmra.mxu1 %v5028_v4 }
 0x203   : > { %v5519_v47 = vadd.f32 %v1082_v50, %v881_v59  ;;  %1513 = vmatmul.f32.gmra.mxu2 %v5047_v15 }
 0x205   : > { %1755 = vmatmul.f32.gmra.mxu3 %v5028_v4 }
 0x206   : > { %v535_v43 = vpop.f32.mrf.mxu0  ;;  %v717_v5 = vpop.f32.mrf.mxu1 }
 0x207   : > { %v714_v10 = vadd.f32 %v713_v61, %v535_v43  ;;  %v885_v27 = vpop.f32.mrf.mxu2 }
 0x208   : > { %v1088_v31 = vpop.f32.mrf.mxu3 }
 0x209   : > { %v886_v24 = vadd.f32 %v885_v27, %v714_v10  ;;  %1185 = vmatmul.f32.gmra.mxu0 %v5028_v4  ;;  %1335 = vmatmul.f32.gmra.mxu1 %v5045_v11 }
 0x20b   : > { %v5525_v54 = vadd.f32 %v1088_v31, %v886_v24  ;;  %1521 = vmatmul.f32.gmra.mxu2 %v5064_v30 }
 0x20d   : > { %1759 = vmatmul.f32.gmra.mxu3 %v5045_v11 }
 0x20e   : > { %v543_v13 = vpop.f32.mrf.mxu0  ;;  %v721_v15 = vpop.f32.mrf.mxu1 }
 0x20f   : > { %v718_v1 = vadd.f32 %v717_v5, %v543_v13  ;;  %v890_v14 = vpop.f32.mrf.mxu2 }
 0x210   : > { %v1094_v50 = vpop.f32.mrf.mxu3 }
 0x211   : > { %v891_v59 = vadd.f32 %v890_v14, %v718_v1  ;;  %1189 = vmatmul.f32.gmra.mxu0 %v5045_v11  ;;  %1339 = vmatmul.f32.gmra.mxu1 %v5062_v29 }
 0x213   : > { %v5531_v61 = vadd.f32 %v1094_v50, %v891_v59  ;;  %1529 = vmatmul.f32.gmra.mxu2 %v5081_v45 }
 0x215   : > { %1763 = vmatmul.f32.gmra.mxu3 %v5062_v29 }
 0x216   : > { %v551_v43 = vpop.f32.mrf.mxu0  ;;  %v725_v30 = vpop.f32.mrf.mxu1 }
 0x217   : > { %v722_v10 = vadd.f32 %v721_v15, %v551_v43  ;;  %v895_v27 = vpop.f32.mrf.mxu2 }
 0x218   : > { %v1100_v31 = vpop.f32.mrf.mxu3 }
 0x219   : > { %v896_v24 = vadd.f32 %v895_v27, %v722_v10  ;;  %1193 = vmatmul.f32.gmra.mxu0 %v5062_v29  ;;  %1343 = vmatmul.f32.gmra.mxu1 %v5079_v44 }
 0x21b   : > { %v5537_v5 = vadd.f32 %v1100_v31, %v896_v24  ;;  %1537 = vmatmul.f32.gmra.mxu2 %v5100_v0 }
 0x21d   : > { %1767 = vmatmul.f32.gmra.mxu3 %v5079_v44 }
 0x21e   : > { %v559_v13 = vpop.f32.mrf.mxu0  ;;  %v729_v45 = vpop.f32.mrf.mxu1 }
 0x21f   : > { %v726_v1 = vadd.f32 %v725_v30, %v559_v13  ;;  %v900_v14 = vpop.f32.mrf.mxu2 }
 0x220   : > { %v1106_v50 = vpop.f32.mrf.mxu3 }
 0x221   : > { %v901_v59 = vadd.f32 %v900_v14, %v726_v1  ;;  %1197 = vmatmul.f32.gmra.mxu0 %v5079_v44  ;;  %1347 = vmatmul.f32.gmra.mxu1 %v5098_v8 }
 0x223   : > { %v5543_v15 = vadd.f32 %v1106_v50, %v901_v59  ;;  %1545 = vmatmul.f32.gmra.mxu2 %v5117_v52 }
 0x225   : > { %1771 = vmatmul.f32.gmra.mxu3 %v5098_v8 }
 0x226   : > { %v567_v43 = vpop.f32.mrf.mxu0  ;;  %v733_v0 = vpop.f32.mrf.mxu1 }
 0x227   : > { %v730_v10 = vadd.f32 %v729_v45, %v567_v43  ;;  %v905_v27 = vpop.f32.mrf.mxu2 }
 0x228   : > { %v1112_v31 = vpop.f32.mrf.mxu3 }
 0x229   : > { %v906_v24 = vadd.f32 %v905_v27, %v730_v10  ;;  %1201 = vmatmul.f32.gmra.mxu0 %v5098_v8  ;;  %1351 = vmatmul.f32.gmra.mxu1 %v5115_v51 }
 0x22b   : > { %v5549_v30 = vadd.f32 %v1112_v31, %v906_v24  ;;  %1553 = vmatmul.f32.gmra.mxu2 %v5134_v22 }
 0x22d   : > { %1775 = vmatmul.f32.gmra.mxu3 %v5115_v51 }
 0x22e   : > { %v575_v13 = vpop.f32.mrf.mxu0  ;;  %v737_v52 = vpop.f32.mrf.mxu1 }
 0x22f   : > { %v734_v1 = vadd.f32 %v733_v0, %v575_v13  ;;  %v910_v14 = vpop.f32.mrf.mxu2 }
 0x230   : > { %v1118_v50 = vpop.f32.mrf.mxu3 }
 0x231   : > { %v911_v59 = vadd.f32 %v910_v14, %v734_v1  ;;  %1205 = vmatmul.f32.gmra.mxu0 %v5115_v51  ;;  %1355 = vmatmul.f32.gmra.mxu1 %v5132_v9 }
 0x233   : > { %v5555_v45 = vadd.f32 %v1118_v50, %v911_v59  ;;  %1561 = vmatmul.f32.gmra.mxu2 %v5151_v58 }
 0x235   : > { %1779 = vmatmul.f32.gmra.mxu3 %v5132_v9 }
 0x236   : > { %v583_v43 = vpop.f32.mrf.mxu0  ;;  %v741_v22 = vpop.f32.mrf.mxu1 }
 0x237   : > { %v738_v10 = vadd.f32 %v737_v52, %v583_v43  ;;  %v915_v27 = vpop.f32.mrf.mxu2 }
 0x238   : > { %v1124_v31 = vpop.f32.mrf.mxu3 }
 0x239   : > { %v916_v24 = vadd.f32 %v915_v27, %v738_v10  ;;  %1209 = vmatmul.f32.gmra.mxu0 %v5132_v9  ;;  %1359 = vmatmul.f32.gmra.mxu1 %v5149_v3 }
 0x23b   : > { %v5561_v0 = vadd.f32 %v1124_v31, %v916_v24  ;;  %1569 = vmatmul.f32.gmra.mxu2 %v5168_v37 }
 0x23d   : > { %1783 = vmatmul.f32.gmra.mxu3 %v5149_v3 }
 0x23e   : > { %v591_v13 = vpop.f32.mrf.mxu0  ;;  %v1300_v58 = vpop.f32.mrf.mxu1 }
 0x23f   : > { %v742_v1 = vadd.f32 %v741_v22, %v591_v13  ;;  %v920_v14 = vpop.f32.mrf.mxu2 }
 0x240   : > { %v1130_v50 = vpop.f32.mrf.mxu3 }
 0x241   : > { %v921_v59 = vadd.f32 %v920_v14, %v742_v1  ;;  %1213 = vmatmul.f32.gmra.mxu0 %v5149_v3  ;;  %1363 = vmatmul.f32.gmra.mxu1 %v5166_v2 }
 0x243   : > { %v5567_v52 = vadd.f32 %v1130_v50, %v921_v59  ;;  %1577 = vmatmul.f32.gmra.mxu2 %v5185_v16 }
 0x245   : > { %1787 = vmatmul.f32.gmra.mxu3 %v5166_v2 }
 0x246   : > { %v1154_v43 = vpop.f32.mrf.mxu0  ;;  %v1304_v37 = vpop.f32.mrf.mxu1 }
 0x247   : > { %v1155_v10 = vadd.f32 %v1154_v43, %v5192_v23  ;;  %v1450_v27 = vpop.f32.mrf.mxu2 }
 0x248   : > { %v1724_v31 = vpop.f32.mrf.mxu3 }
 0x249   : > { %v5572_v22 = vadd.f32 %v1300_v58, %v1155_v10  ;;  %v5574_v24 = vadd.f32 %v1724_v31, %v1450_v27  ;;  %1217 = vmatmul.f32.gmra.mxu0 %v5166_v2  ;;  %1367 = vmatmul.f32.gmra.mxu1 %v5183_v57 }
 0x24b   : > { %1585 = vmatmul.f32.gmra.mxu2 %v5204_v17 }
 0x24d   : > { %1791 = vmatmul.f32.gmra.mxu3 %v5183_v57 }
 0x24e   : > { %v1158_v16 = vpop.f32.mrf.mxu0  ;;  %v1308_v13 = vpop.f32.mrf.mxu1 }
 0x24f   : > { %v1159_v1 = vadd.f32 %v1158_v16, %v5211_v6  ;;  %v1458_v14 = vpop.f32.mrf.mxu2 }
 0x250   : > { %v1728_v23 = vpop.f32.mrf.mxu3 }
 0x251   : > { %v5581_v50 = vadd.f32 %v1304_v37, %v1159_v1  ;;  %v5583_v58 = vadd.f32 %v1728_v23, %v1458_v14  ;;  %1221 = vmatmul.f32.gmra.mxu0 %v5183_v57  ;;  %1371 = vmatmul.f32.gmra.mxu1 %v5202_v38 }
 0x253   : > { %1593 = vmatmul.f32.gmra.mxu2 %v5223_v62 }
 0x255   : > { %1795 = vmatmul.f32.gmra.mxu3 %v5202_v38 }
 0x256   : > { %v1162_v17 = vpop.f32.mrf.mxu0  ;;  %v1312_v59 = vpop.f32.mrf.mxu1 }
 0x257   : > { %v1163_v43 = vadd.f32 %v1162_v17, %v5230_v63  ;;  %v1466_v10 = vpop.f32.mrf.mxu2 }
 0x258   : > { %v1732_v6 = vpop.f32.mrf.mxu3 }
 0x259   : > { %v5590_v27 = vadd.f32 %v1308_v13, %v1163_v43  ;;  %v5592_v37 = vadd.f32 %v1732_v6, %v1466_v10  ;;  %1225 = vmatmul.f32.gmra.mxu0 %v5202_v38  ;;  %1375 = vmatmul.f32.gmra.mxu1 %v5221_v7 }
 0x25b   : > { %1601 = vmatmul.f32.gmra.mxu2 %v5242_v56 }
 0x25d   : > { %1799 = vmatmul.f32.gmra.mxu3 %v5221_v7 }
 0x25e   : > { %v1166_v62 = vpop.f32.mrf.mxu0  ;;  %v1316_v31 = vpop.f32.mrf.mxu1 }
 0x25f   : > { %v1167_v16 = vadd.f32 %v1166_v62, %v5249_v48  ;;  %v1474_v1 = vpop.f32.mrf.mxu2  ;;  %v8209_v62 = vld [vmem:[#allocation49_spill] sm:$0xff] }
 0x260   : > { %v1736_v63 = vpop.f32.mrf.mxu3 }
 0x261   : > { %v5599_v14 = vadd.f32 %v1312_v59, %v1167_v16  ;;  %v5601_v13 = vadd.f32 %v1736_v63, %v1474_v1  ;;  %1229 = vmatmul.f32.gmra.mxu0 %v5221_v7  ;;  %1379 = vmatmul.f32.gmra.mxu1 %v5240_v55 }
 0x263   : > { %1609 = vmatmul.f32.gmra.mxu2 %v5261_v41 }
 0x265   : > { %1803 = vmatmul.f32.gmra.mxu3 %v5240_v55 }
 0x266   : > { %v1170_v56 = vpop.f32.mrf.mxu0  ;;  %v1320_v23 = vpop.f32.mrf.mxu1 }
 0x267   : > { %v1171_v17 = vadd.f32 %v1170_v56, %v5268_v42  ;;  %v1482_v43 = vpop.f32.mrf.mxu2  ;;  %v8212_v56 = vld [vmem:[#allocation47_spill] sm:$0xff] }
 0x268   : > { %v1740_v48 = vpop.f32.mrf.mxu3 }
 0x269   : > { %v5608_v10 = vadd.f32 %v1316_v31, %v1171_v17  ;;  %v5610_v59 = vadd.f32 %v1740_v48, %v1482_v43  ;;  %1233 = vmatmul.f32.gmra.mxu0 %v5240_v55  ;;  %1383 = vmatmul.f32.gmra.mxu1 %v5259_v49  ;;  %v8213_v17 = vld [vmem:[#allocation52_spill] sm:$0xff]  ;;  %v8214_v48 = vld [vmem:[#allocation54_spill] sm:$0xff] }
 0x26b   : > { %8207 = vst [vmem:[#allocation96_spill] sm:$0xff] %v5608_v10  ;;  %1617 = vmatmul.f32.gmra.mxu2 %v5280_v35 }
 0x26c   : > { %8208 = vst [vmem:[#allocation97_spill] sm:$0xff] %v5610_v59 }
 0x26d   : > { %1807 = vmatmul.f32.gmra.mxu3 %v5259_v49 }
 0x26e   : > { %v1174_v41 = vpop.f32.mrf.mxu0  ;;  %v1324_v6 = vpop.f32.mrf.mxu1 }
 0x26f   : > { %v1175_v16 = vadd.f32 %v1174_v41, %v8209_v62  ;;  %v1490_v1 = vpop.f32.mrf.mxu2 }
 0x270   : > { %v1744_v42 = vpop.f32.mrf.mxu3 }
 0x271   : > { %v5617_v63 = vadd.f32 %v1320_v23, %v1175_v16  ;;  %v5619_v31 = vadd.f32 %v1744_v42, %v1490_v1  ;;  %1237 = vmatmul.f32.gmra.mxu0 %v5259_v49  ;;  %1387 = vmatmul.f32.gmra.mxu1 %v8212_v56  ;;  %v8217_v16 = vld [vmem:[#allocation51_spill] sm:$0xff]  ;;  %v8218_v1 = vld [vmem:[#allocation57_spill] sm:$0xff] }
 0x273   : > { %8210 = vst [vmem:[#allocation49_spill] sm:$0xff] %v5617_v63  ;;  %1625 = vmatmul.f32.gmra.mxu2 %v8213_v17  ;;  %v8219_v63 = vld [vmem:[#allocation59_spill] sm:$0xff] }
 0x274   : > { %8211 = vst [vmem:[#allocation98_spill] sm:$0xff] %v5619_v31 }
 0x275   : > { %1811 = vmatmul.f32.gmra.mxu3 %v8212_v56 }
 0x276   : > { %v1178_v35 = vpop.f32.mrf.mxu0  ;;  %v1328_v43 = vpop.f32.mrf.mxu1 }
 0x277   : > { %v1179_v10 = vadd.f32 %v1178_v35, %v8214_v48  ;;  %v1498_v59 = vpop.f32.mrf.mxu2 }
 0x278   : > { %v1748_v41 = vpop.f32.mrf.mxu3 }
 0x279   : > { %v5626_v62 = vadd.f32 %v1324_v6, %v1179_v10  ;;  %v5628_v23 = vadd.f32 %v1748_v41, %v1498_v59  ;;  %1241 = vmatmul.f32.gmra.mxu0 %v8212_v56  ;;  %1391 = vmatmul.f32.gmra.mxu1 %v8217_v16  ;;  %v8222_v59 = vld [vmem:[#allocation56_spill] sm:$0xff]  ;;  %v8223_v6 = vld [vmem:[#allocation62_spill] sm:$0xff] }
 0x27b   : > { %8215 = vst [vmem:[#allocation52_spill] sm:$0xff] %v5626_v62  ;;  %1633 = vmatmul.f32.gmra.mxu2 %v8218_v1  ;;  %v8224_v62 = vld [vmem:[#allocation64_spill] sm:$0xff] }
 0x27c   : > { %8216 = vst [vmem:[#allocation54_spill] sm:$0xff] %v5628_v23 }
 0x27d   : > { %1815 = vmatmul.f32.gmra.mxu3 %v8217_v16 }
 0x27e   : > { %v1182_v42 = vpop.f32.mrf.mxu0  ;;  %v1332_v17 = vpop.f32.mrf.mxu1 }
 0x27f   : > { %v1183_v31 = vadd.f32 %v1182_v42, %v8219_v63  ;;  %v1506_v49 = vpop.f32.mrf.mxu2 }
 0x280   : > { %v1752_v35 = vpop.f32.mrf.mxu3 }
 0x281   : > { %v5635_v48 = vadd.f32 %v1328_v43, %v1183_v31  ;;  %v5637_v10 = vadd.f32 %v1752_v35, %v1506_v49  ;;  %1245 = vmatmul.f32.gmra.mxu0 %v8217_v16  ;;  %1395 = vmatmul.f32.gmra.mxu1 %v8222_v59  ;;  %v8227_v49 = vld [vmem:[#allocation61_spill] sm:$0xff]  ;;  %v8228_v43 = vld [vmem:[#allocation67_spill] sm:$0xff] }
 0x283   : > { %8220 = vst [vmem:[#allocation57_spill] sm:$0xff] %v5635_v48  ;;  %1641 = vmatmul.f32.gmra.mxu2 %v8223_v6  ;;  %v8229_v48 = vld [vmem:[#allocation69_spill] sm:$0xff] }
 0x284   : > { %8221 = vst [vmem:[#allocation59_spill] sm:$0xff] %v5637_v10 }
 0x285   : > { %1819 = vmatmul.f32.gmra.mxu3 %v8222_v59 }
 0x286   : > { %v1186_v41 = vpop.f32.mrf.mxu0  ;;  %v1336_v1 = vpop.f32.mrf.mxu1 }
 0x287   : > { %v1187_v23 = vadd.f32 %v1186_v41, %v8224_v62  ;;  %v1514_v56 = vpop.f32.mrf.mxu2 }
 0x288   : > { %v1756_v63 = vpop.f32.mrf.mxu3 }
 0x289   : > { %v5644_v42 = vadd.f32 %v1332_v17, %v1187_v23  ;;  %v5646_v31 = vadd.f32 %v1756_v63, %v1514_v56  ;;  %1249 = vmatmul.f32.gmra.mxu0 %v8222_v59  ;;  %1399 = vmatmul.f32.gmra.mxu1 %v8227_v49  ;;  %v8232_v56 = vld [vmem:[#allocation66_spill] sm:$0xff]  ;;  %v8233_v17 = vld [vmem:[#allocation72_spill] sm:$0xff] }
 0x28b   : > { %8225 = vst [vmem:[#allocation62_spill] sm:$0xff] %v5644_v42  ;;  %1649 = vmatmul.f32.gmra.mxu2 %v8228_v43  ;;  %v8234_v42 = vld [vmem:[#allocation74_spill] sm:$0xff] }
 0x28c   : > { %8226 = vst [vmem:[#allocation64_spill] sm:$0xff] %v5646_v31 }
 0x28d   : > { %1823 = vmatmul.f32.gmra.mxu3 %v8227_v49 }
 0x28e   : > { %v1190_v35 = vpop.f32.mrf.mxu0  ;;  %v1340_v6 = vpop.f32.mrf.mxu1 }
 0x28f   : > { %v1191_v10 = vadd.f32 %v1190_v35, %v8229_v48  ;;  %v1522_v16 = vpop.f32.mrf.mxu2 }
 0x290   : > { %v1760_v62 = vpop.f32.mrf.mxu3 }
 0x291   : > { %v5653_v41 = vadd.f32 %v1336_v1, %v1191_v10  ;;  %v5655_v23 = vadd.f32 %v1760_v62, %v1522_v16  ;;  %1253 = vmatmul.f32.gmra.mxu0 %v8227_v49  ;;  %1403 = vmatmul.f32.gmra.mxu1 %v8232_v56  ;;  %v8237_v16 = vld [vmem:[#allocation71_spill] sm:$0xff]  ;;  %v8238_v1 = vld [vmem:[#allocation77_spill] sm:$0xff] }
 0x293   : > { %8230 = vst [vmem:[#allocation67_spill] sm:$0xff] %v5653_v41  ;;  %1657 = vmatmul.f32.gmra.mxu2 %v8233_v17  ;;  %v8239_v41 = vld [vmem:[#allocation79_spill] sm:$0xff] }
 0x294   : > { %8231 = vst [vmem:[#allocation69_spill] sm:$0xff] %v5655_v23 }
 0x295   : > { %1827 = vmatmul.f32.gmra.mxu3 %v8232_v56 }
 0x296   : > { %v1194_v63 = vpop.f32.mrf.mxu0  ;;  %v1344_v43 = vpop.f32.mrf.mxu1 }
 0x297   : > { %v1195_v31 = vadd.f32 %v1194_v63, %v8234_v42  ;;  %v1530_v59 = vpop.f32.mrf.mxu2 }
 0x298   : > { %v1764_v48 = vpop.f32.mrf.mxu3 }
 0x299   : > { %v5662_v35 = vadd.f32 %v1340_v6, %v1195_v31  ;;  %v5664_v10 = vadd.f32 %v1764_v48, %v1530_v59  ;;  %1257 = vmatmul.f32.gmra.mxu0 %v8232_v56  ;;  %1407 = vmatmul.f32.gmra.mxu1 %v8237_v16  ;;  %v8242_v59 = vld [vmem:[#allocation76_spill] sm:$0xff]  ;;  %v8243_v6 = vld [vmem:[#allocation82_spill] sm:$0xff] }
 0x29b   : > { %8235 = vst [vmem:[#allocation72_spill] sm:$0xff] %v5662_v35  ;;  %1665 = vmatmul.f32.gmra.mxu2 %v8238_v1  ;;  %v8244_v35 = vld [vmem:[#allocation84_spill] sm:$0xff] }
 0x29c   : > { %8236 = vst [vmem:[#allocation74_spill] sm:$0xff] %v5664_v10 }
 0x29d   : > { %1831 = vmatmul.f32.gmra.mxu3 %v8237_v16 }
 0x29e   : > { %v1198_v62 = vpop.f32.mrf.mxu0  ;;  %v1348_v17 = vpop.f32.mrf.mxu1 }
 0x29f   : > { %v1199_v23 = vadd.f32 %v1198_v62, %v8239_v41  ;;  %v1538_v49 = vpop.f32.mrf.mxu2 }
 0x2a0   : > { %v1768_v42 = vpop.f32.mrf.mxu3 }
 0x2a1   : > { %v5671_v63 = vadd.f32 %v1344_v43, %v1199_v23  ;;  %v5673_v31 = vadd.f32 %v1768_v42, %v1538_v49  ;;  %1261 = vmatmul.f32.gmra.mxu0 %v8237_v16  ;;  %1411 = vmatmul.f32.gmra.mxu1 %v8242_v59  ;;  %v8247_v49 = vld [vmem:[#allocation81_spill] sm:$0xff]  ;;  %v8248_v43 = vld [vmem:[#allocation87_spill] sm:$0xff] }
 0x2a3   : > { %8240 = vst [vmem:[#allocation77_spill] sm:$0xff] %v5671_v63  ;;  %1673 = vmatmul.f32.gmra.mxu2 %v8243_v6  ;;  %v8249_v63 = vld [vmem:[#allocation89_spill] sm:$0xff] }
 0x2a4   : > { %8241 = vst [vmem:[#allocation79_spill] sm:$0xff] %v5673_v31 }
 0x2a5   : > { %1835 = vmatmul.f32.gmra.mxu3 %v8242_v59 }
 0x2a6   : > { %v1202_v48 = vpop.f32.mrf.mxu0  ;;  %v1352_v1 = vpop.f32.mrf.mxu1 }
 0x2a7   : > { %v1203_v10 = vadd.f32 %v1202_v48, %v8244_v35  ;;  %v1546_v56 = vpop.f32.mrf.mxu2 }
 0x2a8   : > { %v1772_v41 = vpop.f32.mrf.mxu3 }
 0x2a9   : > { %v5680_v62 = vadd.f32 %v1348_v17, %v1203_v10  ;;  %v5682_v23 = vadd.f32 %v1772_v41, %v1546_v56  ;;  %1265 = vmatmul.f32.gmra.mxu0 %v8242_v59  ;;  %1415 = vmatmul.f32.gmra.mxu1 %v8247_v49  ;;  %v8252_v56 = vld [vmem:[#allocation86_spill] sm:$0xff] }
 0x2ab   : > { %8245 = vst [vmem:[#allocation76_spill] sm:$0xff] %v5680_v62  ;;  %1681 = vmatmul.f32.gmra.mxu2 %v8248_v43  ;;  %v8253_v43 = vld [vmem:[#allocation93_spill] sm:$0xff] }
 0x2ac   : > { %8246 = vst [vmem:[#allocation82_spill] sm:$0xff] %v5682_v23 }
 0x2ad   : > { %1839 = vmatmul.f32.gmra.mxu3 %v8247_v49 }
 0x2ae   : > { %v1206_v42 = vpop.f32.mrf.mxu0  ;;  %v1356_v6 = vpop.f32.mrf.mxu1 }
 0x2af   : > { %v1207_v31 = vadd.f32 %v1206_v42, %v8249_v63  ;;  %v1554_v16 = vpop.f32.mrf.mxu2 }
 0x2b0   : > { %v1776_v35 = vpop.f32.mrf.mxu3 }
 0x2b1   : > { %v5689_v48 = vadd.f32 %v1352_v1, %v1207_v31  ;;  %v5691_v10 = vadd.f32 %v1776_v35, %v1554_v16  ;;  %1269 = vmatmul.f32.gmra.mxu0 %v8247_v49  ;;  %1419 = vmatmul.f32.gmra.mxu1 %v8252_v56  ;;  %v8255_v16 = vld [vmem:[#allocation91_spill] sm:$0xff] }
 0x2b2   : > { %v8256_v35 = vld [vmem:[#allocation95_spill] sm:$0xff] }
 0x2b3   : > { %8250 = vst [vmem:[#allocation84_spill] sm:$0xff] %v5689_v48  ;;  %1689 = vmatmul.f32.gmra.mxu2 %v5451_v20 }
 0x2b4   : > { %8251 = vst [vmem:[#allocation81_spill] sm:$0xff] %v5691_v10 }
 0x2b5   : > { %1843 = vmatmul.f32.gmra.mxu3 %v8252_v56 }
 0x2b6   : > { %v1210_v17 = vpop.f32.mrf.mxu0  ;;  %v1360_v41 = vpop.f32.mrf.mxu1 }
 0x2b7   : > { %v1211_v62 = vadd.f32 %v1210_v17, %v8253_v43  ;;  %v1562_v23 = vpop.f32.mrf.mxu2 }
 0x2b8   : > { %v1780_v63 = vpop.f32.mrf.mxu3 }
 0x2b9   : > { %v5698_v42 = vadd.f32 %v1356_v6, %v1211_v62  ;;  %v5700_v31 = vadd.f32 %v1780_v63, %v1562_v23  ;;  %1273 = vmatmul.f32.gmra.mxu0 %v8252_v56  ;;  %1423 = vmatmul.f32.gmra.mxu1 %v8255_v16  ;;  %v8258_v23 = vld [vmem:[#allocation3_spill] sm:$0xff] }
 0x2bb   : > { %8254 = vst [vmem:[#allocation87_spill] sm:$0xff] %v5698_v42  ;;  %1697 = vmatmul.f32.gmra.mxu2 %v5467_v28 }
 0x2bd   : > { %1847 = vmatmul.f32.gmra.mxu3 %v8255_v16 }
 0x2be   : > { %v1214_v20 = vpop.f32.mrf.mxu0  ;;  %v1364_v1 = vpop.f32.mrf.mxu1 }
 0x2bf   : > { %v1215_v48 = vadd.f32 %v1214_v20, %v8256_v35  ;;  %v1570_v10 = vpop.f32.mrf.mxu2 }
 0x2c0   : > { %v1784_v17 = vpop.f32.mrf.mxu3 }
 0x2c1   : > { %v5707_v43 = vadd.f32 %v1360_v41, %v1215_v48  ;;  %v5709_v62 = vadd.f32 %v1784_v17, %v1570_v10  ;;  %1277 = vmatmul.f32.gmra.mxu0 %v8255_v16  ;;  %2050 = vmatmul.f32.vlgmr.msra.gmra.mxu1 %v8258_v23  ;;  %v8260_v10 = vld [vmem:[#allocation2_spill] sm:$0xff]  ;;  %v8261_v41 = vld [vmem:[#allocation5_spill] sm:$0xff] }
 0x2c3   : > { %8257 = vst [vmem:[#allocation89_spill] sm:$0xff] %v5707_v43  ;;  %2260 = vmatmul.f32.vlgmr.msra.gmra.mxu2 %v4895_v12 }
 0x2c5   : > { %2406 = vmatmul.f32.vlgmr.msra.gmra.mxu3 %v4895_v12 }
 0x2c6   : > { %v1218_v28 = vpop.f32.mrf.mxu0  ;;  %v1368_v6 = vpop.f32.mrf.mxu1 }
 0x2c7   : > { %v1219_v63 = vadd.f32 %v1218_v28, %v5477_v36  ;;  %v1578_v42 = vpop.f32.mrf.mxu2 }
 0x2c8   : > { %v1788_v20 = vpop.f32.mrf.mxu3 }
 0x2c9   : > { %v5716_v35 = vadd.f32 %v1364_v1, %v1219_v63  ;;  %v5718_v48 = vadd.f32 %v1788_v20, %v1578_v42  ;;  %1871 = vmatmul.f32.vlgmr.msra.gmra.mxu0 %v8260_v10  ;;  %2056 = vmatmul.f32.gmra.mxu1 %v8261_v41  ;;  %v8263_v42 = vld [vmem:[#allocation4_spill] sm:$0xff]  ;;  %v8264_v63 = vld [vmem:[#allocation7_spill] sm:$0xff] }
 0x2cb   : > { %8259 = vst [vmem:[#allocation86_spill] sm:$0xff] %v5716_v35  ;;  %2264 = vmatmul.f32.gmra.mxu2 %v4909_v18  ;;  %v8301_v35 = vld [vmem:[#allocation34_spill] sm:$0xff] }
 0x2cd   : > { %2410 = vmatmul.f32.gmra.mxu3 %v4909_v18 }
 0x2ce   : > { %v1222_v17 = vpop.f32.mrf.mxu0  ;;  %v1372_v12 = vpop.f32.mrf.mxu1 }
 0x2cf   : > { %v1223_v23 = vadd.f32 %v1222_v17, %v5483_v21  ;;  %v1586_v43 = vpop.f32.mrf.mxu2 }
 0x2d0   : > { %v1792_v36 = vpop.f32.mrf.mxu3 }
 0x2d1   : > { %v5725_v28 = vadd.f32 %v1368_v6, %v1223_v23  ;;  %v5727_v1 = vadd.f32 %v1792_v36, %v1586_v43  ;;  %1876 = vmatmul.f32.gmra.mxu0 %v8263_v42  ;;  %2062 = vmatmul.f32.gmra.mxu1 %v8264_v63  ;;  %v8266_v43 = vld [vmem:[#allocation6_spill] sm:$0xff]  ;;  %v8267_v23 = vld [vmem:[#allocation9_spill] sm:$0xff] }
 0x2d3   : > { %8262 = vst [vmem:[#allocation93_spill] sm:$0xff] %v5725_v28  ;;  %2268 = vmatmul.f32.gmra.mxu2 %v4926_v25 }
 0x2d5   : > { %2414 = vmatmul.f32.gmra.mxu3 %v4926_v25 }
 0x2d6   : > { %v1226_v20 = vpop.f32.mrf.mxu0  ;;  %v1376_v18 = vpop.f32.mrf.mxu1 }
 0x2d7   : > { %v1227_v10 = vadd.f32 %v1226_v20, %v5489_v34  ;;  %v1594_v41 = vpop.f32.mrf.mxu2 }
 0x2d8   : > { %v1796_v21 = vpop.f32.mrf.mxu3 }
 0x2d9   : > { %v5734_v17 = vadd.f32 %v1372_v12, %v1227_v10  ;;  %v5736_v6 = vadd.f32 %v1796_v21, %v1594_v41  ;;  %1881 = vmatmul.f32.gmra.mxu0 %v8266_v43  ;;  %2068 = vmatmul.f32.gmra.mxu1 %v8267_v23  ;;  %v8269_v10 = vld [vmem:[#allocation8_spill] sm:$0xff]  ;;  %v8270_v41 = vld [vmem:[#allocation11_spill] sm:$0xff] }
 0x2db   : > { %8265 = vst [vmem:[#allocation91_spill] sm:$0xff] %v5734_v17  ;;  %2272 = vmatmul.f32.gmra.mxu2 %v4943_v32 }
 0x2dd   : > { %2418 = vmatmul.f32.gmra.mxu3 %v4943_v32 }
 0x2de   : > { %v1230_v36 = vpop.f32.mrf.mxu0  ;;  %v1380_v25 = vpop.f32.mrf.mxu1 }
 0x2df   : > { %v1231_v42 = vadd.f32 %v1230_v36, %v5495_v19  ;;  %v1602_v63 = vpop.f32.mrf.mxu2 }
 0x2e0   : > { %v1800_v34 = vpop.f32.mrf.mxu3 }
 0x2e1   : > { %v5743_v20 = vadd.f32 %v1376_v18, %v1231_v42  ;;  %v5745_v12 = vadd.f32 %v1800_v34, %v1602_v63  ;;  %1886 = vmatmul.f32.gmra.mxu0 %v8269_v10  ;;  %2074 = vmatmul.f32.gmra.mxu1 %v8270_v41  ;;  %v8272_v42 = vld [vmem:[#allocation10_spill] sm:$0xff]  ;;  %v8273_v63 = vld [vmem:[#allocation13_spill] sm:$0xff] }
 0x2e3   : > { %8268 = vst [vmem:[#allocation95_spill] sm:$0xff] %v5743_v20  ;;  %2276 = vmatmul.f32.gmra.mxu2 %v4960_v39 }
 0x2e5   : > { %2422 = vmatmul.f32.gmra.mxu3 %v4960_v39 }
 0x2e6   : > { %v1234_v21 = vpop.f32.mrf.mxu0  ;;  %v1384_v32 = vpop.f32.mrf.mxu1 }
 0x2e7   : > { %v1235_v43 = vadd.f32 %v1234_v21, %v5501_v26  ;;  %v1610_v23 = vpop.f32.mrf.mxu2 }
 0x2e8   : > { %v1804_v19 = vpop.f32.mrf.mxu3 }
 0x2e9   : > { %v5752_v36 = vadd.f32 %v1380_v25, %v1235_v43  ;;  %v5754_v18 = vadd.f32 %v1804_v19, %v1610_v23  ;;  %1891 = vmatmul.f32.gmra.mxu0 %v8272_v42  ;;  %2080 = vmatmul.f32.gmra.mxu1 %v8273_v63  ;;  %v8275_v43 = vld [vmem:[#allocation12_spill] sm:$0xff]  ;;  %v8276_v23 = vld [vmem:[#allocation15_spill] sm:$0xff] }
 0x2eb   : > { %8271 = vst [vmem:[#allocation3_spill] sm:$0xff] %v5752_v36  ;;  %2280 = vmatmul.f32.gmra.mxu2 %v4977_v46 }
 0x2ed   : > { %2426 = vmatmul.f32.gmra.mxu3 %v4977_v46 }
 0x2ee   : > { %v1238_v34 = vpop.f32.mrf.mxu0  ;;  %v1388_v39 = vpop.f32.mrf.mxu1 }
 0x2ef   : > { %v1239_v10 = vadd.f32 %v1238_v34, %v5507_v33  ;;  %v1618_v41 = vpop.f32.mrf.mxu2 }
 0x2f0   : > { %v1808_v26 = vpop.f32.mrf.mxu3 }
 0x2f1   : > { %v5761_v21 = vadd.f32 %v1384_v32, %v1239_v10  ;;  %v5763_v25 = vadd.f32 %v1808_v26, %v1618_v41  ;;  %1896 = vmatmul.f32.gmra.mxu0 %v8275_v43  ;;  %2086 = vmatmul.f32.gmra.mxu1 %v8276_v23  ;;  %v8278_v10 = vld [vmem:[#allocation14_spill] sm:$0xff]  ;;  %v8279_v41 = vld [vmem:[#allocation17_spill] sm:$0xff] }
 0x2f3   : > { %8274 = vst [vmem:[#allocation2_spill] sm:$0xff] %v5761_v21  ;;  %2284 = vmatmul.f32.gmra.mxu2 %v4994_v53 }
 0x2f5   : > { %2430 = vmatmul.f32.gmra.mxu3 %v4994_v53 }
 0x2f6   : > { %v1242_v19 = vpop.f32.mrf.mxu0  ;;  %v1392_v46 = vpop.f32.mrf.mxu1 }
 0x2f7   : > { %v1243_v42 = vadd.f32 %v1242_v19, %v5513_v40  ;;  %v1626_v63 = vpop.f32.mrf.mxu2 }
 0x2f8   : > { %v1812_v33 = vpop.f32.mrf.mxu3 }
 0x2f9   : > { %v5770_v34 = vadd.f32 %v1388_v39, %v1243_v42  ;;  %v5772_v32 = vadd.f32 %v1812_v33, %v1626_v63  ;;  %1901 = vmatmul.f32.gmra.mxu0 %v8278_v10  ;;  %2092 = vmatmul.f32.gmra.mxu1 %v8279_v41  ;;  %v8281_v42 = vld [vmem:[#allocation16_spill] sm:$0xff]  ;;  %v8282_v63 = vld [vmem:[#allocation19_spill] sm:$0xff] }
 0x2fb   : > { %8277 = vst [vmem:[#allocation5_spill] sm:$0xff] %v5770_v34  ;;  %2288 = vmatmul.f32.gmra.mxu2 %v5011_v60 }
 0x2fd   : > { %2434 = vmatmul.f32.gmra.mxu3 %v5011_v60 }
 0x2fe   : > { %v1246_v26 = vpop.f32.mrf.mxu0  ;;  %v1396_v53 = vpop.f32.mrf.mxu1 }
 0x2ff   : > { %v1247_v43 = vadd.f32 %v1246_v26, %v5519_v47  ;;  %v1634_v23 = vpop.f32.mrf.mxu2 }
 0x300   : > { %v1816_v40 = vpop.f32.mrf.mxu3 }
 0x301   : > { %v5779_v19 = vadd.f32 %v1392_v46, %v1247_v43  ;;  %v5781_v39 = vadd.f32 %v1816_v40, %v1634_v23  ;;  %1906 = vmatmul.f32.gmra.mxu0 %v8281_v42  ;;  %2098 = vmatmul.f32.gmra.mxu1 %v8282_v63  ;;  %v8284_v43 = vld [vmem:[#allocation18_spill] sm:$0xff]  ;;  %v8285_v23 = vld [vmem:[#allocation21_spill] sm:$0xff] }
 0x303   : > { %8280 = vst [vmem:[#allocation4_spill] sm:$0xff] %v5779_v19  ;;  %2292 = vmatmul.f32.gmra.mxu2 %v5028_v4 }
 0x305   : > { %2438 = vmatmul.f32.gmra.mxu3 %v5028_v4 }
 0x306   : > { %v1250_v33 = vpop.f32.mrf.mxu0  ;;  %v1400_v60 = vpop.f32.mrf.mxu1 }
 0x307   : > { %v1251_v10 = vadd.f32 %v1250_v33, %v5525_v54  ;;  %v1642_v41 = vpop.f32.mrf.mxu2 }
 0x308   : > { %v1820_v47 = vpop.f32.mrf.mxu3 }
 0x309   : > { %v5788_v26 = vadd.f32 %v1396_v53, %v1251_v10  ;;  %v5790_v46 = vadd.f32 %v1820_v47, %v1642_v41  ;;  %1911 = vmatmul.f32.gmra.mxu0 %v8284_v43  ;;  %2104 = vmatmul.f32.gmra.mxu1 %v8285_v23  ;;  %v8287_v10 = vld [vmem:[#allocation20_spill] sm:$0xff]  ;;  %v8288_v41 = vld [vmem:[#allocation23_spill] sm:$0xff] }
 0x30b   : > { %8283 = vst [vmem:[#allocation7_spill] sm:$0xff] %v5788_v26  ;;  %2296 = vmatmul.f32.gmra.mxu2 %v5045_v11 }
 0x30d   : > { %2442 = vmatmul.f32.gmra.mxu3 %v5045_v11 }
 0x30e   : > { %v1254_v40 = vpop.f32.mrf.mxu0  ;;  %v1404_v4 = vpop.f32.mrf.mxu1 }
 0x30f   : > { %v1255_v42 = vadd.f32 %v1254_v40, %v5531_v61  ;;  %v1650_v63 = vpop.f32.mrf.mxu2 }
 0x310   : > { %v1824_v54 = vpop.f32.mrf.mxu3 }
 0x311   : > { %v5797_v33 = vadd.f32 %v1400_v60, %v1255_v42  ;;  %v5799_v53 = vadd.f32 %v1824_v54, %v1650_v63  ;;  %1916 = vmatmul.f32.gmra.mxu0 %v8287_v10  ;;  %2110 = vmatmul.f32.gmra.mxu1 %v8288_v41  ;;  %v8289_v42 = vld [vmem:[#allocation22_spill] sm:$0xff]  ;;  %v8290_v63 = vld [vmem:[#allocation25_spill] sm:$0xff] }
 0x313   : > { %8286 = vst [vmem:[#allocation6_spill] sm:$0xff] %v5797_v33  ;;  %2300 = vmatmul.f32.gmra.mxu2 %v5062_v29 }
 0x315   : > { %2446 = vmatmul.f32.gmra.mxu3 %v5062_v29 }
 0x316   : > { %v1258_v47 = vpop.f32.mrf.mxu0  ;;  %v1408_v11 = vpop.f32.mrf.mxu1 }
 0x317   : > { %v1259_v43 = vadd.f32 %v1258_v47, %v5537_v5  ;;  %v1658_v23 = vpop.f32.mrf.mxu2 }
 0x318   : > { %v1828_v61 = vpop.f32.mrf.mxu3 }
 0x319   : > { %v5806_v40 = vadd.f32 %v1404_v4, %v1259_v43  ;;  %v5808_v60 = vadd.f32 %v1828_v61, %v1658_v23  ;;  %1921 = vmatmul.f32.gmra.mxu0 %v8289_v42  ;;  %2116 = vmatmul.f32.gmra.mxu1 %v8290_v63  ;;  %v8291_v43 = vld [vmem:[#allocation24_spill] sm:$0xff]  ;;  %v8292_v23 = vld [vmem:[#allocation27_spill] sm:$0xff] }
 0x31b   : > { %2304 = vmatmul.f32.gmra.mxu2 %v5079_v44 }
 0x31d   : > { %2450 = vmatmul.f32.gmra.mxu3 %v5079_v44 }
 0x31e   : > { %v1262_v54 = vpop.f32.mrf.mxu0  ;;  %v1412_v29 = vpop.f32.mrf.mxu1 }
 0x31f   : > { %v1263_v10 = vadd.f32 %v1262_v54, %v5543_v15  ;;  %v1666_v41 = vpop.f32.mrf.mxu2 }
 0x320   : > { %v1832_v5 = vpop.f32.mrf.mxu3 }
 0x321   : > { %v5815_v47 = vadd.f32 %v1408_v11, %v1263_v10  ;;  %v5817_v4 = vadd.f32 %v1832_v5, %v1666_v41  ;;  %1926 = vmatmul.f32.gmra.mxu0 %v8291_v43  ;;  %2122 = vmatmul.f32.gmra.mxu1 %v8292_v23  ;;  %v8293_v10 = vld [vmem:[#allocation26_spill] sm:$0xff]  ;;  %v8294_v41 = vld [vmem:[#allocation29_spill] sm:$0xff] }
 0x323   : > { %2308 = vmatmul.f32.gmra.mxu2 %v5098_v8 }
 0x325   : > { %2454 = vmatmul.f32.gmra.mxu3 %v5098_v8 }
 0x326   : > { %v1266_v61 = vpop.f32.mrf.mxu0  ;;  %v1416_v44 = vpop.f32.mrf.mxu1 }
 0x327   : > { %v1267_v42 = vadd.f32 %v1266_v61, %v5549_v30  ;;  %v1674_v63 = vpop.f32.mrf.mxu2 }
 0x328   : > { %v1836_v15 = vpop.f32.mrf.mxu3 }
 0x329   : > { %v5824_v54 = vadd.f32 %v1412_v29, %v1267_v42  ;;  %v5826_v11 = vadd.f32 %v1836_v15, %v1674_v63  ;;  %1931 = vmatmul.f32.gmra.mxu0 %v8293_v10  ;;  %2128 = vmatmul.f32.gmra.mxu1 %v8294_v41  ;;  %v8295_v42 = vld [vmem:[#allocation28_spill] sm:$0xff]  ;;  %v8296_v63 = vld [vmem:[#allocation31_spill] sm:$0xff] }
 0x32b   : > { %2312 = vmatmul.f32.gmra.mxu2 %v5115_v51 }
 0x32d   : > { %2458 = vmatmul.f32.gmra.mxu3 %v5115_v51 }
 0x32e   : > { %v1270_v5 = vpop.f32.mrf.mxu0  ;;  %v1420_v8 = vpop.f32.mrf.mxu1 }
 0x32f   : > { %v1271_v43 = vadd.f32 %v1270_v5, %v5555_v45  ;;  %v1682_v23 = vpop.f32.mrf.mxu2 }
 0x330   : > { %v1840_v30 = vpop.f32.mrf.mxu3 }
 0x331   : > { %v5833_v61 = vadd.f32 %v1416_v44, %v1271_v43  ;;  %v5835_v29 = vadd.f32 %v1840_v30, %v1682_v23  ;;  %1936 = vmatmul.f32.gmra.mxu0 %v8295_v42  ;;  %2134 = vmatmul.f32.gmra.mxu1 %v8296_v63  ;;  %v8297_v43 = vld [vmem:[#allocation30_spill] sm:$0xff]  ;;  %v8298_v23 = vld [vmem:[#allocation33_spill] sm:$0xff] }
 0x333   : > { %2316 = vmatmul.f32.gmra.mxu2 %v5132_v9 }
 0x335   : > { %2462 = vmatmul.f32.gmra.mxu3 %v5132_v9 }
 0x336   : > { %v1274_v15 = vpop.f32.mrf.mxu0  ;;  %v1424_v51 = vpop.f32.mrf.mxu1 }
 0x337   : > { %v1275_v10 = vadd.f32 %v1274_v15, %v5561_v0  ;;  %v1690_v41 = vpop.f32.mrf.mxu2 }
 0x338   : > { %v1844_v45 = vpop.f32.mrf.mxu3 }
 0x339   : > { %v5842_v5 = vadd.f32 %v1420_v8, %v1275_v10  ;;  %v5844_v44 = vadd.f32 %v1844_v45, %v1690_v41  ;;  %1941 = vmatmul.f32.gmra.mxu0 %v8297_v43  ;;  %2140 = vmatmul.f32.gmra.mxu1 %v8298_v23  ;;  %v8299_v10 = vld [vmem:[#allocation32_spill] sm:$0xff]  ;;  %v8300_v41 = vld [vmem:[#allocation35_spill] sm:$0xff] }
 0x33b   : > { %2320 = vmatmul.f32.gmra.mxu2 %v5149_v3 }
 0x33d   : > { %2466 = vmatmul.f32.gmra.mxu3 %v5149_v3 }
 0x33e   : > { %v1278_v30 = vpop.f32.mrf.mxu0  ;;  %v2051_v9 = vpop.f32.mrf.mxu1 }
 0x33f   : > { %v1279_v42 = vadd.f32 %v1278_v30, %v5567_v52  ;;  %v1698_v63 = vpop.f32.mrf.mxu2 }
 0x340   : > { %v1848_v0 = vpop.f32.mrf.mxu3 }
 0x341   : > { %v5851_v15 = vadd.f32 %v1424_v51, %v1279_v42  ;;  %v5853_v8 = vadd.f32 %v1848_v0, %v1698_v63  ;;  %1946 = vmatmul.f32.gmra.mxu0 %v8299_v10  ;;  %2146 = vmatmul.f32.gmra.mxu1 %v8300_v41  ;;  %v8302_v51 = vld [vmem:[#allocation37_spill] sm:$0xff]  ;;  %v2534_v0 = vmul.f32 0.5, %v5572_v22 }
 0x343   : > { %2324 = vmatmul.f32.gmra.mxu2 %v5166_v2 }
 0x345   : > { %2470 = vmatmul.f32.gmra.mxu3 %v5166_v2 }
 0x346   : > { %v1872_v45 = vpop.f32.mrf.mxu0  ;;  %v2057_v3 = vpop.f32.mrf.mxu1 }
 0x347   : > { %v1873_v43 = vadd.f32 %v1872_v45, %v5574_v24  ;;  %v2261_v23 = vpop.f32.mrf.mxu2  ;;  %v2598_v24 = vld [vmem:[%s7917_s1] sm:$0xff] }
 0x348   : > { %v2407_v52 = vpop.f32.mrf.mxu3  ;;  %v5874_v22 = vadd.f32 %v2598_v24, %v2534_v0  ;;  %v2600_v0 = vld [vmem:[%s7917_s1 + $0x10] sm:$0xff]  ;;  %v2601_v24 = vld [vmem:[%s7917_s1 + $0x18] sm:$0xff] }
 0x349   : > { %v2052_v30 = vadd.f32 %v2051_v9, %v1873_v43  ;;  %1951 = vmatmul.f32.gmra.mxu0 %v8301_v35  ;;  %2152 = vmatmul.f32.gmra.mxu1 %v8302_v51  ;;  %v2599_v35 = vld [vmem:[%s7917_s1 + $0x8] sm:$0xff] }
 0x34a   : > { %8305 = vst [vmem:[#allocation9_spill] sm:$0xff] %v5874_v22 }
 0x34b   : > { %v2262_v42 = vadd.f32 %v2261_v23, %v2052_v30  ;;  %2328 = vmatmul.f32.gmra.mxu2 %v5183_v57 }
 0x34d   : > { %v2408_v63 = vadd.f32 %v2407_v52, %v2262_v42  ;;  %2474 = vmatmul.f32.gmra.mxu3 %v5183_v57  ;;  %v8303_v52 = vld [vmem:[#allocation36_spill] sm:$0xff]  ;;  %v8304_v57 = vld [vmem:[#allocation39_spill] sm:$0xff] }
 0x34e   : > { %v1877_v2 = vpop.f32.mrf.mxu0  ;;  %v2063_v10 = vpop.f32.mrf.mxu1 }
 0x34f   : > { %v2535_v9 = vmul.f32 0.5, %v2408_v63  ;;  %v1878_v41 = vadd.f32 %v1877_v2, %v5583_v58  ;;  %v2265_v45 = vpop.f32.mrf.mxu2  ;;  %v2536_v63 = vmul.f32 0.5, %v5581_v50 }
 0x350   : > { %v2411_v43 = vpop.f32.mrf.mxu3 }
 0x351   : > { %v2058_v23 = vadd.f32 %v2057_v3, %v1878_v41  ;;  %1956 = vmatmul.f32.gmra.mxu0 %v8303_v52  ;;  %2158 = vmatmul.f32.gmra.mxu1 %v8304_v57  ;;  %v5876_v30 = vadd.f32 %v2599_v35, %v2535_v9 }
 0x353   : > { %8306 = vst [vmem:[#allocation8_spill] sm:$0xff] %v5876_v30  ;;  %v2266_v51 = vadd.f32 %v2265_v45, %v2058_v23  ;;  %2332 = vmatmul.f32.gmra.mxu2 %v5202_v38  ;;  %v2726_v42 = vmax.f32 %v5874_v22, %v5876_v30  ;;  %v5892_v23 = vadd.f32 %v2600_v0, %v2536_v63  ;;  %v2602_v63 = vld [vmem:[%s7917_s1 + $0x20] sm:$0xff] }
 0x355   : > { %v2412_v58 = vadd.f32 %v2411_v43, %v2266_v51  ;;  %2478 = vmatmul.f32.gmra.mxu3 %v5202_v38  ;;  %2727 = vmax.xlane.f32.xlu2 %v2726_v42  ;;  %v8307_v43 = vld [vmem:[#allocation38_spill] sm:$0xff]  ;;  %v8308_v38 = vld [vmem:[#allocation41_spill] sm:$0xff]  ;;  %8309 = vst [vmem:[#allocation11_spill] sm:$0xff] %v5892_v23  ;;  %v2538_v42 = vmul.f32 0.5, %v5590_v27 }
 0x356   : > { %v1882_v3 = vpop.f32.mrf.mxu0  ;;  %v2069_v2 = vpop.f32.mrf.mxu1 }
 0x357   : > { %v2537_v35 = vmul.f32 0.5, %v2412_v58  ;;  %v1883_v9 = vadd.f32 %v1882_v3, %v5592_v37  ;;  %v2269_v41 = vpop.f32.mrf.mxu2  ;;  %v2603_v3 = vld [vmem:[%s7917_s1 + $0x28] sm:$0xff] }
 0x358   : > { %v2415_v45 = vpop.f32.mrf.mxu3 }
 0x359   : > { %v2064_v50 = vadd.f32 %v2063_v10, %v1883_v9  ;;  %1961 = vmatmul.f32.gmra.mxu0 %v8307_v43  ;;  %2164 = vmatmul.f32.gmra.mxu1 %v8308_v38  ;;  %v5894_v52 = vadd.f32 %v2601_v24, %v2537_v35 }
 0x35b   : > { %8310 = vst [vmem:[#allocation10_spill] sm:$0xff] %v5894_v52  ;;  %v2270_v57 = vadd.f32 %v2269_v41, %v2064_v50  ;;  %2336 = vmatmul.f32.gmra.mxu2 %v5221_v7  ;;  %v2729_v51 = vmax.f32 %v5892_v23, %v5894_v52  ;;  %v8311_v41 = vld [vmem:[#allocation40_spill] sm:$0xff] }
 0x35d   : > { %v2416_v37 = vadd.f32 %v2415_v45, %v2270_v57  ;;  %2482 = vmatmul.f32.gmra.mxu3 %v5221_v7  ;;  %2730 = vmax.xlane.f32.xlu2 %v2729_v51  ;;  %v8312_v7 = vld [vmem:[#allocation43_spill] sm:$0xff]  ;;  %v5910_v45 = vadd.f32 %v2602_v63, %v2538_v42  ;;  %v8315_v63 = vld [vmem:[#allocation97_spill] sm:$0xff] }
 0x35e   : > { %v1887_v10 = vpop.f32.mrf.mxu0  ;;  %v2075_v58 = vpop.f32.mrf.mxu1  ;;  %v2604_v42 = vld [vmem:[%s7917_s1 + $0x30] sm:$0xff] }
 0x35f   : > { %v2539_v0 = vmul.f32 0.5, %v2416_v37  ;;  %v1888_v24 = vadd.f32 %v1887_v10, %v5601_v13  ;;  %v2273_v35 = vpop.f32.mrf.mxu2  ;;  %8313 = vst [vmem:[#allocation13_spill] sm:$0xff] %v5910_v45  ;;  %v2540_v13 = vmul.f32 0.5, %v5599_v14  ;;  %v2605_v37 = vld [vmem:[%s7917_s1 + $0x38] sm:$0xff] }
 0x360   : > { %v2419_v9 = vpop.f32.mrf.mxu3 }
 0x361   : > { %v2070_v27 = vadd.f32 %v2069_v2, %v1888_v24  ;;  %1966 = vmatmul.f32.gmra.mxu0 %v8311_v41  ;;  %2170 = vmatmul.f32.gmra.mxu1 %v8312_v7  ;;  %v5912_v50 = vadd.f32 %v2603_v3, %v2539_v0  ;;  %v5928_v14 = vadd.f32 %v2604_v42, %v2540_v13  ;;  %v8320_v7 = vld [vmem:[#allocation44_spill] sm:$0xff]  ;;  %v2606_v13 = vld [vmem:[%s7917_s1 + $0x40] sm:$0xff]  ;;  %v2607_v42 = vld [vmem:[%s7917_s1 + $0x48] sm:$0xff] }
 0x363   : > { %8314 = vst [vmem:[#allocation12_spill] sm:$0xff] %v5912_v50  ;;  %v2274_v43 = vadd.f32 %v2273_v35, %v2070_v27  ;;  %2340 = vmatmul.f32.gmra.mxu2 %v5240_v55  ;;  %v2732_v38 = vmax.f32 %v5910_v45, %v5912_v50 }
 0x364   : > { %8318 = vst [vmem:[#allocation15_spill] sm:$0xff] %v5928_v14 }
 0x365   : > { %v2420_v57 = vadd.f32 %v2419_v9, %v2274_v43  ;;  %2486 = vmatmul.f32.gmra.mxu3 %v5240_v55  ;;  %2733 = vmax.xlane.f32.xlu2 %v2732_v38  ;;  %v8316_v55 = vld [vmem:[#allocation42_spill] sm:$0xff]  ;;  %v8321_v38 = vld [vmem:[#allocation96_spill] sm:$0xff] }
 0x366   : > { %v1892_v2 = vpop.f32.mrf.mxu0  ;;  %v2081_v51 = vpop.f32.mrf.mxu1  ;;  %v8317_v9 = vld [vmem:[#allocation46_spill] sm:$0xff] }
 0x367   : > { %v2541_v10 = vmul.f32 0.5, %v2420_v57  ;;  %v1893_v3 = vadd.f32 %v1892_v2, %v8315_v63  ;;  %v2277_v0 = vpop.f32.mrf.mxu2  ;;  %v2542_v57 = vmul.f32 0.5, %v8321_v38  ;;  %v8325_v38 = vld [vmem:[#allocation47_spill] sm:$0xff] }
 0x368   : > { %v2423_v24 = vpop.f32.mrf.mxu3 }
 0x369   : > { %v2076_v35 = vadd.f32 %v2075_v58, %v1893_v3  ;;  %1971 = vmatmul.f32.gmra.mxu0 %v8316_v55  ;;  %2176 = vmatmul.f32.gmra.mxu1 %v8317_v9  ;;  %v5930_v27 = vadd.f32 %v2605_v37, %v2541_v10  ;;  %v8322_v10 = vld [vmem:[#allocation98_spill] sm:$0xff] }
 0x36a   : > { %v8324_v9 = vld [vmem:[#allocation50_spill] sm:$0xff] }
 0x36b   : > { %8319 = vst [vmem:[#allocation14_spill] sm:$0xff] %v5930_v27  ;;  %v2278_v41 = vadd.f32 %v2277_v0, %v2076_v35  ;;  %2344 = vmatmul.f32.gmra.mxu2 %v8320_v7  ;;  %v2735_v43 = vmax.f32 %v5928_v14, %v5930_v27 }
 0x36d   : > { %v2424_v2 = vadd.f32 %v2423_v24, %v2278_v41  ;;  %2490 = vmatmul.f32.gmra.mxu3 %v8320_v7  ;;  %2736 = vmax.xlane.f32.xlu1 %v2735_v43  ;;  %v8323_v24 = vld [vmem:[#allocation45_spill] sm:$0xff]  ;;  %v5946_v41 = vadd.f32 %v2606_v13, %v2542_v57  ;;  %v2608_v57 = vld [vmem:[%s7917_s1 + $0x50] sm:$0xff]  ;;  %v2609_v13 = vld [vmem:[%s7917_s1 + $0x58] sm:$0xff] }
 0x36e   : > { %v1897_v58 = vpop.f32.mrf.mxu0  ;;  %v2087_v63 = vpop.f32.mrf.mxu1 }
 0x36f   : > { %v2543_v37 = vmul.f32 0.5, %v2424_v2  ;;  %v1898_v3 = vadd.f32 %v1897_v58, %v8322_v10  ;;  %v2281_v0 = vpop.f32.mrf.mxu2  ;;  %v8326_v2 = vld [vmem:[#allocation49_spill] sm:$0xff] }
 0x370   : > { %v2427_v35 = vpop.f32.mrf.mxu3  ;;  %v2544_v17 = vmul.f32 0.5, %v8326_v2  ;;  %v8330_v2 = vld [vmem:[#allocation51_spill] sm:$0xff] }
 0x371   : > { %v2082_v55 = vadd.f32 %v2081_v51, %v1898_v3  ;;  %1976 = vmatmul.f32.gmra.mxu0 %v8323_v24  ;;  %2182 = vmatmul.f32.gmra.mxu1 %v8324_v9  ;;  %v5948_v7 = vadd.f32 %v2607_v42, %v2543_v37  ;;  %v8327_v37 = vld [vmem:[#allocation54_spill] sm:$0xff]  ;;  %v8329_v9 = vld [vmem:[#allocation55_spill] sm:$0xff] }
 0x373   : > { %v2282_v43 = vadd.f32 %v2281_v0, %v2082_v55  ;;  %2348 = vmatmul.f32.gmra.mxu2 %v8325_v38  ;;  %v2738_v28 = vmax.f32 %v5946_v41, %v5948_v7 }
 0x375   : > { %v2428_v58 = vadd.f32 %v2427_v35, %v2282_v43  ;;  %2494 = vmatmul.f32.gmra.mxu3 %v8325_v38  ;;  %2739 = vmax.xlane.f32.xlu2 %v2738_v28  ;;  %v8328_v35 = vld [vmem:[#allocation48_spill] sm:$0xff]  ;;  %v5964_v28 = vadd.f32 %v2608_v57, %v2544_v17  ;;  %v2610_v17 = vld [vmem:[%s7917_s1 + $0x60] sm:$0xff]  ;;  %v2611_v57 = vld [vmem:[%s7917_s1 + $0x68] sm:$0xff] }
 0x376   : > { %v1902_v51 = vpop.f32.mrf.mxu0  ;;  %v2093_v10 = vpop.f32.mrf.mxu1 }
 0x377   : > { %v2545_v42 = vmul.f32 0.5, %v2428_v58  ;;  %v1903_v3 = vadd.f32 %v1902_v51, %v8327_v37  ;;  %v2285_v0 = vpop.f32.mrf.mxu2  ;;  %v8331_v58 = vld [vmem:[#allocation52_spill] sm:$0xff] }
 0x378   : > { %v2431_v55 = vpop.f32.mrf.mxu3  ;;  %v2546_v36 = vmul.f32 0.5, %v8331_v58  ;;  %v8335_v58 = vld [vmem:[#allocation56_spill] sm:$0xff] }
 0x379   : > { %v2088_v24 = vadd.f32 %v2087_v63, %v1903_v3  ;;  %1981 = vmatmul.f32.gmra.mxu0 %v8328_v35  ;;  %2188 = vmatmul.f32.gmra.mxu1 %v8329_v9  ;;  %v5966_v43 = vadd.f32 %v2609_v13, %v2545_v42  ;;  %v8332_v42 = vld [vmem:[#allocation59_spill] sm:$0xff]  ;;  %v8334_v9 = vld [vmem:[#allocation60_spill] sm:$0xff] }
 0x37b   : > { %v2286_v38 = vadd.f32 %v2285_v0, %v2088_v24  ;;  %2352 = vmatmul.f32.gmra.mxu2 %v8330_v2  ;;  %v2741_v20 = vmax.f32 %v5964_v28, %v5966_v43 }
 0x37d   : > { %v2432_v51 = vadd.f32 %v2431_v55, %v2286_v38  ;;  %2498 = vmatmul.f32.gmra.mxu3 %v8330_v2  ;;  %2742 = vmax.xlane.f32.xlu1 %v2741_v20  ;;  %v8333_v55 = vld [vmem:[#allocation53_spill] sm:$0xff]  ;;  %v5982_v20 = vadd.f32 %v2610_v17, %v2546_v36  ;;  %v2612_v36 = vld [vmem:[%s7917_s1 + $0x70] sm:$0xff]  ;;  %v2613_v17 = vld [vmem:[%s7917_s1 + $0x78] sm:$0xff] }
 0x37e   : > { %v1907_v63 = vpop.f32.mrf.mxu0  ;;  %v2099_v37 = vpop.f32.mrf.mxu1 }
 0x37f   : > { %v2547_v13 = vmul.f32 0.5, %v2432_v51  ;;  %v1908_v3 = vadd.f32 %v1907_v63, %v8332_v42  ;;  %v2289_v0 = vpop.f32.mrf.mxu2  ;;  %v8336_v51 = vld [vmem:[#allocation57_spill] sm:$0xff] }
 0x380   : > { %v2435_v24 = vpop.f32.mrf.mxu3  ;;  %v2548_v30 = vmul.f32 0.5, %v8336_v51  ;;  %v8340_v51 = vld [vmem:[#allocation61_spill] sm:$0xff] }
 0x381   : > { %v2094_v35 = vadd.f32 %v2093_v10, %v1908_v3  ;;  %1986 = vmatmul.f32.gmra.mxu0 %v8333_v55  ;;  %2194 = vmatmul.f32.gmra.mxu1 %v8334_v9  ;;  %v5984_v38 = vadd.f32 %v2611_v57, %v2547_v13  ;;  %v8337_v13 = vld [vmem:[#allocation64_spill] sm:$0xff]  ;;  %v8339_v9 = vld [vmem:[#allocation65_spill] sm:$0xff] }
 0x383   : > { %v2290_v2 = vadd.f32 %v2289_v0, %v2094_v35  ;;  %2356 = vmatmul.f32.gmra.mxu2 %v8335_v58  ;;  %v2744_v21 = vmax.f32 %v5982_v20, %v5984_v38 }
 0x385   : > { %v2436_v63 = vadd.f32 %v2435_v24, %v2290_v2  ;;  %2502 = vmatmul.f32.gmra.mxu3 %v8335_v58  ;;  %2745 = vmax.xlane.f32.xlu2 %v2744_v21  ;;  %v8338_v24 = vld [vmem:[#allocation58_spill] sm:$0xff]  ;;  %v6000_v21 = vadd.f32 %v2612_v36, %v2548_v30  ;;  %v2614_v30 = vld [vmem:[%s7917_s1 + $0x80] sm:$0xff] }
 0x386   : > { %v1912_v10 = vpop.f32.mrf.mxu0  ;;  %v2105_v42 = vpop.f32.mrf.mxu1  ;;  %v2615_v36 = vld [vmem:[%s7917_s1 + $0x88] sm:$0xff] }
 0x387   : > { %v2549_v57 = vmul.f32 0.5, %v2436_v63  ;;  %v1913_v3 = vadd.f32 %v1912_v10, %v8337_v13  ;;  %v2293_v0 = vpop.f32.mrf.mxu2  ;;  %v8341_v63 = vld [vmem:[#allocation62_spill] sm:$0xff] }
 0x388   : > { %v2439_v35 = vpop.f32.mrf.mxu3  ;;  %v2550_v34 = vmul.f32 0.5, %v8341_v63  ;;  %v8345_v63 = vld [vmem:[#allocation66_spill] sm:$0xff] }
 0x389   : > { %v2100_v55 = vadd.f32 %v2099_v37, %v1913_v3  ;;  %1991 = vmatmul.f32.gmra.mxu0 %v8338_v24  ;;  %2200 = vmatmul.f32.gmra.mxu1 %v8339_v9  ;;  %v6002_v2 = vadd.f32 %v2613_v17, %v2549_v57  ;;  %v8342_v57 = vld [vmem:[#allocation69_spill] sm:$0xff]  ;;  %v8344_v9 = vld [vmem:[#allocation70_spill] sm:$0xff] }
 0x38b   : > { %v2294_v58 = vadd.f32 %v2293_v0, %v2100_v55  ;;  %2360 = vmatmul.f32.gmra.mxu2 %v8340_v51  ;;  %v2747_v22 = vmax.f32 %v6000_v21, %v6002_v2 }
 0x38d   : > { %v2440_v10 = vadd.f32 %v2439_v35, %v2294_v58  ;;  %2506 = vmatmul.f32.gmra.mxu3 %v8340_v51  ;;  %2748 = vmax.xlane.f32.xlu1 %v2747_v22  ;;  %v8343_v35 = vld [vmem:[#allocation63_spill] sm:$0xff]  ;;  %v6018_v22 = vadd.f32 %v2614_v30, %v2550_v34  ;;  %v2617_v30 = vld [vmem:[%s7917_s1 + $0x98] sm:$0xff] }
 0x38e   : > { %v1917_v37 = vpop.f32.mrf.mxu0  ;;  %v2111_v13 = vpop.f32.mrf.mxu1  ;;  %v2616_v34 = vld [vmem:[%s7917_s1 + $0x90] sm:$0xff] }
 0x38f   : > { %v2551_v17 = vmul.f32 0.5, %v2440_v10  ;;  %v1918_v3 = vadd.f32 %v1917_v37, %v8342_v57  ;;  %v2297_v0 = vpop.f32.mrf.mxu2  ;;  %v8346_v10 = vld [vmem:[#allocation67_spill] sm:$0xff] }
 0x390   : > { %v2443_v55 = vpop.f32.mrf.mxu3  ;;  %v2552_v23 = vmul.f32 0.5, %v8346_v10  ;;  %v8350_v10 = vld [vmem:[#allocation71_spill] sm:$0xff] }
 0x391   : > { %v2106_v24 = vadd.f32 %v2105_v42, %v1918_v3  ;;  %1996 = vmatmul.f32.gmra.mxu0 %v8343_v35  ;;  %2206 = vmatmul.f32.gmra.mxu1 %v8344_v9  ;;  %v6020_v58 = vadd.f32 %v2615_v36, %v2551_v17  ;;  %v8347_v17 = vld [vmem:[#allocation74_spill] sm:$0xff]  ;;  %v8349_v9 = vld [vmem:[#allocation75_spill] sm:$0xff] }
 0x393   : > { %v2298_v51 = vadd.f32 %v2297_v0, %v2106_v24  ;;  %2364 = vmatmul.f32.gmra.mxu2 %v8345_v63  ;;  %v2750_v52 = vmax.f32 %v6018_v22, %v6020_v58 }
 0x395   : > { %v2444_v37 = vadd.f32 %v2443_v55, %v2298_v51  ;;  %2510 = vmatmul.f32.gmra.mxu3 %v8345_v63  ;;  %2751 = vmax.xlane.f32.xlu2 %v2750_v52  ;;  %v8348_v55 = vld [vmem:[#allocation68_spill] sm:$0xff]  ;;  %v6036_v52 = vadd.f32 %v2616_v34, %v2552_v23  ;;  %v2618_v23 = vld [vmem:[%s7917_s1 + $0xa0] sm:$0xff]  ;;  %v2619_v34 = vld [vmem:[%s7917_s1 + $0xa8] sm:$0xff] }
 0x396   : > { %v1922_v42 = vpop.f32.mrf.mxu0  ;;  %v2117_v57 = vpop.f32.mrf.mxu1 }
 0x397   : > { %v2553_v36 = vmul.f32 0.5, %v2444_v37  ;;  %v1923_v3 = vadd.f32 %v1922_v42, %v8347_v17  ;;  %v2301_v0 = vpop.f32.mrf.mxu2  ;;  %v8351_v37 = vld [vmem:[#allocation72_spill] sm:$0xff] }
 0x398   : > { %v2447_v24 = vpop.f32.mrf.mxu3  ;;  %v2554_v50 = vmul.f32 0.5, %v8351_v37 }
 0x399   : > { %v2112_v35 = vadd.f32 %v2111_v13, %v1923_v3  ;;  %2001 = vmatmul.f32.gmra.mxu0 %v8348_v55  ;;  %2212 = vmatmul.f32.gmra.mxu1 %v8349_v9  ;;  %v6038_v51 = vadd.f32 %v2617_v30, %v2553_v36  ;;  %v8352_v36 = vld [vmem:[#allocation79_spill] sm:$0xff]  ;;  %v8354_v9 = vld [vmem:[#allocation80_spill] sm:$0xff] }
 0x39b   : > { %v2302_v63 = vadd.f32 %v2301_v0, %v2112_v35  ;;  %2368 = vmatmul.f32.gmra.mxu2 %v8350_v10  ;;  %v2753_v19 = vmax.f32 %v6036_v52, %v6038_v51 }
 0x39d   : > { %v2448_v42 = vadd.f32 %v2447_v24, %v2302_v63  ;;  %2514 = vmatmul.f32.gmra.mxu3 %v8350_v10  ;;  %2754 = vmax.xlane.f32.xlu1 %v2753_v19  ;;  %v8353_v24 = vld [vmem:[#allocation73_spill] sm:$0xff]  ;;  %v6054_v19 = vadd.f32 %v2618_v23, %v2554_v50  ;;  %v2620_v50 = vld [vmem:[%s7917_s1 + $0xb0] sm:$0xff]  ;;  %v2621_v23 = vld [vmem:[%s7917_s1 + $0xb8] sm:$0xff] }
 0x39e   : > { %v1927_v13 = vpop.f32.mrf.mxu0  ;;  %v2123_v17 = vpop.f32.mrf.mxu1 }
 0x39f   : > { %v2555_v30 = vmul.f32 0.5, %v2448_v42  ;;  %v1928_v3 = vadd.f32 %v1927_v13, %v8352_v36  ;;  %v2305_v0 = vpop.f32.mrf.mxu2  ;;  %v8355_v42 = vld [vmem:[#allocation77_spill] sm:$0xff] }
 0x3a0   : > { %v2451_v35 = vpop.f32.mrf.mxu3  ;;  %v2556_v45 = vmul.f32 0.5, %v8355_v42 }
 0x3a1   : > { %v2118_v55 = vadd.f32 %v2117_v57, %v1928_v3  ;;  %2006 = vmatmul.f32.gmra.mxu0 %v8353_v24  ;;  %2218 = vmatmul.f32.gmra.mxu1 %v8354_v9  ;;  %v6056_v63 = vadd.f32 %v2619_v34, %v2555_v30  ;;  %v8356_v30 = vld [vmem:[#allocation82_spill] sm:$0xff] }
 0x3a2   : > { %v6072_v9 = vadd.f32 %v2620_v50, %v2556_v45  ;;  %v2622_v45 = vld [vmem:[%s7917_s1 + $0xc0] sm:$0xff]  ;;  %v2623_v50 = vld [vmem:[%s7917_s1 + $0xc8] sm:$0xff] }
 0x3a3   : > { %v2306_v10 = vadd.f32 %v2305_v0, %v2118_v55  ;;  %2372 = vmatmul.f32.gmra.mxu2 %v8242_v59  ;;  %v2756_v37 = vmax.f32 %v6054_v19, %v6056_v63 }
 0x3a5   : > { %v2452_v13 = vadd.f32 %v2451_v35, %v2306_v10  ;;  %2518 = vmatmul.f32.gmra.mxu3 %v8242_v59  ;;  %2757 = vmax.xlane.f32.xlu2 %v2756_v37  ;;  %v8357_v35 = vld [vmem:[#allocation78_spill] sm:$0xff]  ;;  %v8358_v59 = vld [vmem:[#allocation85_spill] sm:$0xff] }
 0x3a6   : > { %v1932_v57 = vpop.f32.mrf.mxu0  ;;  %v2129_v36 = vpop.f32.mrf.mxu1 }
 0x3a7   : > { %v2557_v34 = vmul.f32 0.5, %v2452_v13  ;;  %v1933_v3 = vadd.f32 %v1932_v57, %v8356_v30  ;;  %v2309_v0 = vpop.f32.mrf.mxu2  ;;  %v8359_v13 = vld [vmem:[#allocation76_spill] sm:$0xff] }
 0x3a8   : > { %v2455_v55 = vpop.f32.mrf.mxu3  ;;  %v2558_v26 = vmul.f32 0.5, %v8359_v13 }
 0x3a9   : > { %v2124_v24 = vadd.f32 %v2123_v17, %v1933_v3  ;;  %2011 = vmatmul.f32.gmra.mxu0 %v8357_v35  ;;  %2224 = vmatmul.f32.gmra.mxu1 %v8358_v59  ;;  %v6074_v10 = vadd.f32 %v2621_v23, %v2557_v34  ;;  %v8360_v34 = vld [vmem:[#allocation81_spill] sm:$0xff] }
 0x3aa   : > { %v6090_v59 = vadd.f32 %v2622_v45, %v2558_v26  ;;  %v2624_v26 = vld [vmem:[%s7917_s1 + $0xd0] sm:$0xff]  ;;  %v2625_v45 = vld [vmem:[%s7917_s1 + $0xd8] sm:$0xff] }
 0x3ab   : > { %v2310_v37 = vadd.f32 %v2309_v0, %v2124_v24  ;;  %2376 = vmatmul.f32.gmra.mxu2 %v8247_v49  ;;  %v2759_v42 = vmax.f32 %v6072_v9, %v6074_v10 }
 0x3ad   : > { %v2456_v57 = vadd.f32 %v2455_v55, %v2310_v37  ;;  %2522 = vmatmul.f32.gmra.mxu3 %v8247_v49  ;;  %2760 = vmax.xlane.f32.xlu1 %v2759_v42  ;;  %v8361_v55 = vld [vmem:[#allocation83_spill] sm:$0xff]  ;;  %v8362_v49 = vld [vmem:[#allocation90_spill] sm:$0xff] }
 0x3ae   : > { %v1937_v17 = vpop.f32.mrf.mxu0  ;;  %v2135_v30 = vpop.f32.mrf.mxu1 }
 0x3af   : > { %v2559_v23 = vmul.f32 0.5, %v2456_v57  ;;  %v1938_v3 = vadd.f32 %v1937_v17, %v8360_v34  ;;  %v2313_v0 = vpop.f32.mrf.mxu2  ;;  %v8363_v57 = vld [vmem:[#allocation84_spill] sm:$0xff] }
 0x3b0   : > { %v2459_v24 = vpop.f32.mrf.mxu3  ;;  %v2560_v33 = vmul.f32 0.5, %v8363_v57  ;;  %v8366_v57 = vld [vmem:[#allocation87_spill] sm:$0xff] }
 0x3b1   : > { %v2130_v35 = vadd.f32 %v2129_v36, %v1938_v3  ;;  %2016 = vmatmul.f32.gmra.mxu0 %v8361_v55  ;;  %2230 = vmatmul.f32.gmra.mxu1 %v8362_v49  ;;  %v6092_v37 = vadd.f32 %v2623_v50, %v2559_v23 }
 0x3b2   : > { %v6108_v55 = vadd.f32 %v2624_v26, %v2560_v33  ;;  %v2626_v26 = vld [vmem:[%s7917_s1 + $0xe0] sm:$0xff] }
 0x3b3   : > { %v2314_v42 = vadd.f32 %v2313_v0, %v2130_v35  ;;  %2380 = vmatmul.f32.gmra.mxu2 %v8252_v56  ;;  %v2762_v13 = vmax.f32 %v6090_v59, %v6092_v37 }
 0x3b5   : > { %v2460_v17 = vadd.f32 %v2459_v24, %v2314_v42  ;;  %2526 = vmatmul.f32.gmra.mxu3 %v8252_v56  ;;  %2763 = vmax.xlane.f32.xlu2 %v2762_v13  ;;  %v8364_v24 = vld [vmem:[#allocation88_spill] sm:$0xff]  ;;  %v8365_v56 = vld [vmem:[#allocation94_spill] sm:$0xff] }
 0x3b6   : > { %v1942_v36 = vpop.f32.mrf.mxu0  ;;  %v2141_v34 = vpop.f32.mrf.mxu1 }
 0x3b7   : > { %v2561_v50 = vmul.f32 0.5, %v2460_v17  ;;  %v1943_v23 = vadd.f32 %v1942_v36, %v5700_v31  ;;  %v2317_v3 = vpop.f32.mrf.mxu2  ;;  %v2562_v17 = vmul.f32 0.5, %v8366_v57 }
 0x3b8   : > { %v2463_v0 = vpop.f32.mrf.mxu3 }
 0x3b9   : > { %v2136_v35 = vadd.f32 %v2135_v30, %v1943_v23  ;;  %2021 = vmatmul.f32.gmra.mxu0 %v8364_v24  ;;  %2236 = vmatmul.f32.gmra.mxu1 %v8365_v56  ;;  %v6110_v49 = vadd.f32 %v2625_v45, %v2561_v50  ;;  %v2627_v30 = vld [vmem:[%s7917_s1 + $0xe8] sm:$0xff]  ;;  %v6127_v24 = vadd.f32 %v2626_v26, %v2562_v17 }
 0x3bb   : > { %v2318_v42 = vadd.f32 %v2317_v3, %v2136_v35  ;;  %2384 = vmatmul.f32.gmra.mxu2 %v8255_v16  ;;  %v2765_v13 = vmax.f32 %v6108_v55, %v6110_v49 }
 0x3bd   : > { %v2464_v31 = vadd.f32 %v2463_v0, %v2318_v42  ;;  %2530 = vmatmul.f32.gmra.mxu3 %v8255_v16  ;;  %2766 = vmax.xlane.f32.xlu2 %v2765_v13  ;;  %v8367_v16 = vld [vmem:[#allocation92_spill] sm:$0xff]  ;;  %v8368_v13 = vld [vmem:[#allocation89_spill] sm:$0xff] }
 0x3be   : > { %v1947_v33 = vpop.f32.mrf.mxu0  ;;  %v2147_v36 = vpop.f32.mrf.mxu1  ;;  %v2564_v57 = vmul.f32 0.5, %v8368_v13 }
 0x3bf   : > { %v2563_v45 = vmul.f32 0.5, %v2464_v31  ;;  %v1948_v50 = vadd.f32 %v1947_v33, %v5709_v62  ;;  %v2321_v23 = vpop.f32.mrf.mxu2  ;;  %v2629_v62 = vld [vmem:[%s7917_s1 + $0xf8] sm:$0xff] }
 0x3c0   : > { %v2467_v3 = vpop.f32.mrf.mxu3 }
 0x3c1   : > { %v6124_v35 = vadd.f32 %v2627_v30, %v2563_v45  ;;  %v2142_v0 = vadd.f32 %v2141_v34, %v1948_v50  ;;  %2026 = vmatmul.f32.gmra.mxu0 %v8367_v16  ;;  %v2628_v34 = vld [vmem:[%s7917_s1 + $0xf0] sm:$0xff] }
 0x3c3   : > { %v2322_v56 = vadd.f32 %v2321_v23, %v2142_v0  ;;  %v2768_v42 = vmax.f32 %v6127_v24, %v6124_v35 }
 0x3c5   : > { %v2468_v27 = vadd.f32 %v2467_v3, %v2322_v56  ;;  %2769 = vmax.xlane.f32.xlu1 %v2768_v42  ;;  %v6141_v3 = vadd.f32 %v2628_v34, %v2564_v57 }
 0x3c6   : > { %v1952_v31 = vpop.f32.mrf.mxu0  ;;  %v2153_v30 = vpop.f32.mrf.mxu1 }
 0x3c7   : > { %v2565_v17 = vmul.f32 0.5, %v2468_v27  ;;  %v1953_v33 = vadd.f32 %v1952_v31, %v5718_v48  ;;  %v2325_v26 = vpop.f32.mrf.mxu2 }
 0x3c8   : > { %v2471_v45 = vpop.f32.mrf.mxu3  ;;  %v6143_v16 = vpop.xlane.xlu2 %2727 }
 0x3c9   : > { %v6139_v50 = vadd.f32 %v2629_v62, %v2565_v17  ;;  %v2148_v23 = vadd.f32 %v2147_v36, %v1953_v33  ;;  %8369 = vst [vmem:[#allocation17_spill] sm:$0xff] %v6143_v16 }
 0x3cb   : > { %v2326_v0 = vadd.f32 %v2325_v26, %v2148_v23  ;;  %v2771_v56 = vmax.f32 %v6141_v3, %v6139_v50 }
 0x3cd   : > { %v6147_v42 = vadd.f32 %v2471_v45, %v2326_v0  ;;  %2772 = vmax.xlane.f32.xlu1 %v2771_v56 }
 0x3ce   : > { %v1957_v13 = vpop.f32.mrf.mxu0  ;;  %v2159_v27 = vpop.f32.mrf.mxu1 }
 0x3cf   : > { %8370 = vst [vmem:[#allocation16_spill] sm:$0xff] %v6147_v42  ;;  %v1958_v48 = vadd.f32 %v1957_v13, %v5727_v1  ;;  %v2329_v31 = vpop.f32.mrf.mxu2 }
 0x3d0   : > { %v2475_v14 = vpop.f32.mrf.mxu3  ;;  %v6152_v57 = vpop.xlane.xlu2 %2730 }
 0x3d1   : > { %v2154_v62 = vadd.f32 %v2153_v30, %v1958_v48  ;;  %8372 = vst [vmem:[#allocation18_spill] sm:$0xff] %v6152_v57 }
 0x3d3   : > { %v2330_v17 = vadd.f32 %v2329_v31, %v2154_v62 }
 0x3d5   : > { %v6150_v36 = vadd.f32 %v2475_v14, %v2330_v17 }
 0x3d6   : > { %v1962_v34 = vpop.f32.mrf.mxu0  ;;  %v2165_v33 = vpop.f32.mrf.mxu1 }
 0x3d7   : > { %8371 = vst [vmem:[#allocation19_spill] sm:$0xff] %v6150_v36  ;;  %v1963_v26 = vadd.f32 %v1962_v34, %v5736_v6  ;;  %v2333_v23 = vpop.f32.mrf.mxu2 }
 0x3d8   : > { %v2479_v45 = vpop.f32.mrf.mxu3  ;;  %v6158_v48 = vpop.xlane.xlu2 %2733 }
 0x3d9   : > { %v2160_v0 = vadd.f32 %v2159_v27, %v1963_v26 }
 0x3db   : > { %v2334_v56 = vadd.f32 %v2333_v23, %v2160_v0 }
 0x3dd   : > { %v6155_v42 = vadd.f32 %v2479_v45, %v2334_v56 }
 0x3de   : > { %v1967_v16 = vpop.f32.mrf.mxu0  ;;  %v2171_v1 = vpop.f32.mrf.mxu1 }
 0x3df   : > { %8373 = vst [vmem:[#allocation21_spill] sm:$0xff] %v6155_v42  ;;  %v1968_v13 = vadd.f32 %v1967_v16, %v5745_v12  ;;  %v2337_v30 = vpop.f32.mrf.mxu2 }
 0x3e0   : > { %v2483_v14 = vpop.f32.mrf.mxu3 }
 0x3e1   : > { %v2166_v31 = vadd.f32 %v2165_v33, %v1968_v13 }
 0x3e3   : > { %v2338_v62 = vadd.f32 %v2337_v30, %v2166_v31 }
 0x3e5   : > { %v6160_v17 = vadd.f32 %v2483_v14, %v2338_v62 }
 0x3e6   : > { %v1972_v36 = vpop.f32.mrf.mxu0  ;;  %v2177_v6 = vpop.f32.mrf.mxu1 }
 0x3e7   : > { %v1973_v34 = vadd.f32 %v1972_v36, %v5754_v18  ;;  %v2341_v27 = vpop.f32.mrf.mxu2  ;;  %v6168_v36 = vpop.xlane.xlu1 %2736 }
 0x3e8   : > { %v2487_v26 = vpop.f32.mrf.mxu3  ;;  %v2740_v23 = vpop.xlane.xlu2 %2739 }
 0x3e9   : > { %v2172_v45 = vadd.f32 %v2171_v1, %v1973_v34  ;;  %v2830_v0 = vsub.f32 %v5946_v41, %v2740_v23  ;;  %v2831_v12 = vsub.f32 %v5948_v7, %v2740_v23 }
 0x3eb   : > { %v2342_v16 = vadd.f32 %v2341_v27, %v2172_v45  ;;  %v2902_v56 = vmul.f32 1.442695, %v2830_v0  ;;  %v2904_v42 = vmul.f32 1.442695, %v2831_v12 }
 0x3ed   : > { %v6165_v57 = vadd.f32 %v2487_v26, %v2342_v16  ;;  %4658 = vpow2.f32 %v2902_v56 }
 0x3ee   : > { %4660 = vpow2.f32 %v2904_v42  ;;  %v1977_v33 = vpop.f32.mrf.mxu0  ;;  %v2183_v13 = vpop.f32.mrf.mxu1 }
 0x3ef   : > { %v1978_v30 = vadd.f32 %v1977_v33, %v5763_v25  ;;  %v2345_v18 = vpop.f32.mrf.mxu2 }
 0x3f0   : > { %v2491_v14 = vpop.f32.mrf.mxu3  ;;  %v6179_v23 = vpop.xlane.xlu1 %2742 }
 0x3f1   : > { %v2178_v1 = vadd.f32 %v2177_v6, %v1978_v30 }
 0x3f3   : > { %v6170_v31 = vpop.eup %4658  ;;  %v2346_v41 = vadd.f32 %v2345_v18, %v2178_v1 }
 0x3f4   : > { %8374 = vst [vmem:[#allocation20_spill] sm:$0xff] %v6170_v31  ;;  %v6172_v7 = vpop.eup %4660 }
 0x3f5   : > { %8375 = vst [vmem:[#allocation23_spill] sm:$0xff] %v6172_v7  ;;  %v6174_v62 = vadd.f32 %v2491_v14, %v2346_v41  ;;  %v3026_v34 = vadd.f32 %v6172_v7, %v6170_v31 }
 0x3f6   : > { %v1982_v42 = vpop.f32.mrf.mxu0  ;;  %v2189_v27 = vpop.f32.mrf.mxu1 }
 0x3f7   : > { %v1983_v26 = vadd.f32 %v1982_v42, %v5772_v32  ;;  %v2349_v25 = vpop.f32.mrf.mxu2  ;;  %3027 = vadd.xlane.f32.xlu0 %v3026_v34 }
 0x3f8   : > { %v2495_v45 = vpop.f32.mrf.mxu3  ;;  %v6183_v33 = vpop.xlane.xlu2 %2745 }
 0x3f9   : > { %v2184_v6 = vadd.f32 %v2183_v13, %v1983_v26 }
 0x3fb   : > { %v2350_v0 = vadd.f32 %v2349_v25, %v2184_v6 }
 0x3fd   : > { %v6181_v12 = vadd.f32 %v2495_v45, %v2350_v0 }
 0x3fe   : > { %v1987_v16 = vpop.f32.mrf.mxu0  ;;  %v2195_v56 = vpop.f32.mrf.mxu1 }
 0x3ff   : > { %v1988_v30 = vadd.f32 %v1987_v16, %v5781_v39  ;;  %v2353_v18 = vpop.f32.mrf.mxu2 }
 0x400   : > { %v2499_v14 = vpop.f32.mrf.mxu3  ;;  %v2749_v1 = vpop.xlane.xlu1 %2748 }
 0x401   : > { %v2190_v41 = vadd.f32 %v2189_v27, %v1988_v30  ;;  %v2836_v32 = vsub.f32 %v6000_v21, %v2749_v1  ;;  %v2837_v34 = vsub.f32 %v6002_v2, %v2749_v1 }
 0x403   : > { %v2354_v42 = vadd.f32 %v2353_v18, %v2190_v41  ;;  %v2914_v7 = vmul.f32 1.442695, %v2836_v32  ;;  %v2916_v13 = vmul.f32 1.442695, %v2837_v34 }
 0x405   : > { %v6188_v26 = vadd.f32 %v2499_v14, %v2354_v42  ;;  %4662 = vpow2.f32 %v2914_v7 }
 0x406   : > { %4664 = vpow2.f32 %v2916_v13  ;;  %v1992_v25 = vpop.f32.mrf.mxu0  ;;  %v2201_v45 = vpop.f32.mrf.mxu1 }
 0x407   : > { %v1993_v6 = vadd.f32 %v1992_v25, %v5790_v46  ;;  %v2357_v39 = vpop.f32.mrf.mxu2 }
 0x408   : > { %v2503_v0 = vpop.f32.mrf.mxu3  ;;  %v2752_v16 = vpop.xlane.xlu2 %2751 }
 0x409   : > { %v2196_v31 = vadd.f32 %v2195_v56, %v1993_v6  ;;  %v2838_v27 = vsub.f32 %v6018_v22, %v2752_v16  ;;  %v2839_v21 = vsub.f32 %v6020_v58, %v2752_v16 }
 0x40b   : > { %v6193_v2 = vpop.eup %4662  ;;  %v2358_v30 = vadd.f32 %v2357_v39, %v2196_v31  ;;  %v2918_v18 = vmul.f32 1.442695, %v2838_v27  ;;  %v2920_v14 = vmul.f32 1.442695, %v2839_v21 }
 0x40c   : > { %v6195_v1 = vpop.eup %4664 }
 0x40d   : > { %8376 = vst [vmem:[#allocation22_spill] sm:$0xff] %v6195_v1  ;;  %v6197_v7 = vadd.f32 %v2503_v0, %v2358_v30  ;;  %4666 = vpow2.f32 %v2918_v18  ;;  %v3035_v46 = vadd.f32 %v6195_v1, %v6193_v2 }
 0x40e   : > { %4668 = vpow2.f32 %v2920_v14  ;;  %v1997_v41 = vpop.f32.mrf.mxu0  ;;  %v6201_v56 = vpop.f32.mrf.mxu1 }
 0x40f   : > { %v1998_v22 = vadd.f32 %v1997_v41, %v5799_v53  ;;  %v2361_v58 = vpop.f32.mrf.mxu2  ;;  %3036 = vadd.xlane.f32.xlu1 %v3035_v46 }
 0x410   : > { %v2507_v32 = vpop.f32.mrf.mxu3  ;;  %v2755_v31 = vpop.xlane.xlu1 %2754 }
 0x411   : > { %v2202_v34 = vadd.f32 %v2201_v45, %v1998_v22  ;;  %v2840_v42 = vsub.f32 %v6036_v52, %v2755_v31  ;;  %v2841_v13 = vsub.f32 %v6038_v51, %v2755_v31 }
 0x413   : > { %v6206_v25 = vpop.eup %4666  ;;  %v2362_v6 = vadd.f32 %v2361_v58, %v2202_v34  ;;  %v2922_v39 = vmul.f32 1.442695, %v2840_v42  ;;  %v2924_v0 = vmul.f32 1.442695, %v2841_v13 }
 0x414   : > { %v6208_v16 = vpop.eup %4668 }
 0x415   : > { %8377 = vst [vmem:[#allocation25_spill] sm:$0xff] %v6208_v16  ;;  %v6210_v27 = vadd.f32 %v2507_v32, %v2362_v6  ;;  %4670 = vpow2.f32 %v2922_v39  ;;  %v3038_v53 = vadd.f32 %v6208_v16, %v6206_v25 }
 0x416   : > { %4672 = vpow2.f32 %v2924_v0  ;;  %v6214_v21 = vpop.f32.mrf.mxu0  ;;  %v2213_v45 = vpop.f32.mrf.mxu1 }
 0x417   : > { %v6216_v52 = vpop.f32.mrf.mxu2  ;;  %3039 = vadd.xlane.f32.xlu1 %v3038_v53 }
 0x418   : > { %v6218_v51 = vpop.f32.mrf.mxu3  ;;  %v2758_v30 = vpop.xlane.xlu2 %2757 }
 0x419   : > { %v2842_v18 = vsub.f32 %v6054_v19, %v2758_v30  ;;  %v2843_v14 = vsub.f32 %v6056_v63, %v2758_v30 }
 0x41b   : > { %v6222_v46 = vpop.eup %4670  ;;  %v2926_v41 = vmul.f32 1.442695, %v2842_v18  ;;  %v2928_v22 = vmul.f32 1.442695, %v2843_v14 }
 0x41c   : > { %v6224_v58 = vpop.eup %4672 }
 0x41d   : > { %8378 = vst [vmem:[#allocation24_spill] sm:$0xff] %v6224_v58  ;;  %4674 = vpow2.f32 %v2926_v41  ;;  %v3041_v32 = vadd.f32 %v6224_v58, %v6222_v46 }
 0x41e   : > { %4676 = vpow2.f32 %v2928_v22  ;;  %v2007_v31 = vpop.f32.mrf.mxu0  ;;  %v2219_v0 = vpop.f32.mrf.mxu1  ;;  %v2588_v22 = vmul.f32 0.5, %v5815_v47 }
 0x41f   : > { %v2008_v34 = vadd.f32 %v2007_v31, %v5817_v4  ;;  %v2369_v42 = vpop.f32.mrf.mxu2  ;;  %3042 = vadd.xlane.f32.xlu1 %v3041_v32 }
 0x420   : > { %v2515_v13 = vpop.f32.mrf.mxu3  ;;  %v2761_v19 = vpop.xlane.xlu1 %2760 }
 0x421   : > { %v2214_v6 = vadd.f32 %v2213_v45, %v2008_v34  ;;  %v2844_v63 = vsub.f32 %v6072_v9, %v2761_v19  ;;  %v2845_v39 = vsub.f32 %v6074_v10, %v2761_v19  ;;  %v2653_v9 = vld [vmem:[%s7917_s1 + $0x1b8] sm:$0xff]  ;;  %v2652_v45 = vld [vmem:[%s7917_s1 + $0x1b0] sm:$0xff] }
 0x423   : > { %v6231_v53 = vpop.eup %4674  ;;  %v2370_v30 = vadd.f32 %v2369_v42, %v2214_v6  ;;  %v2930_v18 = vmul.f32 1.442695, %v2844_v63  ;;  %v2932_v14 = vmul.f32 1.442695, %v2845_v39  ;;  %v6248_v39 = vadd.f32 %v2652_v45, %v2588_v22 }
 0x424   : > { %v6233_v41 = vpop.eup %4676 }
 0x425   : > { %8379 = vst [vmem:[#allocation27_spill] sm:$0xff] %v6233_v41  ;;  %v2516_v4 = vadd.f32 %v2515_v13, %v2370_v30  ;;  %4678 = vpow2.f32 %v2930_v18  ;;  %v3044_v32 = vadd.f32 %v6233_v41, %v6231_v53 }
 0x426   : > { %4680 = vpow2.f32 %v2932_v14  ;;  %v2012_v10 = vpop.f32.mrf.mxu0 }
 0x427   : > { %v2589_v31 = vmul.f32 0.5, %v2516_v4  ;;  %v2013_v34 = vadd.f32 %v2012_v10, %v5826_v11  ;;  %v2373_v42 = vpop.f32.mrf.mxu2  ;;  %3045 = vadd.xlane.f32.xlu1 %v3044_v32  ;;  %v2590_v32 = vmul.f32 0.5, %v5824_v54  ;;  %v2225_v10 = vpop.f32.mrf.mxu1 }
 0x428   : > { %v2519_v47 = vpop.f32.mrf.mxu3  ;;  %v2764_v13 = vpop.xlane.xlu2 %2763 }
 0x429   : > { %v6245_v19 = vadd.f32 %v2653_v9, %v2589_v31  ;;  %v2220_v6 = vadd.f32 %v2219_v0, %v2013_v34  ;;  %v2846_v63 = vsub.f32 %v6090_v59, %v2764_v13  ;;  %v2847_v30 = vsub.f32 %v6092_v37, %v2764_v13  ;;  %v2654_v37 = vld [vmem:[%s7917_s1 + $0x1c0] sm:$0xff]  ;;  %v2655_v0 = vld [vmem:[%s7917_s1 + $0x1c8] sm:$0xff] }
 0x42a   : > { %v6267_v13 = vadd.f32 %v2654_v37, %v2590_v32 }
 0x42b   : > { %v6251_v18 = vpop.eup %4678  ;;  %v2374_v14 = vadd.f32 %v2373_v42, %v2220_v6  ;;  %v2807_v4 = vmax.f32 %v6248_v39, %v6245_v19  ;;  %v2934_v9 = vmul.f32 1.442695, %v2846_v63  ;;  %v2936_v22 = vmul.f32 1.442695, %v2847_v30 }
 0x42c   : > { %v6255_v11 = vpop.eup %4680 }
 0x42d   : > { %v2520_v31 = vadd.f32 %v2519_v47, %v2374_v14  ;;  %2808 = vmax.xlane.f32.xlu2 %v2807_v4  ;;  %v3047_v59 = vadd.f32 %v6255_v11, %v6251_v18  ;;  %4682 = vpow2.f32 %v2934_v9 }
 0x42e   : > { %v2017_v45 = vpop.f32.mrf.mxu0  ;;  %4684 = vpow2.f32 %v2936_v22 }
 0x42f   : > { %v2591_v34 = vmul.f32 0.5, %v2520_v31  ;;  %v2018_v54 = vadd.f32 %v2017_v45, %v5835_v29  ;;  %v2377_v42 = vpop.f32.mrf.mxu2  ;;  %3048 = vadd.xlane.f32.xlu1 %v3047_v59  ;;  %v2231_v32 = vpop.f32.mrf.mxu1 }
 0x430   : > { %v2767_v47 = vpop.xlane.xlu2 %2766  ;;  %v2523_v1 = vpop.f32.mrf.mxu3 }
 0x431   : > { %v6269_v6 = vadd.f32 %v2655_v0, %v2591_v34  ;;  %v2226_v63 = vadd.f32 %v2225_v10, %v2018_v54  ;;  %v2848_v14 = vsub.f32 %v6108_v55, %v2767_v47  ;;  %v2849_v4 = vsub.f32 %v6110_v49, %v2767_v47 }
 0x433   : > { %v2378_v30 = vadd.f32 %v2377_v42, %v2226_v63  ;;  %v2938_v16 = vmul.f32 1.442695, %v2848_v14  ;;  %v2940_v31 = vmul.f32 1.442695, %v2849_v4  ;;  %v2810_v29 = vmax.f32 %v6267_v13, %v6269_v6  ;;  %v6275_v9 = vpop.eup %4682 }
 0x434   : > { %v6278_v37 = vpop.eup %4684  ;;  %v2592_v4 = vmul.f32 0.5, %v5833_v61 }
 0x435   : > { %4686 = vpow2.f32 %v2938_v16  ;;  %2811 = vmax.xlane.f32.xlu2 %v2810_v29  ;;  %v2524_v59 = vadd.f32 %v2523_v1, %v2378_v30  ;;  %v2657_v1 = vld [vmem:[%s7917_s1 + $0x1d8] sm:$0xff]  ;;  %v2656_v30 = vld [vmem:[%s7917_s1 + $0x1d0] sm:$0xff] }
 0x436   : > { %4688 = vpow2.f32 %v2940_v31  ;;  %v2022_v10 = vpop.f32.mrf.mxu0 }
 0x437   : > { %v2023_v55 = vadd.f32 %v2022_v10, %v5844_v44  ;;  %v2381_v49 = vpop.f32.mrf.mxu2  ;;  %v2593_v54 = vmul.f32 0.5, %v2524_v59  ;;  %v3050_v44 = vadd.f32 %v6278_v37, %v6275_v9  ;;  %v2237_v10 = vpop.f32.mrf.mxu1 }
 0x438   : > { %v2770_v0 = vpop.xlane.xlu1 %2769 }
 0x439   : > { %v2232_v22 = vadd.f32 %v2231_v32, %v2023_v55  ;;  %v2850_v45 = vsub.f32 %v6127_v24, %v2770_v0  ;;  %v2851_v34 = vsub.f32 %v6124_v35, %v2770_v0  ;;  %v2527_v24 = vpop.f32.mrf.mxu3  ;;  %v6297_v31 = vadd.f32 %v2657_v1, %v2593_v54 }
 0x43a   : > { %v6300_v55 = vadd.f32 %v2656_v30, %v2592_v4 }
 0x43b   : > { %v6282_v16 = vpop.eup %4686  ;;  %v2382_v42 = vadd.f32 %v2381_v49, %v2232_v22  ;;  %v2942_v47 = vmul.f32 1.442695, %v2850_v45  ;;  %v2944_v63 = vmul.f32 1.442695, %v2851_v34  ;;  %v2834_v45 = vsub.f32 %v5982_v20, %v6183_v33  ;;  %v2659_v20 = vld [vmem:[%s7917_s1 + $0x1e8] sm:$0xff] }
 0x43c   : > { %v6289_v14 = vpop.eup %4688  ;;  %v2003_v34 = vadd.f32 %v6214_v21, %v5808_v60  ;;  %v2594_v60 = vmul.f32 0.5, %v5842_v5 }
 0x43d   : > { %4690 = vpow2.f32 %v2942_v47  ;;  %3051 = vadd.xlane.f32.xlu2 %v3050_v44  ;;  %v3053_v35 = vadd.f32 %v6289_v14, %v6282_v16  ;;  %v2528_v32 = vadd.f32 %v2527_v24, %v2382_v42  ;;  %v2658_v24 = vld [vmem:[%s7917_s1 + $0x1e0] sm:$0xff] }
 0x43e   : > { %4692 = vpow2.f32 %v2944_v63  ;;  %v2027_v29 = vpop.f32.mrf.mxu0  ;;  %v6328_v5 = vadd.f32 %v2658_v24, %v2594_v60 }
 0x43f   : > { %v2028_v59 = vadd.f32 %v2027_v29, %v5853_v8  ;;  %3054 = vadd.xlane.f32.xlu1 %v3053_v35  ;;  %v2385_v54 = vpop.f32.mrf.mxu2  ;;  %v2813_v8 = vmax.f32 %v6300_v55, %v6297_v31  ;;  %v2595_v42 = vmul.f32 0.5, %v2528_v32  ;;  %v2910_v35 = vmul.f32 1.442695, %v2834_v45  ;;  %v2660_v45 = vld [vmem:[%s7917_s1 + $0x1f0] sm:$0xff] }
 0x440   : > { %v2773_v61 = vpop.xlane.xlu1 %2772  ;;  %v2832_v32 = vsub.f32 %v5964_v28, %v6179_v23  ;;  %v2596_v28 = vmul.f32 0.5, %v5851_v15 }
 0x441   : > { %v2238_v49 = vadd.f32 %v2237_v10, %v2028_v59  ;;  %v2852_v0 = vsub.f32 %v6141_v3, %v2773_v61  ;;  %v2853_v22 = vsub.f32 %v6139_v50, %v2773_v61  ;;  %v2835_v50 = vsub.f32 %v5984_v38, %v6183_v33  ;;  %v2531_v21 = vpop.f32.mrf.mxu3 }
 0x442   : > { %v2208_v38 = vadd.f32 %v6201_v56, %v2003_v34  ;;  %v6326_v33 = vadd.f32 %v2659_v20, %v2595_v42  ;;  %v2906_v34 = vmul.f32 1.442695, %v2832_v32  ;;  %v6355_v42 = vadd.f32 %v2660_v45, %v2596_v28  ;;  %v2650_v20 = vld [vmem:[%s7917_s1 + $0x1a0] sm:$0xff]  ;;  %v8385_v45 = vld [vmem:[#allocation7_spill] sm:$0xff] }
 0x443   : > { %v6310_v1 = vpop.eup %4690  ;;  %v2386_v47 = vadd.f32 %v2385_v54, %v2238_v49  ;;  %v2946_v63 = vmul.f32 1.442695, %v2852_v0  ;;  %v2948_v44 = vmul.f32 1.442695, %v2853_v22  ;;  %v2912_v29 = vmul.f32 1.442695, %v2835_v50 }
 0x444   : > { %v6312_v4 = vpop.eup %4692  ;;  %v2366_v10 = vadd.f32 %v6216_v52, %v2208_v38  ;;  %v2816_v49 = vmax.f32 %v6328_v5, %v6326_v33  ;;  %v2833_v0 = vsub.f32 %v5966_v43, %v6179_v23  ;;  %v2661_v22 = vld [vmem:[%s7917_s1 + $0x1f8] sm:$0xff] }
 0x445   : > { %4694 = vpow2.f32 %v2946_v63  ;;  %2814 = vmax.xlane.f32.xlu2 %v2813_v8  ;;  %v3056_v3 = vadd.f32 %v6312_v4, %v6310_v1  ;;  %v2532_v30 = vadd.f32 %v2531_v21, %v2386_v47  ;;  %v8381_v21 = vld [vmem:[#allocation15_spill] sm:$0xff] }
 0x446   : > { %4696 = vpow2.f32 %v2948_v44  ;;  %v2512_v54 = vadd.f32 %v6218_v51, %v2366_v10  ;;  %v2908_v43 = vmul.f32 1.442695, %v2833_v0  ;;  %v2651_v51 = vld [vmem:[%s7917_s1 + $0x1a8] sm:$0xff]  ;;  %v2586_v44 = vmul.f32 0.5, %v5806_v40  ;;  %v2649_v10 = vld [vmem:[%s7917_s1 + $0x198] sm:$0xff] }
 0x447   : > { %3057 = vadd.xlane.f32.xlu1 %v3056_v3  ;;  %4698 = vpow2.f32 %v2910_v35  ;;  %v2597_v61 = vmul.f32 0.5, %v2532_v30  ;;  %v2828_v24 = vsub.f32 %v8381_v21, %v6168_v36  ;;  %v8383_v40 = vld [vmem:[#allocation14_spill] sm:$0xff] }
 0x448   : > { %4700 = vpow2.f32 %v2912_v29  ;;  %v2587_v47 = vmul.f32 0.5, %v2512_v54  ;;  %v6376_v35 = vadd.f32 %v2650_v20, %v2586_v44  ;;  %v2829_v30 = vsub.f32 %v8383_v40, %v6168_v36  ;;  %v2647_v36 = vld [vmem:[%s7917_s1 + $0x188] sm:$0xff]  ;;  %v8387_v44 = vld [vmem:[#allocation12_spill] sm:$0xff] }
 0x449   : > { %v6351_v8 = vadd.f32 %v2661_v22, %v2597_v61  ;;  %4702 = vpow2.f32 %v2906_v34  ;;  %v2585_v29 = vmul.f32 0.5, %v6210_v27  ;;  %v8384_v61 = vld [vmem:[#allocation6_spill] sm:$0xff]  ;;  %v2898_v0 = vmul.f32 1.442695, %v2828_v24  ;;  %v2648_v27 = vld [vmem:[%s7917_s1 + $0x190] sm:$0xff] }
 0x44a   : > { %4704 = vpow2.f32 %v2908_v43  ;;  %v6370_v60 = vadd.f32 %v2651_v51, %v2587_v47  ;;  %v2583_v22 = vmul.f32 0.5, %v6197_v7  ;;  %v2582_v34 = vmul.f32 0.5, %v8385_v45  ;;  %v2646_v7 = vld [vmem:[%s7917_s1 + $0x180] sm:$0xff] }
 0x44b   : > { %v6332_v59 = vpop.eup %4694  ;;  %v2819_v63 = vmax.f32 %v6355_v42, %v6351_v8  ;;  %v6399_v54 = vadd.f32 %v2649_v10, %v2585_v29  ;;  %v8386_v43 = vld [vmem:[#allocation13_spill] sm:$0xff]  ;;  %4706 = vpow2.f32 %v2898_v0  ;;  %v2581_v40 = vmul.f32 0.5, %v6188_v26  ;;  %v2644_v26 = vld [vmem:[%s7917_s1 + $0x170] sm:$0xff]  ;;  %v8390_v0 = vld [vmem:[#allocation18_spill] sm:$0xff] }
 0x44c   : > { %v6337_v56 = vpop.eup %4696  ;;  %v2804_v32 = vmax.f32 %v6376_v35, %v6370_v60  ;;  %v2826_v47 = vsub.f32 %v8386_v43, %v6158_v48  ;;  %v6414_v21 = vadd.f32 %v2646_v7, %v2582_v34  ;;  %v2579_v43 = vmul.f32 0.5, %v6181_v12  ;;  %v2642_v12 = vld [vmem:[%s7917_s1 + $0x160] sm:$0xff] }
 0x44d   : > { %2817 = vmax.xlane.f32.xlu2 %v2816_v49  ;;  %v3059_v52 = vadd.f32 %v6337_v56, %v6332_v59  ;;  %v6353_v23 = vpop.eup %4698  ;;  %v2584_v49 = vmul.f32 0.5, %v8384_v61 }
 0x44e   : > { %v6357_v15 = vpop.eup %4700  ;;  %v2894_v24 = vmul.f32 1.442695, %v2826_v47 }
 0x44f   : > { %3060 = vadd.xlane.f32.xlu1 %v3059_v52  ;;  %8380 = vst [vmem:[#allocation26_spill] sm:$0xff] %v6357_v15  ;;  %v3032_v50 = vadd.f32 %v6357_v15, %v6353_v23  ;;  %v6372_v3 = vpop.eup %4702  ;;  %v2900_v52 = vmul.f32 1.442695, %v2829_v30  ;;  %v6408_v51 = vadd.f32 %v2648_v27, %v2584_v49  ;;  %v8407_v15 = vld [vmem:[#allocation19_spill] sm:$0xff] }
 0x450   : > { %v6378_v38 = vpop.eup %4704 }
 0x451   : > { %8382 = vst [vmem:[#allocation29_spill] sm:$0xff] %v6378_v38  ;;  %v3029_v28 = vadd.f32 %v6378_v38, %v6372_v3  ;;  %4708 = vpow2.f32 %v2900_v52  ;;  %v2801_v20 = vmax.f32 %v6408_v51, %v6399_v54  ;;  %v6422_v10 = vpop.eup %4706 }
 0x452   : > { %4710 = vpow2.f32 %v2894_v24  ;;  %v8393_v24 = vld [vmem:[#allocation5_spill] sm:$0xff] }
 0x455   : > { %2820 = vmax.xlane.f32.xlu2 %v2819_v63  ;;  %v6406_v63 = vadd.f32 %v2647_v36, %v2583_v22  ;;  %v8391_v22 = vld [vmem:[#allocation11_spill] sm:$0xff]  ;;  %v8392_v36 = vld [vmem:[#allocation10_spill] sm:$0xff] }
 0x456   : > { %v2825_v27 = vsub.f32 %v8392_v36, %v8390_v0 }
 0x457   : > { %3033 = vadd.xlane.f32.xlu1 %v3032_v50  ;;  %v2827_v50 = vsub.f32 %v8387_v44, %v6158_v48  ;;  %v2798_v30 = vmax.f32 %v6414_v21, %v6406_v63  ;;  %v8388_v48 = vld [vmem:[#allocation4_spill] sm:$0xff]  ;;  %v6425_v49 = vpop.eup %4708 }
 0x458   : > { %v2580_v61 = vmul.f32 0.5, %v8388_v48  ;;  %8389 = vst [vmem:[#allocation28_spill] sm:$0xff] %v6425_v49  ;;  %v3023_v45 = vadd.f32 %v6425_v49, %v6422_v10  ;;  %v2892_v44 = vmul.f32 1.442695, %v2825_v27  ;;  %v2577_v27 = vmul.f32 0.5, %v6174_v62  ;;  %v2640_v62 = vld [vmem:[%s7917_s1 + $0x150] sm:$0xff] }
 0x459   : > { %v2896_v29 = vmul.f32 1.442695, %v2827_v50  ;;  %v2643_v50 = vld [vmem:[%s7917_s1 + $0x168] sm:$0xff] }
 0x45a   : > { %v6438_v34 = vadd.f32 %v2644_v26, %v2580_v61  ;;  %v6456_v61 = vadd.f32 %v2643_v50, %v2579_v43  ;;  %v8397_v26 = vld [vmem:[#allocation8_spill] sm:$0xff] }
 0x45b   : > { %4712 = vpow2.f32 %v2896_v29  ;;  %v8395_v29 = vld [vmem:[#allocation17_spill] sm:$0xff] }
 0x45d   : > { %2805 = vmax.xlane.f32.xlu2 %v2804_v32  ;;  %v2645_v32 = vld [vmem:[%s7917_s1 + $0x178] sm:$0xff] }
 0x45e   : > { %v6432_v52 = vadd.f32 %v2645_v32, %v2581_v40  ;;  %v2578_v40 = vmul.f32 0.5, %v8393_v24  ;;  %v8396_v32 = vld [vmem:[#allocation9_spill] sm:$0xff] }
 0x45f   : > { %3030 = vadd.xlane.f32.xlu1 %v3029_v28  ;;  %v2824_v28 = vsub.f32 %v8391_v22, %v8390_v0  ;;  %v2822_v48 = vsub.f32 %v8396_v32, %v8395_v29  ;;  %v2823_v0 = vsub.f32 %v8397_v26, %v8395_v29  ;;  %v2575_v32 = vmul.f32 0.5, %v6165_v57  ;;  %v2639_v26 = vld [vmem:[%s7917_s1 + $0x148] sm:$0xff] }
 0x460   : > { %v2795_v47 = vmax.f32 %v6438_v34, %v6432_v52 }
 0x461   : > { %v2890_v7 = vmul.f32 1.442695, %v2824_v28  ;;  %v6462_v28 = vadd.f32 %v2642_v12, %v2578_v40  ;;  %v2886_v36 = vmul.f32 1.442695, %v2822_v48  ;;  %v6498_v57 = vadd.f32 %v2639_v26, %v2575_v32  ;;  %v2636_v26 = vld [vmem:[%s7917_s1 + $0x130] sm:$0xff] }
 0x463   : > { %4714 = vpow2.f32 %v2890_v7  ;;  %v2641_v7 = vld [vmem:[%s7917_s1 + $0x158] sm:$0xff] }
 0x464   : > { %4716 = vpow2.f32 %v2892_v44  ;;  %v8398_v44 = vld [vmem:[#allocation2_spill] sm:$0xff]  ;;  %v6478_v40 = vadd.f32 %v2641_v7, %v2577_v27  ;;  %v2573_v7 = vmul.f32 0.5, %v6160_v17 }
 0x465   : > { %2802 = vmax.xlane.f32.xlu2 %v2801_v20  ;;  %v6446_v20 = vpop.eup %4710  ;;  %v2576_v50 = vmul.f32 0.5, %v8398_v44  ;;  %4718 = vpow2.f32 %v2886_v36  ;;  %v2635_v17 = vld [vmem:[%s7917_s1 + $0x128] sm:$0xff] }
 0x467   : > { %2799 = vmax.xlane.f32.xlu1 %v2798_v30  ;;  %v6449_v30 = vpop.eup %4712  ;;  %v6482_v29 = vadd.f32 %v2640_v62, %v2576_v50  ;;  %v2637_v62 = vld [vmem:[%s7917_s1 + $0x138] sm:$0xff] }
 0x468   : > { %8394 = vst [vmem:[#allocation31_spill] sm:$0xff] %v6449_v30  ;;  %v3020_v22 = vadd.f32 %v6449_v30, %v6446_v20 }
 0x469   : > { %v6470_v43 = vpop.eup %4714  ;;  %v2789_v48 = vmax.f32 %v6482_v29, %v6478_v40 }
 0x46a   : > { %v6473_v24 = vpop.eup %4716 }
 0x46b   : > { %8399 = vst [vmem:[#allocation30_spill] sm:$0xff] %v6473_v24  ;;  %v3017_v12 = vadd.f32 %v6473_v24, %v6470_v43 }
 0x46d   : > { %3024 = vadd.xlane.f32.xlu2 %v3023_v45  ;;  %v2792_v45 = vmax.f32 %v6462_v28, %v6456_v61 }
 0x46f   : > { %2796 = vmax.xlane.f32.xlu1 %v2795_v47  ;;  %v2888_v47 = vmul.f32 1.442695, %v2823_v0  ;;  %v6490_v0 = vpop.eup %4718 }
 0x471   : > { %4720 = vpow2.f32 %v2888_v47 }
 0x475   : > { %3021 = vadd.xlane.f32.xlu2 %v3020_v22  ;;  %v8400_v22 = vld [vmem:[#allocation3_spill] sm:$0xff] }
 0x476   : > { %v2574_v36 = vmul.f32 0.5, %v8400_v22  ;;  %v8403_v22 = vld [vmem:[#allocation21_spill] sm:$0xff] }
 0x477   : > { %2793 = vmax.xlane.f32.xlu1 %v2792_v45  ;;  %v6493_v27 = vpop.eup %4720  ;;  %v2638_v45 = vld [vmem:[%s7917_s1 + $0x140] sm:$0xff]  ;;  %v2571_v24 = vmul.f32 0.5, %v8403_v22 }
 0x478   : > { %8401 = vst [vmem:[#allocation33_spill] sm:$0xff] %v6493_v27  ;;  %v3014_v44 = vadd.f32 %v6493_v27, %v6490_v0  ;;  %v6505_v50 = vadd.f32 %v2638_v45, %v2574_v36  ;;  %v8404_v36 = vld [vmem:[#allocation91_spill] sm:$0xff]  ;;  %v6521_v27 = vadd.f32 %v2637_v62, %v2573_v7  ;;  %v8408_v62 = vld [vmem:[#allocation93_spill] sm:$0xff] }
 0x479   : > { %v2570_v45 = vmul.f32 0.5, %v8404_v36  ;;  %v2569_v36 = vmul.f32 0.5, %v8407_v15  ;;  %v8411_v15 = vld [vmem:[#allocation16_spill] sm:$0xff] }
 0x47a   : > { %v2786_v32 = vmax.f32 %v6505_v50, %v6498_v57 }
 0x47d   : > { %3018 = vadd.xlane.f32.xlu2 %v3017_v12  ;;  %v8402_v12 = vld [vmem:[#allocation95_spill] sm:$0xff] }
 0x47f   : > { %2790 = vmax.xlane.f32.xlu1 %v2789_v48  ;;  %v2572_v48 = vmul.f32 0.5, %v8402_v12  ;;  %v6526_v12 = vadd.f32 %v2635_v17, %v2571_v24  ;;  %v2633_v24 = vld [vmem:[%s7917_s1 + $0x118] sm:$0xff] }
 0x480   : > { %v6546_v17 = vadd.f32 %v2633_v24, %v2569_v36  ;;  %v2630_v36 = vld [vmem:[%s7917_s1 + $0x100] sm:$0xff] }
 0x481   : > { %8405 = vst [vmem:[#allocation32_spill] sm:$0xff] %v6526_v12  ;;  %v6528_v22 = vadd.f32 %v2636_v26, %v2572_v48  ;;  %v2568_v48 = vmul.f32 0.5, %v8408_v62  ;;  %v8412_v62 = vld [vmem:[#allocation86_spill] sm:$0xff] }
 0x482   : > { %v6500_v47 = vpop.xlane.xlu1 %3036  ;;  %8409 = vst [vmem:[#allocation34_spill] sm:$0xff] %v6546_v17 }
 0x483   : > { %v2783_v30 = vmax.f32 %v6528_v22, %v6521_v27 }
 0x485   : > { %3015 = vadd.xlane.f32.xlu2 %v3014_v44  ;;  %v2634_v44 = vld [vmem:[%s7917_s1 + $0x120] sm:$0xff] }
 0x486   : > { %v6532_v49 = vadd.f32 %v2634_v44, %v2570_v45  ;;  %v2631_v44 = vld [vmem:[%s7917_s1 + $0x108] sm:$0xff] }
 0x487   : > { %2787 = vmax.xlane.f32.xlu1 %v2786_v32  ;;  %v2632_v32 = vld [vmem:[%s7917_s1 + $0x110] sm:$0xff] }
 0x488   : > { %8406 = vst [vmem:[#allocation35_spill] sm:$0xff] %v6532_v49  ;;  %v2780_v7 = vmax.f32 %v6532_v49, %v6526_v12  ;;  %v6548_v26 = vadd.f32 %v2632_v32, %v2568_v48 }
 0x48a   : > { %v6534_v38 = vpop.xlane.xlu1 %3039  ;;  %8410 = vst [vmem:[#allocation37_spill] sm:$0xff] %v6548_v26  ;;  %v2777_v45 = vmax.f32 %v6548_v26, %v6546_v17 }
 0x48d   : > { %2784 = vmax.xlane.f32.xlu2 %v2783_v30  ;;  %v2567_v30 = vmul.f32 0.5, %v8411_v15 }
 0x48f   : > { %2781 = vmax.xlane.f32.xlu1 %v2780_v7  ;;  %v2566_v7 = vmul.f32 0.5, %v8412_v62  ;;  %v6560_v24 = vadd.f32 %v2631_v44, %v2567_v30 }
 0x491   : > { %8413 = vst [vmem:[#allocation36_spill] sm:$0xff] %v6560_v24  ;;  %v6562_v48 = vadd.f32 %v2630_v36, %v2566_v7 }
 0x492   : > { %v3043_v58 = vpop.xlane.xlu1 %3042 }
 0x493   : > { %8414 = vst [vmem:[#allocation39_spill] sm:$0xff] %v6562_v48  ;;  %v2774_v32 = vmax.f32 %v6562_v48, %v6560_v24 }
 0x497   : > { %2778 = vmax.xlane.f32.xlu1 %v2777_v45 }
 0x49a   : > { %v3046_v15 = vpop.xlane.xlu1 %3045 }
 0x49f   : > { %2775 = vmax.xlane.f32.xlu1 %v2774_v32 }
 0x4a0   : > { %v6566_v17 = vpop.xlane.xlu2 %2808 }
 0x4a2   : > { %v3049_v62 = vpop.xlane.xlu1 %3048 }
 0x4a8   : > { %v2812_v26 = vpop.xlane.xlu2 %2811 }
 0x4a9   : > { %v2878_v41 = vsub.f32 %v6267_v13, %v2812_v26  ;;  %v2879_v45 = vsub.f32 %v6269_v6, %v2812_v26 }
 0x4ab   : > { %v2998_v12 = vmul.f32 1.442695, %v2878_v41  ;;  %v3000_v49 = vmul.f32 1.442695, %v2879_v45 }
 0x4ad   : > { %4722 = vpow2.f32 %v2998_v12 }
 0x4ae   : > { %4724 = vpow2.f32 %v3000_v49 }
 0x4b0   : > { %v3052_v30 = vpop.xlane.xlu2 %3051 }
 0x4b2   : > { %v3055_v44 = vpop.xlane.xlu1 %3054 }
 0x4b3   : > { %v6570_v7 = vpop.eup %4722 }
 0x4b4   : > { %8415 = vst [vmem:[#allocation38_spill] sm:$0xff] %v6570_v7  ;;  %v6572_v36 = vpop.eup %4724 }
 0x4b5   : > { %8416 = vst [vmem:[#allocation41_spill] sm:$0xff] %v6572_v36  ;;  %v3098_v32 = vadd.f32 %v6572_v36, %v6570_v7 }
 0x4b7   : > { %3099 = vadd.xlane.f32.xlu1 %v3098_v32 }
 0x4b8   : > { %v2815_v24 = vpop.xlane.xlu2 %2814 }
 0x4ba   : > { %v3058_v48 = vpop.xlane.xlu1 %3057 }
 0x4bb   : > { %4726 = vrcp.f32 %v3058_v48 }
 0x4bc   : > { %4728 = vrcp.f32 %v3055_v44 }
 0x4bd   : > { %4730 = vrcp.f32 %v3052_v30 }
 0x4c0   : > { %v2818_v13 = vpop.xlane.xlu2 %2817 }
 0x4c1   : > { %v6576_v6 = vpop.eup %4726  ;;  %v2882_v41 = vsub.f32 %v6328_v5, %v2818_v13  ;;  %v2883_v49 = vsub.f32 %v6326_v33, %v2818_v13 }
 0x4c2   : > { %v3061_v12 = vpop.xlane.xlu1 %3060  ;;  %v3170_v32 = vmul.f32 %v6576_v6, %v6310_v1  ;;  %v6582_v36 = vpop.eup %4728 }
 0x4c3   : > { %v3006_v26 = vmul.f32 1.442695, %v2882_v41  ;;  %v3008_v45 = vmul.f32 1.442695, %v2883_v49  ;;  %4732 = vrcp.f32 %v3061_v12  ;;  %v6584_v48 = vpop.eup %4730  ;;  %v3168_v5 = vmul.f32 %v6582_v36, %v6282_v16 }
 0x4c4   : > { %4734 = vrcp.f32 %v3049_v62  ;;  %v6588_v33 = vand.u32 4294901760, %v3170_v32  ;;  %v3166_v16 = vmul.f32 %v6584_v48, %v6275_v9  ;;  %v2876_v9 = vsub.f32 %v6248_v39, %v6566_v17 }
 0x4c5   : > { %4736 = vpow2.f32 %v3006_v26  ;;  %v2880_v26 = vsub.f32 %v6300_v55, %v2815_v24 }
 0x4c6   : > { %4738 = vpow2.f32 %v3008_v45  ;;  %8417 = vst [vmem:[#allocation40_spill] sm:$0xff] %v6588_v33 }
 0x4c7   : > { %4740 = vrcp.f32 %v3046_v15 }
 0x4c8   : > { %v2821_v44 = vpop.xlane.xlu2 %2820  ;;  %4742 = vrcp.f32 %v3043_v58  ;;  %v6611_v58 = vsub.f32 %v3170_v32, %v6588_v33  ;;  %v3002_v32 = vmul.f32 1.442695, %v2880_v26 }
 0x4c9   : > { %v6590_v30 = vpop.eup %4732  ;;  %v2884_v62 = vsub.f32 %v6355_v42, %v2821_v44  ;;  %v2885_v13 = vsub.f32 %v6351_v8, %v2821_v44  ;;  %v2881_v8 = vsub.f32 %v6297_v31, %v2815_v24 }
 0x4ca   : > { %v6594_v1 = vpop.eup %4734  ;;  %v3172_v41 = vmul.f32 %v6590_v30, %v6332_v59  ;;  %v6598_v49 = vpop.xlane.xlu1 %3033  ;;  %v6613_v59 = vand.u32 4294901760, %v3168_v5 }
 0x4cb   : > { %v6600_v12 = vpop.eup %4736  ;;  %v3010_v15 = vmul.f32 1.442695, %v2884_v62  ;;  %v3012_v45 = vmul.f32 1.442695, %v2885_v13  ;;  %v3164_v55 = vmul.f32 %v6594_v1, %v6251_v18  ;;  %v6629_v62 = vand.u32 4294901760, %v3166_v16 }
 0x4cc   : > { %8418 = vst [vmem:[#allocation43_spill] sm:$0xff] %v6600_v12  ;;  %v6605_v42 = vpop.eup %4738  ;;  %v6608_v44 = vand.u32 4294901760, %v3172_v41  ;;  %v3004_v13 = vmul.f32 1.442695, %v2881_v8 }
 0x4cd   : > { %8419 = vst [vmem:[#allocation97_spill] sm:$0xff] %v6605_v42  ;;  %4744 = vpow2.f32 %v3010_v15  ;;  %v3104_v7 = vadd.f32 %v6605_v42, %v6600_v12  ;;  %v6626_v24 = vpop.eup %4740  ;;  %v2994_v42 = vmul.f32 1.442695, %v2876_v9 }
 0x4ce   : > { %8420 = vst [vmem:[#allocation42_spill] sm:$0xff] %v6613_v59  ;;  %4746 = vpow2.f32 %v3012_v45  ;;  %3212 = vmatpush.xpose.msrb.mxu0 %v6608_v44  ;;  %3408 = vmatpush.xpose.msrb.mxu3 %v6608_v44  ;;  %v6624_v31 = vsub.f32 %v3172_v41, %v6608_v44  ;;  %v6631_v39 = vpop.eup %4742  ;;  %v6636_v45 = vsub.f32 %v3168_v5, %v6613_v59  ;;  %v6651_v41 = vand.u32 4294901760, %v3164_v55 }
 0x4cf   : > { %4748 = vrcp.f32 %v6500_v47  ;;  %3105 = vadd.xlane.f32.xlu2 %v3104_v7  ;;  %8421 = vst [vmem:[#allocation46_spill] sm:$0xff] %v6629_v62  ;;  %v2877_v47 = vsub.f32 %v6245_v19, %v6566_v17  ;;  %v3162_v8 = vmul.f32 %v6626_v24, %v6231_v53  ;;  %v6656_v17 = vsub.f32 %v3166_v16, %v6629_v62 }
 0x4d0   : > { %3355 = vmatpush.xpose.msrb.mxu2 %v6624_v31  ;;  %v2806_v18 = vpop.xlane.xlu2 %2805  ;;  %v8050_v15 = vand.u32 4294901760, %v6624_v31  ;;  %4750 = vrcp.f32 %v6534_v38  ;;  %v8053_v12 = vand.u32 4294901760, %v6636_v45 }
 0x4d1   : > { %v2874_v7 = vsub.f32 %v6376_v35, %v2806_v18  ;;  %v2875_v26 = vsub.f32 %v6370_v60, %v2806_v18  ;;  %4752 = vpow2.f32 %v3002_v32  ;;  %v8424_v18 = vand.u32 4294901760, %v6611_v58 }
 0x4d2   : > { %3214 = vmatpush.xpose.msrb.mxu0 %v6588_v33  ;;  %3410 = vmatpush.xpose.msrb.mxu3 %v6588_v33  ;;  %v3031_v5 = vpop.xlane.xlu1 %3030  ;;  %v3255_v38 = vsub.f32 %v6624_v31, %v8050_v15  ;;  %4754 = vpow2.f32 %v3004_v13  ;;  %v2996_v32 = vmul.f32 1.442695, %v2877_v47 }
 0x4d3   : > { %v6653_v19 = vpop.eup %4744  ;;  %v2990_v35 = vmul.f32 1.442695, %v2874_v7  ;;  %v2992_v60 = vmul.f32 1.442695, %v2875_v26  ;;  %v3261_v15 = vsub.f32 %v6611_v58, %v8424_v18  ;;  %v3160_v7 = vmul.f32 %v6631_v39, %v6222_v46 }
 0x4d4   : > { %8422 = vst [vmem:[#allocation44_spill] sm:$0xff] %v6653_v19  ;;  %v6658_v53 = vpop.eup %4746  ;;  %3358 = vmatpush.xpose.msrb.mxu2 %v6611_v58  ;;  %v3256_v9 = vand.u32 4294901760, %v3255_v38  ;;  %v6675_v26 = vand.u32 4294901760, %v3162_v8  ;;  %v3267_v46 = vsub.f32 %v6636_v45, %v8053_v12 }
 0x4d5   : > { %8423 = vst [vmem:[#allocation96_spill] sm:$0xff] %v6658_v53  ;;  %v6665_v33 = vpop.eup %4748  ;;  %4756 = vpow2.f32 %v2990_v35  ;;  %v3107_v16 = vadd.f32 %v6658_v53, %v6653_v19  ;;  %v3262_v38 = vand.u32 4294901760, %v3261_v15  ;;  %v6682_v35 = vsub.f32 %v3164_v55, %v6651_v41 }
 0x4d6   : > { %4758 = vpow2.f32 %v2992_v60  ;;  %3216 = vmatpush.xpose.msrb.mxu0 %v6613_v59  ;;  %3257 = vmatpush.xpose.msrb.mxu1 %v3256_v9  ;;  %v6672_v13 = vpop.eup %4750  ;;  %v3268_v53 = vand.u32 4294901760, %v3267_v46  ;;  %v8429_v19 = vand.u32 4294901760, %v6656_v17 }
 0x4d7   : > { %4760 = vpow2.f32 %v2994_v42  ;;  %3412 = vmatpush.xpose.msrb.mxu3 %v6613_v59  ;;  %3108 = vadd.xlane.f32.xlu2 %v3107_v16  ;;  %v6685_v9 = vpop.eup %4752  ;;  %v3158_v18 = vmul.f32 %v6672_v13, %v6206_v25  ;;  %v6693_v16 = vand.u32 4294901760, %v3160_v7  ;;  %v6702_v25 = vsub.f32 %v3162_v8, %v6675_v26 }
 0x4d8   : > { %3361 = vmatpush.xpose.msrb.mxu2 %v6636_v45  ;;  %v2803_v47 = vpop.xlane.xlu2 %2802  ;;  %8425 = vst [vmem:[#allocation98_spill] sm:$0xff] %v6685_v9  ;;  %4762 = vpow2.f32 %v2996_v32  ;;  %v6687_v42 = vpop.eup %4754 }
 0x4d9   : > { %8426 = vst [vmem:[#allocation45_spill] sm:$0xff] %v6687_v42  ;;  %4764 = vrcp.f32 %v6598_v49  ;;  %v2872_v12 = vsub.f32 %v6408_v51, %v2803_v47  ;;  %v3273_v51 = vsub.f32 %v6656_v17, %v8429_v19  ;;  %v3101_v8 = vadd.f32 %v6687_v42, %v6685_v9 }
 0x4da   : > { %3263 = vmatpush.xpose.msrb.mxu1 %v3262_v38  ;;  %v2800_v15 = vpop.xlane.xlu1 %2799  ;;  %3218 = vmatpush.xpose.msrb.mxu0 %v6629_v62  ;;  %v2873_v38 = vsub.f32 %v6399_v54, %v2803_v47  ;;  %v3028_v54 = vpop.xlane.xlu0 %3027  ;;  %v3156_v47 = vmul.f32 %v6665_v33, %v6193_v2  ;;  %4766 = vrcp.f32 %v3031_v5  ;;  %v6721_v19 = vand.u32 4294901760, %v3158_v18 }
 0x4db   : > { %v6695_v55 = vpop.eup %4756  ;;  %v2870_v60 = vsub.f32 %v6414_v21, %v2800_v15  ;;  %v2871_v32 = vsub.f32 %v6406_v63, %v2800_v15  ;;  %3414 = vmatpush.xpose.msrb.mxu3 %v6629_v62 }
 0x4dc   : > { %8427 = vst [vmem:[#allocation50_spill] sm:$0xff] %v6695_v55  ;;  %v6704_v49 = vpop.eup %4758  ;;  %3364 = vmatpush.xpose.msrb.mxu2 %v6656_v17  ;;  %v2988_v2 = vmul.f32 1.442695, %v2873_v38  ;;  %v6740_v21 = vand.u32 4294901760, %v3156_v47 }
 0x4dd   : > { %8428 = vst [vmem:[#allocation47_spill] sm:$0xff] %v6704_v49  ;;  %v6712_v59 = vpop.eup %4760  ;;  %v2982_v63 = vmul.f32 1.442695, %v2870_v60  ;;  %v2984_v15 = vmul.f32 1.442695, %v2871_v32  ;;  %v3092_v62 = vadd.f32 %v6704_v49, %v6695_v55  ;;  %v6727_v32 = vsub.f32 %v3160_v7, %v6693_v16 }
 0x4de   : > { %8430 = vst [vmem:[#allocation49_spill] sm:$0xff] %v6712_v59  ;;  %3220 = vmatpush.xpose.msrb.mxu0 %v6651_v41  ;;  %3269 = vmatpush.xpose.msrb.mxu1 %v3268_v53  ;;  %v6723_v46 = vpop.eup %4762  ;;  %v2986_v60 = vmul.f32 1.442695, %v2872_v12  ;;  %v3274_v53 = vand.u32 4294901760, %v3273_v51  ;;  %v8432_v12 = vand.u32 4294901760, %v6682_v35  ;;  %v6738_v7 = vsub.f32 %v3158_v18, %v6721_v19 }
 0x4df   : > { %8431 = vst [vmem:[#allocation54_spill] sm:$0xff] %v6723_v46  ;;  %4768 = vpow2.f32 %v2982_v63  ;;  %3416 = vmatpush.xpose.msrb.mxu3 %v6651_v41  ;;  %3102 = vadd.xlane.f32.xlu2 %v3101_v8  ;;  %v6730_v49 = vpop.eup %4764 }
 0x4e0   : > { %4770 = vpow2.f32 %v2984_v15  ;;  %3093 = vadd.xlane.f32.xlu1 %v3092_v62  ;;  %3367 = vmatpush.xpose.msrb.mxu2 %v6682_v35  ;;  %v3025_v5 = vpop.xlane.xlu2 %3024  ;;  %v3279_v63 = vsub.f32 %v6682_v35, %v8432_v12  ;;  %v3154_v62 = vmul.f32 %v6730_v49, %v6353_v23  ;;  %v6747_v15 = vpop.eup %4766 }
 0x4e1   : > { %4772 = vrcp.f32 %v3028_v54 }
 0x4e2   : > { %v2797_v8 = vpop.xlane.xlu1 %2796  ;;  %3222 = vmatpush.xpose.msrb.mxu0 %v6675_v26  ;;  %3275 = vmatpush.xpose.msrb.mxu1 %v3274_v53  ;;  %4774 = vpow2.f32 %v2986_v60  ;;  %v3280_v18 = vand.u32 4294901760, %v3279_v63  ;;  %v8433_v53 = vand.u32 4294901760, %v6702_v25 }
 0x4e3   : > { %v2868_v38 = vsub.f32 %v6438_v34, %v2797_v8  ;;  %3418 = vmatpush.xpose.msrb.mxu3 %v6675_v26  ;;  %4776 = vpow2.f32 %v2988_v2  ;;  %v2869_v54 = vsub.f32 %v6432_v52, %v2797_v8  ;;  %v3095_v34 = vadd.f32 %v6723_v46, %v6712_v59 }
 0x4e4   : > { %3370 = vmatpush.xpose.msrb.mxu2 %v6702_v25  ;;  %v3285_v12 = vsub.f32 %v6702_v25, %v8433_v53  ;;  %4778 = vrcp.f32 %v3025_v5  ;;  %v6762_v52 = vsub.f32 %v3156_v47, %v6740_v21  ;;  %v6769_v8 = vand.u32 4294901760, %v3154_v62 }
 0x4e5   : > { %v6754_v23 = vpop.eup %4768  ;;  %v2978_v51 = vmul.f32 1.442695, %v2868_v38  ;;  %v3152_v5 = vmul.f32 %v6747_v15, %v6372_v3  ;;  %v2980_v38 = vmul.f32 1.442695, %v2869_v54  ;;  %v8436_v46 = vand.u32 4294901760, %v6727_v32 }
 0x4e6   : > { %8434 = vst [vmem:[#allocation48_spill] sm:$0xff] %v6754_v23  ;;  %v6758_v60 = vpop.eup %4770  ;;  %3224 = vmatpush.xpose.msrb.mxu0 %v6693_v16  ;;  %3281 = vmatpush.xpose.msrb.mxu1 %v3280_v18  ;;  %v3286_v18 = vand.u32 4294901760, %v3285_v12  ;;  %v6790_v12 = vsub.f32 %v3154_v62, %v6769_v8 }
 0x4e7   : > { %8435 = vst [vmem:[#allocation55_spill] sm:$0xff] %v6758_v60  ;;  %v6764_v2 = vpop.eup %4772  ;;  %3420 = vmatpush.xpose.msrb.mxu3 %v6693_v16  ;;  %3096 = vadd.xlane.f32.xlu2 %v3095_v34  ;;  %v3086_v63 = vadd.f32 %v6758_v60, %v6754_v23  ;;  %v3291_v42 = vsub.f32 %v6727_v32, %v8436_v46  ;;  %v8439_v23 = vld [vmem:[#allocation20_spill] sm:$0xff]  ;;  %4780 = vpow2.f32 %v2978_v51 }
 0x4e8   : > { %3373 = vmatpush.xpose.msrb.mxu2 %v6727_v32  ;;  %v3022_v47 = vpop.xlane.xlu2 %3021  ;;  %v6778_v34 = vpop.eup %4774  ;;  %v3150_v53 = vmul.f32 %v6764_v2, %v8439_v23  ;;  %v8440_v23 = vand.u32 4294901760, %v6738_v7 }
 0x4e9   : > { %8437 = vst [vmem:[#allocation51_spill] sm:$0xff] %v6778_v34  ;;  %3087 = vadd.xlane.f32.xlu1 %v3086_v63  ;;  %v6780_v60 = vpop.eup %4776  ;;  %4782 = vrcp.f32 %v3022_v47  ;;  %v3292_v51 = vand.u32 4294901760, %v3291_v42  ;;  %v6798_v47 = vand.u32 4294901760, %v3152_v5 }
 0x4ea   : > { %8438 = vst [vmem:[#allocation52_spill] sm:$0xff] %v6780_v60  ;;  %v2794_v55 = vpop.xlane.xlu1 %2793  ;;  %3226 = vmatpush.xpose.msrb.mxu0 %v6721_v19  ;;  %3287 = vmatpush.xpose.msrb.mxu1 %v3286_v18  ;;  %v6792_v63 = vpop.eup %4778  ;;  %4784 = vpow2.f32 %v2980_v38  ;;  %v3297_v18 = vsub.f32 %v6738_v7, %v8440_v23 }
 0x4eb   : > { %v2866_v54 = vsub.f32 %v6462_v28, %v2794_v55  ;;  %v2867_v46 = vsub.f32 %v6456_v61, %v2794_v55  ;;  %3422 = vmatpush.xpose.msrb.mxu3 %v6721_v19  ;;  %v3089_v61 = vadd.f32 %v6780_v60, %v6778_v34  ;;  %v6803_v55 = vand.u32 4294901760, %v3150_v53 }
 0x4ec   : > { %3376 = vmatpush.xpose.msrb.mxu2 %v6738_v7  ;;  %v3148_v62 = vmul.f32 %v6792_v63, %v6422_v10  ;;  %v6816_v60 = vsub.f32 %v3152_v5, %v6798_v47  ;;  %v8444_v5 = vand.u32 4294901760, %v6790_v12 }
 0x4ed   : > { %v2974_v28 = vmul.f32 1.442695, %v2866_v54  ;;  %v2976_v3 = vmul.f32 1.442695, %v2867_v46  ;;  %v6809_v38 = vpop.eup %4780  ;;  %v3298_v46 = vand.u32 4294901760, %v3297_v18 }
 0x4ee   : > { %3228 = vmatpush.xpose.msrb.mxu0 %v6740_v21  ;;  %3293 = vmatpush.xpose.msrb.mxu1 %v3292_v51  ;;  %8441 = vst [vmem:[#allocation59_spill] sm:$0xff] %v6809_v38  ;;  %v8442_v51 = vand.u32 4294901760, %v6762_v52 }
 0x4ef   : > { %4786 = vpow2.f32 %v2974_v28  ;;  %3424 = vmatpush.xpose.msrb.mxu3 %v6740_v21  ;;  %3090 = vadd.xlane.f32.xlu2 %v3089_v61  ;;  %v6818_v10 = vpop.eup %4782 }
 0x4f0   : > { %4788 = vpow2.f32 %v2976_v3  ;;  %3379 = vmatpush.xpose.msrb.mxu2 %v6762_v52  ;;  %v3019_v54 = vpop.xlane.xlu2 %3018  ;;  %v3303_v23 = vsub.f32 %v6762_v52, %v8442_v51  ;;  %v6820_v28 = vpop.eup %4784  ;;  %v6824_v3 = vsub.f32 %v3150_v53, %v6803_v55  ;;  %v3309_v51 = vsub.f32 %v6790_v12, %v8444_v5 }
 0x4f1   : > { %4790 = vrcp.f32 %v3019_v54  ;;  %8443 = vst [vmem:[#allocation53_spill] sm:$0xff] %v6820_v28  ;;  %v6832_v54 = vand.u32 4294901760, %v3148_v62  ;;  %v3146_v34 = vmul.f32 %v6818_v10, %v6446_v20  ;;  %v3173_v5 = vmul.f32 %v6590_v30, %v6337_v56 }
 0x4f2   : > { %v2791_v61 = vpop.xlane.xlu1 %2790  ;;  %3230 = vmatpush.xpose.msrb.mxu0 %v6769_v8  ;;  %3299 = vmatpush.xpose.msrb.mxu1 %v3298_v46  ;;  %v3304_v46 = vand.u32 4294901760, %v3303_v23 }
 0x4f3   : > { %v2864_v18 = vsub.f32 %v6482_v29, %v2791_v61  ;;  %v2865_v42 = vsub.f32 %v6478_v40, %v2791_v61  ;;  %3426 = vmatpush.xpose.msrb.mxu3 %v6769_v8  ;;  %v3083_v61 = vadd.f32 %v6820_v28, %v6809_v38  ;;  %v6854_v53 = vsub.f32 %v3148_v62, %v6832_v54  ;;  %v8465_v38 = vld [vmem:[#allocation34_spill] sm:$0xff] }
 0x4f4   : > { %3382 = vmatpush.xpose.msrb.mxu2 %v6790_v12  ;;  %v6862_v20 = vand.u32 4294901760, %v3146_v34  ;;  %v6866_v62 = vand.u32 4294901760, %v3173_v5  ;;  %v3169_v28 = vmul.f32 %v6582_v36, %v6289_v14 }
 0x4f5   : > { %v6838_v59 = vpop.eup %4786  ;;  %v2970_v29 = vmul.f32 1.442695, %v2864_v18  ;;  %v2972_v40 = vmul.f32 1.442695, %v2865_v42  ;;  %v3310_v18 = vand.u32 4294901760, %v3309_v51  ;;  %v3171_v51 = vmul.f32 %v6576_v6, %v6312_v4 }
 0x4f6   : > { %8445 = vst [vmem:[#allocation60_spill] sm:$0xff] %v6838_v59  ;;  %v6842_v9 = vpop.eup %4788  ;;  %3232 = vmatpush.xpose.msrb.mxu0 %v6798_v47  ;;  %3305 = vmatpush.xpose.msrb.mxu1 %v3304_v46  ;;  %v8447_v46 = vand.u32 4294901760, %v6816_v60  ;;  %v6878_v6 = vsub.f32 %v3146_v34, %v6862_v20 }
 0x4f7   : > { %8446 = vst [vmem:[#allocation56_spill] sm:$0xff] %v6842_v9  ;;  %v6848_v23 = vpop.eup %4790  ;;  %4792 = vpow2.f32 %v2970_v29  ;;  %3428 = vmatpush.xpose.msrb.mxu3 %v6798_v47  ;;  %3084 = vadd.xlane.f32.xlu2 %v3083_v61  ;;  %v3080_v42 = vadd.f32 %v6842_v9, %v6838_v59 }
 0x4f8   : > { %v3144_v56 = vmul.f32 %v6848_v23, %v6470_v43  ;;  %4794 = vpow2.f32 %v2972_v40  ;;  %3385 = vmatpush.xpose.msrb.mxu2 %v6816_v60  ;;  %v3016_v30 = vpop.xlane.xlu2 %3015  ;;  %v3315_v29 = vsub.f32 %v6816_v60, %v8447_v46  ;;  %v8448_v46 = vand.u32 4294901760, %v6824_v3 }
 0x4f9   : > { %3081 = vadd.xlane.f32.xlu1 %v3080_v42  ;;  %4796 = vrcp.f32 %v3016_v30  ;;  %v6891_v30 = vsub.f32 %v3173_v5, %v6866_v62 }
 0x4fa   : > { %v2788_v61 = vpop.xlane.xlu1 %2787  ;;  %3234 = vmatpush.xpose.msrb.mxu0 %v6803_v55  ;;  %3311 = vmatpush.xpose.msrb.mxu1 %v3310_v18  ;;  %v3321_v42 = vsub.f32 %v6824_v3, %v8448_v46  ;;  %v3316_v4 = vand.u32 4294901760, %v3315_v29  ;;  %v6880_v9 = vand.u32 4294901760, %v3144_v56  ;;  %v6888_v46 = vand.u32 4294901760, %v3171_v51 }
 0x4fb   : > { %v2862_v43 = vsub.f32 %v6505_v50, %v2788_v61  ;;  %v2863_v40 = vsub.f32 %v6498_v57, %v2788_v61  ;;  %3430 = vmatpush.xpose.msrb.mxu3 %v6803_v55 }
 0x4fc   : > { %3388 = vmatpush.xpose.msrb.mxu2 %v6824_v3  ;;  %8449 = vst [vmem:[#allocation57_spill] sm:$0xff] %v6880_v9 }
 0x4fd   : > { %v6882_v18 = vpop.eup %4792  ;;  %v2966_v50 = vmul.f32 1.442695, %v2862_v43  ;;  %v2968_v57 = vmul.f32 1.442695, %v2863_v40  ;;  %v3322_v43 = vand.u32 4294901760, %v3321_v42  ;;  %v8452_v40 = vand.u32 4294901760, %v6854_v53 }
 0x4fe   : > { %8450 = vst [vmem:[#allocation64_spill] sm:$0xff] %v6882_v18  ;;  %v6884_v61 = vpop.eup %4794  ;;  %3236 = vmatpush.xpose.msrb.mxu0 %v6832_v54  ;;  %3317 = vmatpush.xpose.msrb.mxu1 %v3316_v4  ;;  %v6906_v4 = vsub.f32 %v3144_v56, %v6880_v9  ;;  %v3167_v42 = vmul.f32 %v6584_v48, %v6278_v37  ;;  %v8455_v48 = vld [vmem:[#allocation35_spill] sm:$0xff] }
 0x4ff   : > { %8451 = vst [vmem:[#allocation58_spill] sm:$0xff] %v6884_v61  ;;  %v6894_v34 = vpop.eup %4796  ;;  %4798 = vpow2.f32 %v2966_v50  ;;  %3432 = vmatpush.xpose.msrb.mxu3 %v6832_v54  ;;  %v3077_v29 = vadd.f32 %v6884_v61, %v6882_v18  ;;  %v3327_v14 = vsub.f32 %v6854_v53, %v8452_v40  ;;  %v6911_v61 = vmul.f32 %v6594_v1, %v6255_v11 }
 0x500   : > { %v3142_v36 = vmul.f32 %v6894_v34, %v6490_v0  ;;  %4800 = vpow2.f32 %v2968_v57  ;;  %3391 = vmatpush.xpose.msrb.mxu2 %v6854_v53  ;;  %v2785_v5 = vpop.xlane.xlu2 %2784  ;;  %v6917_v57 = vand.u32 4294901760, %v3169_v28  ;;  %v6924_v11 = vsub.f32 %v3171_v51, %v6888_v46 }
 0x501   : > { %3078 = vadd.xlane.f32.xlu2 %v3077_v29  ;;  %v2860_v40 = vsub.f32 %v6528_v22, %v2785_v5  ;;  %v2861_v0 = vsub.f32 %v6521_v27, %v2785_v5  ;;  %v8456_v22 = vld [vmem:[#allocation32_spill] sm:$0xff]  ;;  %v3328_v27 = vand.u32 4294901760, %v3327_v14  ;;  %v8460_v14 = vand.u32 4294901760, %v6891_v30 }
 0x502   : > { %v2782_v18 = vpop.xlane.xlu1 %2781  ;;  %3238 = vmatpush.xpose.msrb.mxu0 %v6862_v20  ;;  %3323 = vmatpush.xpose.msrb.mxu1 %v3322_v43  ;;  %v6920_v56 = vand.u32 4294901760, %v3142_v36  ;;  %8454 = vst [vmem:[#allocation61_spill] sm:$0xff] %v6924_v11  ;;  %v8457_v43 = vand.u32 4294901760, %v6878_v6  ;;  %v6949_v51 = vsub.f32 %v3169_v28, %v6917_v57 }
 0x503   : > { %v2962_v1 = vmul.f32 1.442695, %v2860_v40  ;;  %v2964_v37 = vmul.f32 1.442695, %v2861_v0  ;;  %v2858_v29 = vsub.f32 %v8455_v48, %v2782_v18  ;;  %v2859_v59 = vsub.f32 %v8456_v22, %v2782_v18  ;;  %3434 = vmatpush.xpose.msrb.mxu3 %v6862_v20 }
 0x504   : > { %8453 = vst [vmem:[#allocation65_spill] sm:$0xff] %v6920_v56  ;;  %3394 = vmatpush.xpose.msrb.mxu2 %v6878_v6  ;;  %v3333_v5 = vsub.f32 %v6878_v6, %v8457_v43  ;;  %v6934_v50 = vsub.f32 %v3142_v36, %v6920_v56  ;;  %v6939_v0 = vand.u32 4294901760, %v3167_v42  ;;  %v3596_v36 = vsub.f32 %v6891_v30, %v8460_v14  ;;  %v8462_v14 = vld [vmem:[#allocation27_spill] sm:$0xff] }
 0x505   : > { %v6937_v40 = vpop.eup %4798  ;;  %4802 = vpow2.f32 %v2962_v1  ;;  %v2958_v18 = vmul.f32 1.442695, %v2858_v29  ;;  %v2960_v48 = vmul.f32 1.442695, %v2859_v59  ;;  %v3163_v28 = vmul.f32 %v6626_v24, %v8462_v14  ;;  %v8464_v24 = vld [vmem:[#allocation37_spill] sm:$0xff] }
 0x506   : > { %8458 = vst [vmem:[#allocation62_spill] sm:$0xff] %v6937_v40  ;;  %v6941_v22 = vpop.eup %4800  ;;  %4804 = vpow2.f32 %v2964_v37  ;;  %3240 = vmatpush.xpose.msrb.mxu0 %v6880_v9  ;;  %3329 = vmatpush.xpose.msrb.mxu1 %v3328_v27  ;;  %v3334_v1 = vand.u32 4294901760, %v3333_v5  ;;  %v8461_v37 = vand.u32 4294901760, %v6906_v4  ;;  %v8463_v5 = vand.u32 4294901760, %v6924_v11 }
 0x507   : > { %8459 = vst [vmem:[#allocation69_spill] sm:$0xff] %v6941_v22  ;;  %4806 = vpow2.f32 %v2958_v18  ;;  %3436 = vmatpush.xpose.msrb.mxu3 %v6880_v9  ;;  %v3074_v59 = vadd.f32 %v6941_v22, %v6937_v40  ;;  %v6962_v18 = vand.u32 4294901760, %v6911_v61  ;;  %v6970_v27 = vsub.f32 %v3167_v42, %v6939_v0  ;;  %v8468_v9 = vld [vmem:[#allocation24_spill] sm:$0xff] }
 0x508   : > { %4808 = vpow2.f32 %v2960_v48  ;;  %3397 = vmatpush.xpose.msrb.mxu2 %v6906_v4  ;;  %v3339_v29 = vsub.f32 %v6906_v4, %v8461_v37  ;;  %v3597_v48 = vand.u32 4294901760, %v3596_v36  ;;  %v3602_v22 = vsub.f32 %v6924_v11, %v8463_v5 }
 0x509   : > { %3075 = vadd.xlane.f32.xlu1 %v3074_v59  ;;  %v3161_v5 = vmul.f32 %v6631_v39, %v8468_v9  ;;  %v8469_v37 = vand.u32 4294901760, %v6934_v50 }
 0x50a   : > { %v2779_v43 = vpop.xlane.xlu1 %2778  ;;  %3242 = vmatpush.xpose.msrb.mxu0 %v6920_v56  ;;  %3335 = vmatpush.xpose.msrb.mxu1 %v3334_v1  ;;  %v8466_v1 = vand.u32 4294901760, %v6624_v31  ;;  %v3340_v42 = vand.u32 4294901760, %v3339_v29  ;;  %v3603_v9 = vand.u32 4294901760, %v3602_v22  ;;  %v8470_v29 = vand.u32 4294901760, %v6949_v51 }
 0x50b   : > { %v6972_v40 = vpop.eup %4802  ;;  %v2856_v14 = vsub.f32 %v8464_v24, %v2779_v43  ;;  %v2857_v59 = vsub.f32 %v8465_v38, %v2779_v43  ;;  %3438 = vmatpush.xpose.msrb.mxu3 %v6920_v56  ;;  %v3345_v24 = vsub.f32 %v6934_v50, %v8469_v37  ;;  %v6989_v38 = vand.u32 4294901760, %v3163_v28 }
 0x50c   : > { %v6979_v36 = vpop.eup %4804  ;;  %3400 = vmatpush.xpose.msrb.mxu2 %v6934_v50  ;;  %v8081_v37 = vand.u32 4294901760, %v6970_v27  ;;  %v7002_v56 = vsub.f32 %v6911_v61, %v6962_v18 }
 0x50d   : > { %8467 = vst [vmem:[#allocation63_spill] sm:$0xff] %v6979_v36  ;;  %v6987_v11 = vpop.eup %4806  ;;  %v2954_v43 = vmul.f32 1.442695, %v2856_v14  ;;  %v2956_v31 = vmul.f32 1.442695, %v2857_v59  ;;  %v8471_v14 = vand.u32 4294901760, %v6611_v58 }
 0x50e   : > { %3449 = vmatpush.xpose.msra.mxu0 %v8466_v1  ;;  %v3071_v1 = vadd.f32 %v6979_v36, %v6972_v40  ;;  %v6994_v39 = vpop.eup %4808  ;;  %3341 = vmatpush.xpose.msrb.mxu1 %v3340_v42  ;;  %v3346_v22 = vand.u32 4294901760, %v3345_v24  ;;  %v8472_v42 = vld [vmem:[#allocation25_spill] sm:$0xff]  ;;  %v7010_v36 = vand.u32 4294901760, %v3161_v5  ;;  %v3614_v58 = vsub.f32 %v6970_v27, %v8081_v37  ;;  %v8473_v24 = vld [vmem:[#allocation39_spill] sm:$0xff] }
 0x50f   : > { %3598 = vmatpush.xpose.msra.mxu3 %v3597_v48  ;;  %v3608_v48 = vsub.f32 %v6949_v51, %v8470_v29  ;;  %4810 = vpow2.f32 %v2954_v43  ;;  %v3068_v59 = vadd.f32 %v6994_v39, %v6987_v11  ;;  %v3159_v29 = vmul.f32 %v6672_v13, %v8472_v42  ;;  %v8474_v13 = vld [vmem:[#allocation36_spill] sm:$0xff] }
 0x510   : > { %3553 = vmatpush.xpose.msra.mxu2 %v6866_v62  ;;  %3072 = vadd.xlane.f32.xlu2 %v3071_v1  ;;  %4812 = vpow2.f32 %v2956_v31  ;;  %v7018_v31 = vsub.f32 %v3163_v28, %v6989_v38 }
 0x511   : > { %3069 = vadd.xlane.f32.xlu1 %v3068_v59  ;;  %v3609_v43 = vand.u32 4294901760, %v3608_v48  ;;  %v8475_v59 = vand.u32 4294901760, %v6636_v45  ;;  %v7029_v37 = vand.u32 4294901760, %v3159_v29  ;;  %v8478_v45 = vand.u32 4294901760, %v7002_v56 }
 0x512   : > { %3453 = vmatpush.xpose.msra.mxu0 %v8471_v14  ;;  %v2776_v61 = vpop.xlane.xlu1 %2775  ;;  %3347 = vmatpush.xpose.msrb.mxu1 %v3346_v22  ;;  %v8476_v22 = vld [vmem:[#allocation22_spill] sm:$0xff] }
 0x513   : > { %3604 = vmatpush.xpose.msra.mxu3 %v3603_v9  ;;  %v2854_v9 = vsub.f32 %v8473_v24, %v2776_v61  ;;  %v2855_v14 = vsub.f32 %v8474_v13, %v2776_v61  ;;  %v3157_v42 = vmul.f32 %v6665_v33, %v8476_v22  ;;  %v3615_v61 = vand.u32 4294901760, %v3614_v58 }
 0x514   : > { %3555 = vmatpush.xpose.msra.mxu2 %v6888_v46  ;;  %v3620_v13 = vsub.f32 %v7002_v56, %v8478_v45  ;;  %v8479_v33 = vand.u32 4294901760, %v6656_v17 }
 0x515   : > { %v7025_v48 = vpop.eup %4810  ;;  %v2950_v1 = vmul.f32 1.442695, %v2854_v9  ;;  %v2952_v28 = vmul.f32 1.442695, %v2855_v14  ;;  %v8480_v9 = vld [vmem:[#allocation40_spill] sm:$0xff]  ;;  %v7046_v58 = vand.u32 4294901760, %v3157_v42 }
 0x516   : > { %3457 = vmatpush.xpose.msra.mxu0 %v8475_v59  ;;  %3516 = vmatpush.xpose.msra.mxu1 %v6608_v44  ;;  %v7032_v24 = vpop.eup %4812  ;;  %v8082_v44 = vand.u32 4294901760, %v7018_v31  ;;  %v7050_v59 = vsub.f32 %v3159_v29, %v7029_v37  ;;  %v3621_v17 = vand.u32 4294901760, %v3620_v13  ;;  %v8484_v29 = vld [vmem:[#allocation29_spill] sm:$0xff] }
 0x517   : > { %3610 = vmatpush.xpose.msra.mxu3 %v3609_v43  ;;  %8477 = vst [vmem:[#allocation70_spill] sm:$0xff] %v7032_v24  ;;  %v7039_v43 = vsub.f32 %v3161_v5, %v7010_v36  ;;  %4814 = vpow2.f32 %v2950_v1  ;;  %v3065_v14 = vadd.f32 %v7032_v24, %v7025_v48  ;;  %v8481_v5 = vld [vmem:[#allocation26_spill] sm:$0xff] }
 0x518   : > { %3557 = vmatpush.xpose.msra.mxu2 %v6917_v57  ;;  %4816 = vpow2.f32 %v2952_v28  ;;  %v3155_v1 = vmul.f32 %v6730_v49, %v8481_v5  ;;  %v3626_v22 = vsub.f32 %v7018_v31, %v8082_v44  ;;  %v8482_v28 = vand.u32 4294901760, %v6682_v35  ;;  %v8488_v44 = vld [vmem:[#allocation23_spill] sm:$0xff] }
 0x519   : > { %3066 = vadd.xlane.f32.xlu2 %v3065_v14  ;;  %v8084_v45 = vand.u32 4294901760, %v7039_v43  ;;  %v7067_v49 = vsub.f32 %v3157_v42, %v7046_v58 }
 0x51a   : > { %3461 = vmatpush.xpose.msra.mxu0 %v8479_v33  ;;  %3518 = vmatpush.xpose.msra.mxu1 %v8480_v9  ;;  %v3153_v9 = vmul.f32 %v6747_v15, %v8484_v29  ;;  %v7071_v14 = vand.u32 4294901760, %v3155_v1  ;;  %v3627_v5 = vand.u32 4294901760, %v3626_v22  ;;  %v8487_v15 = vld [vmem:[#allocation46_spill] sm:$0xff]  ;;  %v3151_v22 = vmul.f32 %v6764_v2, %v8488_v44 }
 0x51b   : > { %3616 = vmatpush.xpose.msra.mxu3 %v3615_v61  ;;  %v8483_v61 = vld [vmem:[#allocation42_spill] sm:$0xff]  ;;  %v3632_v35 = vsub.f32 %v7039_v43, %v8084_v45  ;;  %v8489_v2 = vand.u32 4294901760, %v6727_v32  ;;  %v8490_v32 = vld [vmem:[#allocation28_spill] sm:$0xff] }
 0x51c   : > { %3559 = vmatpush.xpose.msra.mxu2 %v6939_v0  ;;  %v7086_v24 = vand.u32 4294901760, %v3153_v9  ;;  %v7094_v45 = vsub.f32 %v3155_v1, %v7071_v14 }
 0x51d   : > { %v7061_v33 = vpop.eup %4814 }
 0x51e   : > { %3465 = vmatpush.xpose.msra.mxu0 %v8482_v28  ;;  %3520 = vmatpush.xpose.msra.mxu1 %v8483_v61  ;;  %v7069_v13 = vpop.eup %4816  ;;  %v8486_v28 = vand.u32 4294901760, %v6702_v25  ;;  %v3207_v61 = vld.sshfl [vmem:[#allocation1] sm:$0xff pattern:$0x75316420]  ;;  %v8086_v25 = vand.u32 4294901760, %v7067_v49 }
 0x51f   : > { %3622 = vmatpush.xpose.msra.mxu3 %v3621_v17  ;;  %8485 = vst [vmem:[#allocation66_spill] sm:$0xff] %v7069_v13  ;;  %v8085_v17 = vand.u32 4294901760, %v7050_v59  ;;  %v3062_v42 = vadd.f32 %v7069_v13, %v7061_v33  ;;  %v7082_v29 = vand.u32 4294901760, %v3207_v61 }
 0x520   : > { %3561 = vmatpush.xpose.msra.mxu2 %v6962_v18  ;;  %v3644_v1 = vsub.f32 %v7067_v49, %v8086_v25 }
 0x521   : > { %3063 = vadd.xlane.f32.xlu1 %v3062_v42  ;;  %3349 = vmatmul.f32.vlgmr.msrb.gmra.mxu1 %v7082_v29  ;;  %v7114_v42 = vsub.f32 %v3153_v9, %v7086_v24 }
 0x522   : > { %3469 = vmatpush.xpose.msra.mxu0 %v8486_v28  ;;  %3522 = vmatpush.xpose.msra.mxu1 %v8487_v15  ;;  %v3633_v28 = vand.u32 4294901760, %v3632_v35  ;;  %v3638_v15 = vsub.f32 %v7050_v59, %v8085_v17  ;;  %v7107_v35 = vand.u32 4294901760, %v3151_v22  ;;  %v8491_v17 = vand.u32 4294901760, %v6738_v7 }
 0x523   : > { %3628 = vmatpush.xpose.msra.mxu3 %v3627_v5  ;;  %v7097_v5 = vsub.f32 %v3207_v61, %v7082_v29  ;;  %v3645_v13 = vand.u32 4294901760, %v3644_v1  ;;  %v8493_v7 = vand.u32 4294901760, %v7094_v45 }
 0x524   : > { %3563 = vmatpush.xpose.msra.mxu2 %v6989_v38  ;;  %v3639_v61 = vand.u32 4294901760, %v3638_v15  ;;  %v7128_v9 = vsub.f32 %v3151_v22, %v7107_v35 }
 0x525   : > { %v7104_v44 = vand.u32 4294901760, %v7097_v5  ;;  %3403 = vmatmul.f32.vlgmr.msrb.gmra.mxu2 %v7097_v5 }
 0x526   : > { %3473 = vmatpush.xpose.msra.mxu0 %v8489_v2  ;;  %3524 = vmatpush.xpose.msra.mxu1 %v6651_v41  ;;  %v3149_v41 = vmul.f32 %v6792_v63, %v8490_v32  ;;  %v3655_v63 = vand.u32 4294901760, %v7114_v42  ;;  %v8492_v32 = vld [vmem:[#allocation31_spill] sm:$0xff] }
 0x527   : > { %3634 = vmatpush.xpose.msra.mxu3 %v3633_v28  ;;  %v3246_v2 = vsub.f32 %v7097_v5, %v7104_v44  ;;  %v3147_v28 = vmul.f32 %v6818_v10, %v8492_v32  ;;  %v3661_v10 = vand.u32 4294901760, %v7128_v9 }
 0x528   : > { %3565 = vmatpush.xpose.msra.mxu2 %v7010_v36  ;;  %3442 = vmatmul.f32.vlgmr.msrb.gmra.mxu3 %v7104_v44  ;;  %v7132_v15 = vand.u32 4294901760, %v3149_v41  ;;  %v3656_v22 = vsub.f32 %v7114_v42, %v3655_v63 }
 0x529   : > { %v7125_v25 = vand.u32 4294901760, %v3246_v2  ;;  %v7148_v1 = vand.u32 4294901760, %v3147_v28 }
 0x52a   : > { %3477 = vmatpush.xpose.msra.mxu0 %v8491_v17  ;;  %3526 = vmatpush.xpose.msra.mxu1 %v6675_v26  ;;  %v3650_v26 = vsub.f32 %v7094_v45, %v8493_v7  ;;  %v8494_v17 = vand.u32 4294901760, %v6762_v52  ;;  %v7153_v52 = vsub.f32 %v3149_v41, %v7132_v15  ;;  %v3662_v7 = vsub.f32 %v7128_v9, %v3661_v10 }
 0x52b   : > { %3640 = vmatpush.xpose.msra.mxu3 %v3639_v61  ;;  %3248 = vmatmul.f32.vlgmr.msrb.gmra.mxu0 %v7125_v25  ;;  %v8495_v61 = vld [vmem:[#allocation30_spill] sm:$0xff] }
 0x52c   : > { %3567 = vmatpush.xpose.msra.mxu2 %v7029_v37  ;;  %v3145_v2 = vmul.f32 %v6848_v23, %v8495_v61  ;;  %v3651_v32 = vand.u32 4294901760, %v3650_v26  ;;  %v8497_v23 = vld [vmem:[#allocation33_spill] sm:$0xff]  ;;  %v3667_v41 = vand.u32 4294901760, %v7153_v52  ;;  %v3208_v61 = vld.sshfl [vmem:[#allocation1 + $0x8] sm:$0xff pattern:$0x75316420] }
 0x52d   : > { %v3143_v26 = vmul.f32 %v6894_v34, %v8497_v23 }
 0x52e   : > { %3481 = vmatpush.xpose.msra.mxu0 %v8494_v17  ;;  %3528 = vmatpush.xpose.msra.mxu1 %v6693_v16  ;;  %v8496_v16 = vand.u32 4294901760, %v6790_v12  ;;  %v7162_v17 = vand.u32 4294901760, %v3145_v2  ;;  %v7168_v12 = vsub.f32 %v3147_v28, %v7148_v1  ;;  %v3668_v34 = vsub.f32 %v7153_v52, %v3667_v41 }
 0x52f   : > { %3646 = vmatpush.xpose.msra.mxu3 %v3645_v13  ;;  %v3657_v13 = vand.u32 4294901760, %v3656_v22  ;;  %v3663_v22 = vand.u32 4294901760, %v3662_v7 }
 0x530   : > { %3569 = vmatpush.xpose.msra.mxu2 %v7046_v58  ;;  %v7181_v28 = vsub.f32 %v3145_v2, %v7162_v17 }
 0x532   : > { %3485 = vmatpush.xpose.msra.mxu0 %v8496_v16  ;;  %3530 = vmatpush.xpose.msra.mxu1 %v6721_v19  ;;  %v8498_v19 = vand.u32 4294901760, %v6816_v60  ;;  %v3673_v16 = vand.u32 4294901760, %v7168_v12  ;;  %v8499_v60 = vand.u32 4294901760, %v6824_v3  ;;  %v3679_v23 = vand.u32 4294901760, %v7181_v28 }
 0x533   : > { %3652 = vmatpush.xpose.msra.mxu3 %v3651_v32  ;;  %v7174_v32 = vand.u32 4294901760, %v3143_v26  ;;  %v8501_v3 = vand.u32 4294901760, %v6854_v53 }
 0x534   : > { %3571 = vmatpush.xpose.msra.mxu2 %v7071_v14  ;;  %v3674_v7 = vsub.f32 %v7168_v12, %v3673_v16 }
 0x535   : > { %v7194_v2 = vsub.f32 %v3143_v26, %v7174_v32  ;;  %v8503_v26 = vand.u32 4294901760, %v6878_v6 }
 0x536   : > { %3489 = vmatpush.xpose.msra.mxu0 %v8498_v19  ;;  %3532 = vmatpush.xpose.msra.mxu1 %v6740_v21  ;;  %v7186_v21 = vand.u32 4294901760, %v3208_v61  ;;  %v3675_v19 = vand.u32 4294901760, %v3674_v7 }
 0x537   : > { %3658 = vmatpush.xpose.msra.mxu3 %v3657_v13  ;;  %v3669_v13 = vand.u32 4294901760, %v3668_v34  ;;  %v3685_v34 = vand.u32 4294901760, %v7194_v2 }
 0x538   : > { %3573 = vmatpush.xpose.msra.mxu2 %v7086_v24  ;;  %8500 = vst [vmem:[#allocation67_spill] sm:$0xff] %v7186_v21 }
 0x53a   : > { %3493 = vmatpush.xpose.msra.mxu0 %v8499_v60  ;;  %3534 = vmatpush.xpose.msra.mxu1 %v6769_v8  ;;  %v7200_v8 = vsub.f32 %v3208_v61, %v7186_v21  ;;  %v3686_v61 = vsub.f32 %v7194_v2, %v3685_v34  ;;  %v8505_v60 = vand.u32 4294901760, %v6906_v4  ;;  %v8509_v4 = vld [vmem:[#allocation57_spill] sm:$0xff] }
 0x53b   : > { %3664 = vmatpush.xpose.msra.mxu3 %v3663_v22  ;;  %v3680_v22 = vsub.f32 %v7181_v28, %v3679_v23 }
 0x53c   : > { %3575 = vmatpush.xpose.msra.mxu2 %v7107_v35  ;;  %8502 = vst [vmem:[#allocation74_spill] sm:$0xff] %v7200_v8  ;;  %v3687_v6 = vand.u32 4294901760, %v3686_v61 }
 0x53d   : > { %v3681_v53 = vand.u32 4294901760, %v3680_v22  ;;  %v8514_v22 = vand.u32 4294901760, %v6970_v27 }
 0x53e   : > { %3497 = vmatpush.xpose.msra.mxu0 %v8501_v3  ;;  %3536 = vmatpush.xpose.msra.mxu1 %v6798_v47  ;;  %v7211_v47 = vand.u32 4294901760, %v7200_v8  ;;  %v8512_v3 = vld [vmem:[#allocation65_spill] sm:$0xff] }
 0x53f   : > { %3670 = vmatpush.xpose.msra.mxu3 %v3669_v13  ;;  %v8506_v13 = vand.u32 4294901760, %v6934_v50  ;;  %v8510_v50 = vld [vmem:[#allocation61_spill] sm:$0xff] }
 0x540   : > { %3577 = vmatpush.xpose.msra.mxu2 %v7132_v15  ;;  %8504 = vst [vmem:[#allocation68_spill] sm:$0xff] %v7211_v47 }
 0x542   : > { %3501 = vmatpush.xpose.msra.mxu0 %v8503_v26  ;;  %3538 = vmatpush.xpose.msra.mxu1 %v6803_v55  ;;  %v3587_v55 = vsub.f32 %v7200_v8, %v7211_v47 }
 0x543   : > { %3676 = vmatpush.xpose.msra.mxu3 %v3675_v19  ;;  %v3106_v19 = vpop.xlane.xlu2 %3105 }
 0x544   : > { %3579 = vmatpush.xpose.msra.mxu2 %v7148_v1  ;;  %v7227_v7 = vand.u32 4294901760, %v3587_v55 }
 0x546   : > { %3505 = vmatpush.xpose.msra.mxu0 %v8505_v60  ;;  %3540 = vmatpush.xpose.msra.mxu1 %v6832_v54  ;;  %8507 = vst [vmem:[#allocation75_spill] sm:$0xff] %v7227_v7  ;;  %v8508_v54 = vand.u32 4294901760, %v6891_v30  ;;  %v8525_v60 = vld [vmem:[#allocation49_spill] sm:$0xff] }
 0x547   : > { %3682 = vmatpush.xpose.msra.mxu3 %v3681_v53 }
 0x548   : > { %3581 = vmatpush.xpose.msra.mxu2 %v7162_v17 }
 0x54a   : > { %3509 = vmatpush.xpose.msra.mxu0 %v8506_v13  ;;  %3542 = vmatpush.xpose.msra.mxu1 %v6862_v20  ;;  %v8511_v20 = vand.u32 4294901760, %v8510_v50 }
 0x54b   : > { %3688 = vmatpush.xpose.msra.mxu3 %v3687_v6 }
 0x54c   : > { %3583 = vmatpush.xpose.msra.mxu2 %v7174_v32 }
 0x54d   : > { %3511 = vmatmul.f32.vlgmr.msra.gmra.mxu0 %v7082_v29 }
 0x54e   : > { %3696 = vmatpush.xpose.msrb.mxu0 %v6891_v30  ;;  %3544 = vmatpush.xpose.msra.mxu1 %v8509_v4  ;;  %v8513_v30 = vand.u32 4294901760, %v6949_v51 }
 0x54f   : > { %3857 = vmatpush.xpose.msrb.mxu3 %v6866_v62  ;;  %3589 = vmatmul.f32.vlgmr.msra.gmra.mxu2 %v7227_v7 }
 0x550   : > { %3790 = vmatpush.xpose.msrb.mxu2 %v8508_v54  ;;  %3690 = vmatmul.f32.vlgmr.msra.gmra.mxu3 %v7186_v21 }
 0x552   : > { %3699 = vmatpush.xpose.msrb.mxu0 %v8510_v50  ;;  %3546 = vmatpush.xpose.msra.mxu1 %v8512_v3 }
 0x553   : > { %3859 = vmatpush.xpose.msrb.mxu3 %v6888_v46 }
 0x554   : > { %3794 = vmatpush.xpose.msrb.mxu2 %v8511_v20 }
 0x555   : > { %3548 = vmatmul.f32.vlgmr.msra.gmra.mxu1 %v7082_v29 }
 0x556   : > { %3702 = vmatpush.xpose.msrb.mxu0 %v6949_v51  ;;  %3749 = vmatpush.xpose.msrb.mxu1 %v6866_v62  ;;  %v8515_v62 = vand.u32 4294901760, %v7002_v56  ;;  %v3109_v51 = vpop.xlane.xlu2 %3108 }
 0x557   : > { %3861 = vmatpush.xpose.msrb.mxu3 %v6917_v57  ;;  %4818 = vrcp.f32 %v3109_v51  ;;  %v8527_v51 = vld [vmem:[#allocation51_spill] sm:$0xff] }
 0x558   : > { %3798 = vmatpush.xpose.msrb.mxu2 %v8513_v30  ;;  %4820 = vrcp.f32 %v3106_v19 }
 0x55a   : > { %3705 = vmatpush.xpose.msrb.mxu0 %v6970_v27  ;;  %3751 = vmatpush.xpose.msrb.mxu1 %v6888_v46  ;;  %v8516_v46 = vand.u32 4294901760, %v7018_v31  ;;  %v8519_v27 = vand.u32 4294901760, %v7067_v49 }
 0x55b   : > { %3863 = vmatpush.xpose.msrb.mxu3 %v6939_v0 }
 0x55c   : > { %3802 = vmatpush.xpose.msrb.mxu2 %v8514_v22 }
 0x55e   : > { %3708 = vmatpush.xpose.msrb.mxu0 %v7002_v56  ;;  %3753 = vmatpush.xpose.msrb.mxu1 %v6917_v57  ;;  %v8517_v57 = vand.u32 4294901760, %v7039_v43  ;;  %v8518_v56 = vand.u32 4294901760, %v7050_v59 }
 0x55f   : > { %3865 = vmatpush.xpose.msrb.mxu3 %v6962_v18 }
 0x560   : > { %3806 = vmatpush.xpose.msrb.mxu2 %v8515_v62 }
 0x562   : > { %3711 = vmatpush.xpose.msrb.mxu0 %v7018_v31  ;;  %3755 = vmatpush.xpose.msrb.mxu1 %v6939_v0  ;;  %v3103_v0 = vpop.xlane.xlu2 %3102  ;;  %v7288_v31 = vpop.eup %4818 }
 0x563   : > { %3867 = vmatpush.xpose.msrb.mxu3 %v6989_v38  ;;  %4822 = vrcp.f32 %v3103_v0 }
 0x564   : > { %3810 = vmatpush.xpose.msrb.mxu2 %v8516_v46 }
 0x566   : > { %3714 = vmatpush.xpose.msrb.mxu0 %v7039_v43  ;;  %3757 = vmatpush.xpose.msrb.mxu1 %v6962_v18  ;;  %v8520_v18 = vand.u32 4294901760, %v7094_v45 }
 0x567   : > { %3869 = vmatpush.xpose.msrb.mxu3 %v7010_v36 }
 0x568   : > { %3814 = vmatpush.xpose.msrb.mxu2 %v8517_v57 }
 0x56a   : > { %3717 = vmatpush.xpose.msrb.mxu0 %v7050_v59  ;;  %3759 = vmatpush.xpose.msrb.mxu1 %v6989_v38  ;;  %v3097_v38 = vpop.xlane.xlu2 %3096  ;;  %v8522_v59 = vld [vmem:[#allocation43_spill] sm:$0xff] }
 0x56b   : > { %3871 = vmatpush.xpose.msrb.mxu3 %v7029_v37 }
 0x56c   : > { %3818 = vmatpush.xpose.msrb.mxu2 %v8518_v56 }
 0x56e   : > { %3720 = vmatpush.xpose.msrb.mxu0 %v7067_v49  ;;  %3761 = vmatpush.xpose.msrb.mxu1 %v7010_v36  ;;  %v3100_v36 = vpop.xlane.xlu1 %3099 }
 0x56f   : > { %3873 = vmatpush.xpose.msrb.mxu3 %v7046_v58  ;;  %4824 = vrcp.f32 %v3100_v36 }
 0x570   : > { %3822 = vmatpush.xpose.msrb.mxu2 %v8519_v27  ;;  %4826 = vrcp.f32 %v3097_v38 }
 0x572   : > { %3723 = vmatpush.xpose.msrb.mxu0 %v7094_v45  ;;  %3763 = vmatpush.xpose.msrb.mxu1 %v7029_v37  ;;  %v8521_v37 = vld [vmem:[#allocation44_spill] sm:$0xff] }
 0x573   : > { %3875 = vmatpush.xpose.msrb.mxu3 %v7071_v14  ;;  %v3204_v43 = vmul.f32 %v7288_v31, %v8521_v37 }
 0x574   : > { %3826 = vmatpush.xpose.msrb.mxu2 %v8520_v18  ;;  %v8528_v18 = vld [vmem:[#allocation48_spill] sm:$0xff] }
 0x576   : > { %3726 = vmatpush.xpose.msrb.mxu0 %v7114_v42  ;;  %3765 = vmatpush.xpose.msrb.mxu1 %v7046_v58  ;;  %v7297_v58 = vpop.eup %4820  ;;  %v3094_v49 = vpop.xlane.xlu1 %3093 }
 0x577   : > { %3877 = vmatpush.xpose.msrb.mxu3 %v7086_v24  ;;  %v3202_v45 = vmul.f32 %v7297_v58, %v8522_v59  ;;  %v7308_v42 = vpop.eup %4822  ;;  %4828 = vrcp.f32 %v3094_v49 }
 0x578   : > { %3830 = vmatpush.xpose.msrb.mxu2 %v3655_v63  ;;  %v8523_v63 = vld [vmem:[#allocation98_spill] sm:$0xff] }
 0x57a   : > { %3729 = vmatpush.xpose.msrb.mxu0 %v7128_v9  ;;  %3767 = vmatpush.xpose.msrb.mxu1 %v7071_v14  ;;  %v7306_v14 = vand.u32 4294901760, %v3204_v43  ;;  %v3091_v9 = vpop.xlane.xlu2 %3090 }
 0x57b   : > { %3879 = vmatpush.xpose.msrb.mxu3 %v7107_v35  ;;  %4830 = vrcp.f32 %v3091_v9 }
 0x57c   : > { %3834 = vmatpush.xpose.msrb.mxu2 %v3661_v10  ;;  %v3200_v10 = vmul.f32 %v7308_v42, %v8523_v63 }
 0x57e   : > { %3732 = vmatpush.xpose.msrb.mxu0 %v7153_v52  ;;  %3769 = vmatpush.xpose.msrb.mxu1 %v7086_v24  ;;  %v7315_v24 = vpop.eup %4824  ;;  %v7320_v52 = vsub.f32 %v3204_v43, %v7306_v14  ;;  %v7334_v26 = vand.u32 4294901760, %v3200_v10 }
 0x57f   : > { %3881 = vmatpush.xpose.msrb.mxu3 %v7132_v15  ;;  %v7337_v61 = vpop.eup %4826 }
 0x580   : > { %3838 = vmatpush.xpose.msrb.mxu2 %v3667_v41  ;;  %v7322_v41 = vand.u32 4294901760, %v3202_v45  ;;  %v8097_v53 = vand.u32 4294901760, %v7320_v52  ;;  %v3196_v55 = vmul.f32 %v7337_v61, %v8525_v60  ;;  %v7358_v13 = vsub.f32 %v3200_v10, %v7334_v26 }
 0x582   : > { %3735 = vmatpush.xpose.msrb.mxu0 %v7168_v12  ;;  %3771 = vmatpush.xpose.msrb.mxu1 %v7107_v35  ;;  %v8524_v35 = vld [vmem:[#allocation38_spill] sm:$0xff]  ;;  %v3085_v6 = vpop.xlane.xlu2 %3084  ;;  %v7375_v20 = vand.u32 4294901760, %v3196_v55  ;;  %v8095_v3 = vand.u32 4294901760, %v7358_v13 }
 0x583   : > { %3883 = vmatpush.xpose.msrb.mxu3 %v7148_v1  ;;  %v3198_v12 = vmul.f32 %v7315_v24, %v8524_v35  ;;  %v8529_v35 = vld [vmem:[#allocation59_spill] sm:$0xff] }
 0x584   : > { %3842 = vmatpush.xpose.msrb.mxu2 %v3673_v16  ;;  %v7332_v16 = vsub.f32 %v3202_v45, %v7322_v41  ;;  %v3949_v56 = vsub.f32 %v7358_v13, %v8095_v3  ;;  %v7396_v0 = vsub.f32 %v3196_v55, %v7375_v20 }
 0x586   : > { %3738 = vmatpush.xpose.msrb.mxu0 %v7181_v28  ;;  %3773 = vmatpush.xpose.msrb.mxu1 %v7132_v15  ;;  %v3088_v15 = vpop.xlane.xlu1 %3087  ;;  %v7346_v28 = vand.u32 4294901760, %v3198_v12  ;;  %v3950_v37 = vand.u32 4294901760, %v3949_v56  ;;  %v8092_v45 = vand.u32 4294901760, %v7396_v0  ;;  %v8531_v56 = vld [vmem:[#allocation64_spill] sm:$0xff] }
 0x587   : > { %3885 = vmatpush.xpose.msrb.mxu3 %v7162_v17  ;;  %4832 = vrcp.f32 %v3088_v15 }
 0x588   : > { %3846 = vmatpush.xpose.msrb.mxu2 %v3679_v23  ;;  %v7348_v23 = vpop.eup %4828  ;;  %v7369_v4 = vsub.f32 %v3198_v12, %v7346_v28  ;;  %4834 = vrcp.f32 %v3085_v6  ;;  %v3961_v60 = vsub.f32 %v7396_v0, %v8092_v45 }
 0x589   : > { %v7378_v30 = vpop.eup %4830 }
 0x58a   : > { %3741 = vmatpush.xpose.msrb.mxu0 %v7194_v2  ;;  %3775 = vmatpush.xpose.msrb.mxu1 %v7148_v1  ;;  %v3937_v1 = vsub.f32 %v7320_v52, %v8097_v53  ;;  %v8096_v2 = vand.u32 4294901760, %v7332_v16  ;;  %v8093_v62 = vand.u32 4294901760, %v7369_v4  ;;  %v3192_v57 = vmul.f32 %v7378_v30, %v8527_v51  ;;  %v3079_v27 = vpop.xlane.xlu2 %3078 }
 0x58b   : > { %3887 = vmatpush.xpose.msrb.mxu3 %v7174_v32  ;;  %v3962_v51 = vand.u32 4294901760, %v3961_v60  ;;  %v8532_v60 = vld [vmem:[#allocation62_spill] sm:$0xff] }
 0x58c   : > { %3850 = vmatpush.xpose.msrb.mxu2 %v3685_v34  ;;  %v8526_v34 = vld [vmem:[#allocation50_spill] sm:$0xff]  ;;  %v3938_v50 = vand.u32 4294901760, %v3937_v1  ;;  %v3955_v43 = vsub.f32 %v7369_v4, %v8093_v62  ;;  %v7409_v59 = vand.u32 4294901760, %v3192_v57 }
 0x58d   : > { %3744 = vmatmul.f32.vlgmr.msrb.gmra.mxu0 %v7200_v8  ;;  %v3194_v54 = vmul.f32 %v7348_v23, %v8526_v34  ;;  %v7386_v46 = vpop.eup %4832  ;;  %v8540_v8 = vld [vmem:[#allocation45_spill] sm:$0xff] }
 0x58e   : > { %3894 = vmatpush.xpose.msra.mxu0 %v7306_v14  ;;  %3777 = vmatpush.xpose.msrb.mxu1 %v7162_v17  ;;  %v3943_v17 = vsub.f32 %v7332_v16, %v8096_v2  ;;  %v3082_v19 = vpop.xlane.xlu1 %3081  ;;  %v3190_v36 = vmul.f32 %v7386_v46, %v8528_v18  ;;  %v7412_v49 = vpop.eup %4834  ;;  %v3956_v15 = vand.u32 4294901760, %v3955_v43  ;;  %v7426_v55 = vsub.f32 %v3192_v57, %v7409_v59 }
 0x58f   : > { %4090 = vmatpush.xpose.msra.mxu3 %v7306_v14  ;;  %3852 = vmatmul.f32.vlgmr.msrb.gmra.mxu2 %v7186_v21  ;;  %v7383_v22 = vand.u32 4294901760, %v3194_v54  ;;  %4836 = vrcp.f32 %v3082_v19  ;;  %v3188_v12 = vmul.f32 %v7412_v49, %v8529_v35 }
 0x590   : > { %4037 = vmatpush.xpose.msra.mxu2 %v7320_v52  ;;  %3889 = vmatmul.f32.vlgmr.msrb.gmra.mxu3 %v7186_v21  ;;  %4838 = vrcp.f32 %v3079_v27  ;;  %v7416_v63 = vand.u32 4294901760, %v3190_v36 }
 0x591   : > { %v7403_v38 = vsub.f32 %v3194_v54, %v7383_v22  ;;  %v7443_v57 = vand.u32 4294901760, %v3188_v12 }
 0x592   : > { %3896 = vmatpush.xpose.msra.mxu0 %v7322_v41  ;;  %3779 = vmatpush.xpose.msrb.mxu1 %v7174_v32  ;;  %v3944_v32 = vand.u32 4294901760, %v3943_v17  ;;  %v3073_v1 = vpop.xlane.xlu2 %3072  ;;  %v7436_v54 = vsub.f32 %v3190_v36, %v7416_v63  ;;  %v8530_v17 = vld [vmem:[#allocation60_spill] sm:$0xff] }
 0x593   : > { %4092 = vmatpush.xpose.msra.mxu3 %v7322_v41  ;;  %v8090_v10 = vand.u32 4294901760, %v7403_v38 }
 0x594   : > { %4040 = vmatpush.xpose.msra.mxu2 %v7332_v16 }
 0x595   : > { %3783 = vmatmul.f32.vlgmr.msrb.gmra.mxu1 %v7211_v47  ;;  %v7428_v6 = vpop.eup %4836  ;;  %v3967_v34 = vsub.f32 %v7403_v38, %v8090_v10 }
 0x596   : > { %3898 = vmatpush.xpose.msra.mxu0 %v7334_v26  ;;  %3939 = vmatpush.xpose.msra.mxu1 %v3938_v50  ;;  %v3076_v9 = vpop.xlane.xlu1 %3075  ;;  %v7438_v50 = vpop.eup %4838  ;;  %v3186_v19 = vmul.f32 %v7428_v6, %v8530_v17 }
 0x597   : > { %4094 = vmatpush.xpose.msra.mxu3 %v7334_v26  ;;  %4840 = vrcp.f32 %v3076_v9  ;;  %v3184_v27 = vmul.f32 %v7438_v50, %v8531_v56  ;;  %v3968_v18 = vand.u32 4294901760, %v3967_v34  ;;  %v7457_v9 = vsub.f32 %v3188_v12, %v7443_v57 }
 0x598   : > { %4043 = vmatpush.xpose.msra.mxu2 %v7358_v13  ;;  %4842 = vrcp.f32 %v3073_v1  ;;  %v7459_v35 = vand.u32 4294901760, %v3186_v19 }
 0x599   : > { %v7466_v34 = vand.u32 4294901760, %v3184_v27 }
 0x59a   : > { %3900 = vmatpush.xpose.msra.mxu0 %v7346_v28  ;;  %3945 = vmatpush.xpose.msra.mxu1 %v3944_v32  ;;  %v8088_v32 = vand.u32 4294901760, %v7426_v55  ;;  %v3067_v17 = vpop.xlane.xlu2 %3066  ;;  %v7473_v56 = vsub.f32 %v3186_v19, %v7459_v35 }
 0x59b   : > { %4096 = vmatpush.xpose.msra.mxu3 %v7346_v28 }
 0x59c   : > { %4046 = vmatpush.xpose.msra.mxu2 %v7369_v4  ;;  %v3973_v43 = vsub.f32 %v7426_v55, %v8088_v32 }
 0x59d   : > { %v7450_v36 = vpop.eup %4840 }
 0x59e   : > { %3902 = vmatpush.xpose.msra.mxu0 %v7375_v20  ;;  %3951 = vmatpush.xpose.msra.mxu1 %v3950_v37  ;;  %v3070_v37 = vpop.xlane.xlu1 %3069  ;;  %v3182_v1 = vmul.f32 %v7450_v36, %v8532_v60  ;;  %v3974_v12 = vand.u32 4294901760, %v3973_v43  ;;  %v7476_v32 = vpop.eup %4842 }
 0x59f   : > { %4098 = vmatpush.xpose.msra.mxu3 %v7375_v20  ;;  %4844 = vrcp.f32 %v3070_v37  ;;  %v7481_v37 = vsub.f32 %v3184_v27, %v7466_v34  ;;  %v3180_v60 = vmul.f32 %v7476_v32, %v6972_v40 }
 0x5a0   : > { %4049 = vmatpush.xpose.msra.mxu2 %v7396_v0  ;;  %4846 = vrcp.f32 %v3067_v17  ;;  %v7483_v43 = vand.u32 4294901760, %v3182_v1  ;;  %v8094_v17 = vand.u32 4294901760, %v7473_v56 }
 0x5a1   : > { %v8099_v27 = vand.u32 4294901760, %v7481_v37  ;;  %v7506_v62 = vand.u32 4294901760, %v3180_v60 }
 0x5a2   : > { %3904 = vmatpush.xpose.msra.mxu0 %v7383_v22  ;;  %3957 = vmatpush.xpose.msra.mxu1 %v3956_v15  ;;  %v8089_v15 = vand.u32 4294901760, %v7436_v54  ;;  %8533 = vst [vmem:[#allocation71_spill] sm:$0xff] %v7483_v43  ;;  %v7497_v40 = vsub.f32 %v3182_v1, %v7483_v43  ;;  %v3991_v45 = vsub.f32 %v7473_v56, %v8094_v17 }
 0x5a3   : > { %4100 = vmatpush.xpose.msra.mxu3 %v7383_v22  ;;  %8534 = vst [vmem:[#allocation72_spill] sm:$0xff] %v7506_v62  ;;  %v7522_v2 = vsub.f32 %v3180_v60, %v7506_v62 }
 0x5a4   : > { %4052 = vmatpush.xpose.msra.mxu2 %v7403_v38  ;;  %v3992_v3 = vand.u32 4294901760, %v3991_v45 }
 0x5a6   : > { %3906 = vmatpush.xpose.msra.mxu0 %v7409_v59  ;;  %3963 = vmatpush.xpose.msra.mxu1 %v3962_v51  ;;  %v3979_v51 = vsub.f32 %v7436_v54, %v8089_v15  ;;  %v3064_v19 = vpop.xlane.xlu1 %3063 }
 0x5a7   : > { %4102 = vmatpush.xpose.msra.mxu3 %v7409_v59  ;;  %4848 = vrcp.f32 %v3064_v19  ;;  %v8535_v19 = vld [vmem:[#allocation96_spill] sm:$0xff] }
 0x5a8   : > { %4055 = vmatpush.xpose.msra.mxu2 %v7426_v55  ;;  %v3980_v15 = vand.u32 4294901760, %v3979_v51  ;;  %v3205_v1 = vmul.f32 %v7288_v31, %v8535_v19  ;;  %v8537_v19 = vld [vmem:[#allocation97_spill] sm:$0xff] }
 0x5a9   : > { %v3203_v53 = vmul.f32 %v7297_v58, %v8537_v19  ;;  %v8106_v19 = vand.u32 4294901760, %v7522_v2 }
 0x5aa   : > { %3908 = vmatpush.xpose.msra.mxu0 %v7416_v63  ;;  %3969 = vmatpush.xpose.msra.mxu1 %v3968_v18  ;;  %v8091_v18 = vand.u32 4294901760, %v7457_v9  ;;  %v7530_v47 = vand.u32 4294901760, %v3205_v1 }
 0x5ab   : > { %4104 = vmatpush.xpose.msra.mxu3 %v7416_v63 }
 0x5ac   : > { %4058 = vmatpush.xpose.msra.mxu2 %v7436_v54  ;;  %v3985_v10 = vsub.f32 %v7457_v9, %v8091_v18 }
 0x5ae   : > { %3910 = vmatpush.xpose.msra.mxu0 %v7443_v57  ;;  %3975 = vmatpush.xpose.msra.mxu1 %v3974_v12  ;;  %v7492_v12 = vpop.eup %4844  ;;  %v3986_v18 = vand.u32 4294901760, %v3985_v10  ;;  %v8101_v10 = vand.u32 4294901760, %v7497_v40 }
 0x5af   : > { %4106 = vmatpush.xpose.msra.mxu3 %v7443_v57  ;;  %v3178_v51 = vmul.f32 %v7492_v12, %v6987_v11  ;;  %v3997_v11 = vsub.f32 %v7481_v37, %v8099_v27 }
 0x5b0   : > { %4061 = vmatpush.xpose.msra.mxu2 %v7457_v9  ;;  %v4003_v45 = vsub.f32 %v7497_v40, %v8101_v10  ;;  %v3201_v10 = vmul.f32 %v7308_v42, %v8540_v8  ;;  %v8541_v8 = vld [vmem:[#allocation41_spill] sm:$0xff] }
 0x5b1   : > { %v7524_v31 = vand.u32 4294901760, %v3178_v51  ;;  %v3199_v42 = vmul.f32 %v7315_v24, %v8541_v8 }
 0x5b2   : > { %3912 = vmatpush.xpose.msra.mxu0 %v7459_v35  ;;  %3981 = vmatpush.xpose.msra.mxu1 %v3980_v15  ;;  %v7508_v15 = vpop.eup %4846 }
 0x5b3   : > { %4108 = vmatpush.xpose.msra.mxu3 %v7459_v35  ;;  %v3176_v17 = vmul.f32 %v7508_v15, %v7025_v48  ;;  %8536 = vst [vmem:[#allocation79_spill] sm:$0xff] %v7524_v31  ;;  %v3998_v48 = vand.u32 4294901760, %v3997_v11  ;;  %v7541_v27 = vsub.f32 %v3178_v51, %v7524_v31  ;;  %v7549_v11 = vsub.f32 %v3205_v1, %v7530_v47 }
 0x5b4   : > { %4064 = vmatpush.xpose.msra.mxu2 %v7473_v56  ;;  %v4009_v51 = vsub.f32 %v7522_v2, %v8106_v19 }
 0x5b5   : > { %8538 = vst [vmem:[#allocation73_spill] sm:$0xff] %v7541_v27  ;;  %v7543_v58 = vand.u32 4294901760, %v3176_v17  ;;  %v8109_v21 = vand.u32 4294901760, %v7541_v27 }
 0x5b6   : > { %3914 = vmatpush.xpose.msra.mxu0 %v7466_v34  ;;  %3987 = vmatpush.xpose.msra.mxu1 %v3986_v18  ;;  %v7526_v18 = vpop.eup %4848 }
 0x5b7   : > { %4110 = vmatpush.xpose.msra.mxu3 %v7466_v34  ;;  %v3174_v60 = vmul.f32 %v7526_v18, %v7061_v33  ;;  %8539 = vst [vmem:[#allocation80_spill] sm:$0xff] %v7543_v58  ;;  %v4004_v33 = vand.u32 4294901760, %v4003_v45  ;;  %v7560_v7 = vsub.f32 %v3176_v17, %v7543_v58  ;;  %v4010_v17 = vand.u32 4294901760, %v4009_v51  ;;  %v8542_v45 = vld [vmem:[#allocation54_spill] sm:$0xff] }
 0x5b8   : > { %4067 = vmatpush.xpose.msra.mxu2 %v7481_v37  ;;  %v4015_v19 = vsub.f32 %v7541_v27, %v8109_v21 }
 0x5b9   : > { %v7562_v1 = vand.u32 4294901760, %v3174_v60  ;;  %v8112_v8 = vand.u32 4294901760, %v7560_v7 }
 0x5ba   : > { %3916 = vmatpush.xpose.msra.mxu0 %v7483_v43  ;;  %3993 = vmatpush.xpose.msra.mxu1 %v3992_v3  ;;  %v7546_v3 = vand.u32 4294901760, %v3203_v53 }
 0x5bb   : > { %4112 = vmatpush.xpose.msra.mxu3 %v7483_v43  ;;  %v7580_v24 = vsub.f32 %v3174_v60, %v7562_v1  ;;  %v4016_v60 = vand.u32 4294901760, %v4015_v19 }
 0x5bc   : > { %4070 = vmatpush.xpose.msra.mxu2 %v7497_v40 }
 0x5be   : > { %3918 = vmatpush.xpose.msra.mxu0 %v7506_v62  ;;  %3999 = vmatpush.xpose.msra.mxu1 %v3998_v48  ;;  %v7567_v48 = vand.u32 4294901760, %v3201_v10 }
 0x5bf   : > { %4114 = vmatpush.xpose.msra.mxu3 %v7506_v62  ;;  %v7572_v62 = vsub.f32 %v3203_v53, %v7546_v3  ;;  %v3197_v53 = vmul.f32 %v7337_v61, %v8542_v45  ;;  %v4021_v61 = vsub.f32 %v7560_v7, %v8112_v8  ;;  %v8546_v45 = vand.u32 4294901760, %v7320_v52 }
 0x5c0   : > { %4073 = vmatpush.xpose.msra.mxu2 %v7522_v2  ;;  %v7593_v21 = vsub.f32 %v3201_v10, %v7567_v48 }
 0x5c1   : > { %v7606_v43 = vand.u32 4294901760, %v3197_v53  ;;  %v8545_v19 = vand.u32 4294901760, %v7572_v62 }
 0x5c2   : > { %3920 = vmatpush.xpose.msra.mxu0 %v7524_v31  ;;  %4005 = vmatpush.xpose.msra.mxu1 %v4004_v33  ;;  %v7583_v33 = vand.u32 4294901760, %v3199_v42  ;;  %v4289_v8 = vand.u32 4294901760, %v7593_v21 }
 0x5c3   : > { %4116 = vmatpush.xpose.msra.mxu3 %v7524_v31  ;;  %v8543_v31 = vand.u32 4294901760, %v7549_v11 }
 0x5c4   : > { %4076 = vmatpush.xpose.msra.mxu2 %v7541_v27 }
 0x5c5   : > { %v4278_v51 = vsub.f32 %v7549_v11, %v8543_v31  ;;  %v7604_v31 = vsub.f32 %v3199_v42, %v7583_v33  ;;  %v8547_v42 = vand.u32 4294901760, %v7580_v24 }
 0x5c6   : > { %3922 = vmatpush.xpose.msra.mxu0 %v7543_v58  ;;  %4011 = vmatpush.xpose.msra.mxu1 %v4010_v17  ;;  %v8544_v17 = vld [vmem:[#allocation47_spill] sm:$0xff] }
 0x5c7   : > { %4118 = vmatpush.xpose.msra.mxu3 %v7543_v58  ;;  %v3195_v27 = vmul.f32 %v7348_v23, %v8544_v17  ;;  %v4279_v10 = vand.u32 4294901760, %v4278_v51  ;;  %v4284_v58 = vsub.f32 %v7572_v62, %v8545_v19  ;;  %v4022_v23 = vand.u32 4294901760, %v4021_v61  ;;  %v8548_v19 = vld [vmem:[#allocation52_spill] sm:$0xff]  ;;  %v8550_v17 = vld [vmem:[#allocation55_spill] sm:$0xff] }
 0x5c8   : > { %4079 = vmatpush.xpose.msra.mxu2 %v7560_v7  ;;  %v3193_v52 = vmul.f32 %v7378_v30, %v8548_v19  ;;  %v4290_v61 = vsub.f32 %v7593_v21, %v4289_v8  ;;  %v3191_v30 = vmul.f32 %v7386_v46, %v8550_v17  ;;  %v8553_v17 = vld [vmem:[#allocation53_spill] sm:$0xff] }
 0x5c9   : > { %v7620_v51 = vand.u32 4294901760, %v3195_v27  ;;  %v3189_v19 = vmul.f32 %v7412_v49, %v8553_v17 }
 0x5ca   : > { %3924 = vmatpush.xpose.msra.mxu0 %v7562_v1  ;;  %4017 = vmatpush.xpose.msra.mxu1 %v4016_v60  ;;  %v4027_v60 = vsub.f32 %v7580_v24, %v8547_v42  ;;  %v8549_v42 = vand.u32 4294901760, %v7332_v16  ;;  %v7652_v46 = vand.u32 4294901760, %v3191_v30 }
 0x5cb   : > { %4120 = vmatpush.xpose.msra.mxu3 %v7562_v1 }
 0x5cc   : > { %4082 = vmatpush.xpose.msra.mxu2 %v7580_v24 }
 0x5cd   : > { %3930 = vmatmul.f32.vlgmr.msra.gmra.mxu0 %v7125_v25  ;;  %v4028_v25 = vand.u32 4294901760, %v4027_v60  ;;  %v8552_v60 = vand.u32 4294901760, %v7358_v13 }
 0x5ce   : > { %4131 = vmatpush.xpose.msrb.mxu0 %v8546_v45  ;;  %4023 = vmatpush.xpose.msra.mxu1 %v4022_v23  ;;  %v4285_v45 = vand.u32 4294901760, %v4284_v58  ;;  %v7641_v58 = vsub.f32 %v3195_v27, %v7620_v51  ;;  %v7643_v23 = vand.u32 4294901760, %v3193_v52 }
 0x5cf   : > { %4280 = vmatpush.xpose.msrb.mxu3 %v4279_v10  ;;  %v7631_v10 = vsub.f32 %v3197_v53, %v7606_v43  ;;  %4085 = vmatmul.f32.vlgmr.msra.gmra.mxu2 %v7097_v5  ;;  %v4291_v53 = vand.u32 4294901760, %v4290_v61 }
 0x5d0   : > { %4235 = vmatpush.xpose.msrb.mxu2 %v7530_v47  ;;  %4124 = vmatmul.f32.vlgmr.msra.gmra.mxu3 %v7104_v44  ;;  %v8551_v44 = vand.u32 4294901760, %v7604_v31  ;;  %v4307_v27 = vand.u32 4294901760, %v7641_v58  ;;  %v7663_v61 = vsub.f32 %v3193_v52, %v7643_v23 }
 0x5d1   : > { %v4301_v5 = vand.u32 4294901760, %v7631_v10 }
 0x5d2   : > { %4135 = vmatpush.xpose.msrb.mxu0 %v8549_v42  ;;  %4029 = vmatpush.xpose.msra.mxu1 %v4028_v25  ;;  %v4296_v16 = vsub.f32 %v7604_v31, %v8551_v44  ;;  %v4308_v49 = vsub.f32 %v7641_v58, %v4307_v27  ;;  %v7673_v42 = vsub.f32 %v3191_v30, %v7652_v46  ;;  %v7675_v25 = vand.u32 4294901760, %v3189_v19 }
 0x5d3   : > { %4286 = vmatpush.xpose.msrb.mxu3 %v4285_v45  ;;  %v4302_v13 = vsub.f32 %v7631_v10, %v4301_v5 }
 0x5d4   : > { %4237 = vmatpush.xpose.msrb.mxu2 %v7546_v3  ;;  %v4297_v45 = vand.u32 4294901760, %v4296_v16  ;;  %v8557_v16 = vld [vmem:[#allocation58_spill] sm:$0xff]  ;;  %v4309_v30 = vand.u32 4294901760, %v4308_v49 }
 0x5d5   : > { %4031 = vmatmul.f32.vlgmr.msra.gmra.mxu1 %v7082_v29  ;;  %v4303_v44 = vand.u32 4294901760, %v4302_v13  ;;  %v8559_v13 = vld [vmem:[#allocation69_spill] sm:$0xff] }
 0x5d6   : > { %4139 = vmatpush.xpose.msrb.mxu0 %v8552_v60  ;;  %4198 = vmatpush.xpose.msrb.mxu1 %v7306_v14  ;;  %v8554_v14 = vand.u32 4294901760, %v7369_v4  ;;  %v4313_v4 = vand.u32 4294901760, %v7663_v61  ;;  %v3185_v60 = vmul.f32 %v7438_v50, %v8557_v16 }
 0x5d7   : > { %4292 = vmatpush.xpose.msrb.mxu3 %v4291_v53  ;;  %v8555_v53 = vld [vmem:[#allocation56_spill] sm:$0xff] }
 0x5d8   : > { %4239 = vmatpush.xpose.msrb.mxu2 %v7567_v48  ;;  %v3187_v52 = vmul.f32 %v7428_v6, %v8555_v53  ;;  %v4314_v6 = vsub.f32 %v7663_v61, %v4313_v4  ;;  %v7698_v50 = vand.u32 4294901760, %v3185_v60 }
 0x5da   : > { %4143 = vmatpush.xpose.msrb.mxu0 %v8554_v14  ;;  %4200 = vmatpush.xpose.msrb.mxu1 %v7322_v41  ;;  %v8556_v41 = vand.u32 4294901760, %v7396_v0  ;;  %v7686_v17 = vand.u32 4294901760, %v3187_v52  ;;  %v7693_v0 = vsub.f32 %v3189_v19, %v7675_v25  ;;  %v3183_v14 = vmul.f32 %v7450_v36, %v8559_v13 }
 0x5db   : > { %4298 = vmatpush.xpose.msrb.mxu3 %v4297_v45  ;;  %v4319_v45 = vand.u32 4294901760, %v7673_v42  ;;  %v4315_v49 = vand.u32 4294901760, %v4314_v6  ;;  %v7717_v36 = vsub.f32 %v3185_v60, %v7698_v50 }
 0x5dc   : > { %4241 = vmatpush.xpose.msrb.mxu2 %v7583_v33  ;;  %v4325_v19 = vand.u32 4294901760, %v7693_v0 }
 0x5dd   : > { %v4320_v53 = vsub.f32 %v7673_v42, %v4319_v45  ;;  %v4337_v60 = vand.u32 4294901760, %v7717_v36 }
 0x5de   : > { %4147 = vmatpush.xpose.msrb.mxu0 %v8556_v41  ;;  %4202 = vmatpush.xpose.msrb.mxu1 %v7334_v26  ;;  %v8558_v26 = vand.u32 4294901760, %v7403_v38  ;;  %v7708_v38 = vsub.f32 %v3187_v52, %v7686_v17  ;;  %v8561_v41 = vld [vmem:[#allocation63_spill] sm:$0xff]  ;;  %v4326_v52 = vsub.f32 %v7693_v0, %v4325_v19 }
 0x5df   : > { %4304 = vmatpush.xpose.msrb.mxu3 %v4303_v44  ;;  %v7713_v44 = vand.u32 4294901760, %v3183_v14  ;;  %v3181_v16 = vmul.f32 %v7476_v32, %v8561_v41 }
 0x5e0   : > { %4243 = vmatpush.xpose.msrb.mxu2 %v7606_v43  ;;  %v4327_v13 = vand.u32 4294901760, %v4326_v52 }
 0x5e1   : > { %v7731_v6 = vsub.f32 %v3183_v14, %v7713_v44  ;;  %v7733_v32 = vand.u32 4294901760, %v3181_v16  ;;  %v4338_v14 = vsub.f32 %v7717_v36, %v4337_v60 }
 0x5e2   : > { %4151 = vmatpush.xpose.msrb.mxu0 %v8558_v26  ;;  %4204 = vmatpush.xpose.msrb.mxu1 %v7346_v28  ;;  %v8560_v28 = vand.u32 4294901760, %v7426_v55  ;;  %v4331_v55 = vand.u32 4294901760, %v7708_v38  ;;  %v3179_v26 = vmul.f32 %v7492_v12, %v6994_v39  ;;  %v8564_v12 = vld [vmem:[#allocation70_spill] sm:$0xff] }
 0x5e3   : > { %4310 = vmatpush.xpose.msrb.mxu3 %v4309_v30  ;;  %v4321_v30 = vand.u32 4294901760, %v4320_v53  ;;  %v3177_v53 = vmul.f32 %v7508_v15, %v8564_v12  ;;  %v4339_v41 = vand.u32 4294901760, %v4338_v14  ;;  %v8566_v15 = vld [vmem:[#allocation66_spill] sm:$0xff] }
 0x5e4   : > { %4245 = vmatpush.xpose.msrb.mxu2 %v7620_v51  ;;  %v7748_v39 = vand.u32 4294901760, %v3179_v26 }
 0x5e5   : > { %v7762_v52 = vand.u32 4294901760, %v3177_v53 }
 0x5e6   : > { %4155 = vmatpush.xpose.msrb.mxu0 %v8560_v28  ;;  %4206 = vmatpush.xpose.msrb.mxu1 %v7375_v20  ;;  %v8562_v20 = vand.u32 4294901760, %v7436_v54  ;;  %v4332_v54 = vsub.f32 %v7708_v38, %v4331_v55 }
 0x5e7   : > { %4316 = vmatpush.xpose.msrb.mxu3 %v4315_v49  ;;  %v4343_v49 = vand.u32 4294901760, %v7731_v6 }
 0x5e8   : > { %4247 = vmatpush.xpose.msrb.mxu2 %v7643_v23  ;;  %v4333_v28 = vand.u32 4294901760, %v4332_v54  ;;  %v7775_v54 = vsub.f32 %v3177_v53, %v7762_v52 }
 0x5ea   : > { %4159 = vmatpush.xpose.msrb.mxu0 %v8562_v20  ;;  %4208 = vmatpush.xpose.msrb.mxu1 %v7383_v22  ;;  %v8563_v22 = vand.u32 4294901760, %v7457_v9  ;;  %v7753_v9 = vsub.f32 %v3181_v16, %v7733_v32  ;;  %v3175_v20 = vmul.f32 %v7526_v18, %v8566_v15  ;;  %v4361_v53 = vand.u32 4294901760, %v7775_v54  ;;  %v8572_v15 = vld [vmem:[#allocation71_spill] sm:$0xff] }
 0x5eb   : > { %4322 = vmatpush.xpose.msrb.mxu3 %v4321_v30  ;;  %v4344_v30 = vsub.f32 %v7731_v6, %v4343_v49 }
 0x5ec   : > { %4249 = vmatpush.xpose.msrb.mxu2 %v7652_v46  ;;  %v4349_v16 = vand.u32 4294901760, %v7753_v9 }
 0x5ee   : > { %4163 = vmatpush.xpose.msrb.mxu0 %v8563_v22  ;;  %4210 = vmatpush.xpose.msrb.mxu1 %v7409_v59  ;;  %v8565_v59 = vand.u32 4294901760, %v7473_v56  ;;  %v7768_v56 = vsub.f32 %v3179_v26, %v7748_v39  ;;  %v7777_v22 = vand.u32 4294901760, %v3175_v20  ;;  %v4350_v18 = vsub.f32 %v7753_v9, %v4349_v16 }
 0x5ef   : > { %4328 = vmatpush.xpose.msrb.mxu3 %v4327_v13  ;;  %v4345_v13 = vand.u32 4294901760, %v4344_v30 }
 0x5f0   : > { %4251 = vmatpush.xpose.msrb.mxu2 %v7675_v25  ;;  %v4355_v26 = vand.u32 4294901760, %v7768_v56  ;;  %v4351_v14 = vand.u32 4294901760, %v4350_v18  ;;  %v8575_v18 = vand.u32 4294901760, %v7580_v24  ;;  %v8580_v24 = vld [vmem:[#allocation75_spill] sm:$0xff] }
 0x5f2   : > { %4167 = vmatpush.xpose.msrb.mxu0 %v8565_v59  ;;  %4212 = vmatpush.xpose.msrb.mxu1 %v7416_v63  ;;  %v8567_v63 = vand.u32 4294901760, %v7481_v37  ;;  %v8568_v37 = vand.u32 4294901760, %v7497_v40  ;;  %v4356_v12 = vsub.f32 %v7768_v56, %v4355_v26  ;;  %v4362_v40 = vsub.f32 %v7775_v54, %v4361_v53 }
 0x5f3   : > { %4334 = vmatpush.xpose.msrb.mxu3 %v4333_v28  ;;  %v8569_v28 = vand.u32 4294901760, %v7522_v2 }
 0x5f4   : > { %4253 = vmatpush.xpose.msrb.mxu2 %v7686_v17  ;;  %v4363_v2 = vand.u32 4294901760, %v4362_v40 }
 0x5f6   : > { %4171 = vmatpush.xpose.msrb.mxu0 %v8567_v63  ;;  %4214 = vmatpush.xpose.msrb.mxu1 %v7443_v57  ;;  %v7788_v57 = vsub.f32 %v3175_v20, %v7777_v22  ;;  %v8573_v20 = vand.u32 4294901760, %v7560_v7  ;;  %v8574_v63 = vld [vmem:[#allocation72_spill] sm:$0xff]  ;;  %v8577_v7 = vand.u32 4294901760, %v7549_v11 }
 0x5f7   : > { %4340 = vmatpush.xpose.msrb.mxu3 %v4339_v41  ;;  %v8570_v41 = vld [vmem:[#allocation73_spill] sm:$0xff] }
 0x5f8   : > { %4255 = vmatpush.xpose.msrb.mxu2 %v7698_v50  ;;  %v4367_v59 = vand.u32 4294901760, %v7788_v57  ;;  %v8571_v30 = vand.u32 4294901760, %v8570_v41 }
 0x5fa   : > { %4175 = vmatpush.xpose.msrb.mxu0 %v8568_v37  ;;  %4216 = vmatpush.xpose.msrb.mxu1 %v7459_v35  ;;  %v4357_v35 = vand.u32 4294901760, %v4356_v12  ;;  %v8576_v37 = vld [vmem:[#allocation79_spill] sm:$0xff] }
 0x5fb   : > { %4346 = vmatpush.xpose.msrb.mxu3 %v4345_v13  ;;  %v8579_v12 = vld [vmem:[#allocation67_spill] sm:$0xff] }
 0x5fc   : > { %4257 = vmatpush.xpose.msrb.mxu2 %v7713_v44 }
 0x5fe   : > { %4179 = vmatpush.xpose.msrb.mxu0 %v8569_v28  ;;  %4218 = vmatpush.xpose.msrb.mxu1 %v7466_v34  ;;  %v4368_v34 = vsub.f32 %v7788_v57, %v4367_v59  ;;  %v8581_v28 = vand.u32 4294901760, %v7572_v62 }
 0x5ff   : > { %4352 = vmatpush.xpose.msrb.mxu3 %v4351_v14  ;;  %v8578_v14 = vld [vmem:[#allocation80_spill] sm:$0xff] }
 0x600   : > { %4259 = vmatpush.xpose.msrb.mxu2 %v7733_v32  ;;  %v4369_v13 = vand.u32 4294901760, %v4368_v34 }
 0x602   : > { %4183 = vmatpush.xpose.msrb.mxu0 %v8571_v30  ;;  %4220 = vmatpush.xpose.msrb.mxu1 %v8572_v15 }
 0x603   : > { %4358 = vmatpush.xpose.msrb.mxu3 %v4357_v35 }
 0x604   : > { %4261 = vmatpush.xpose.msrb.mxu2 %v7748_v39 }
 0x606   : > { %4187 = vmatpush.xpose.msrb.mxu0 %v8573_v20  ;;  %4222 = vmatpush.xpose.msrb.mxu1 %v8574_v63 }
 0x607   : > { %4364 = vmatpush.xpose.msrb.mxu3 %v4363_v2 }
 0x608   : > { %4263 = vmatpush.xpose.msrb.mxu2 %v7762_v52 }
 0x60a   : > { %4191 = vmatpush.xpose.msrb.mxu0 %v8575_v18  ;;  %4224 = vmatpush.xpose.msrb.mxu1 %v8576_v37 }
 0x60b   : > { %4370 = vmatpush.xpose.msrb.mxu3 %v4369_v13 }
 0x60c   : > { %4265 = vmatpush.xpose.msrb.mxu2 %v7777_v22 }
 0x60d   : > { %4193 = vmatmul.f32.vlgmr.msrb.gmra.mxu0 %v7082_v29 }
 0x60e   : > { %4378 = vmatpush.xpose.msra.mxu0 %v7549_v11  ;;  %4226 = vmatpush.xpose.msrb.mxu1 %v8578_v14  ;;  %v3443_v11 = vpop.f32.mrf.mxu3 }
 0x60f   : > { %4539 = vmatpush.xpose.msra.mxu3 %v7530_v47  ;;  %4271 = vmatmul.f32.vlgmr.msrb.gmra.mxu2 %v8580_v24 }
 0x610   : > { %4472 = vmatpush.xpose.msra.mxu2 %v8577_v7  ;;  %4372 = vmatmul.f32.vlgmr.msrb.gmra.mxu3 %v8579_v12 }
 0x612   : > { %4381 = vmatpush.xpose.msra.mxu0 %v7572_v62  ;;  %4228 = vmatpush.xpose.msrb.mxu1 %v7562_v1  ;;  %v8582_v62 = vand.u32 4294901760, %v7604_v31 }
 0x613   : > { %4541 = vmatpush.xpose.msra.mxu3 %v7546_v3 }
 0x614   : > { %4476 = vmatpush.xpose.msra.mxu2 %v8581_v28 }
 0x615   : > { %4230 = vmatmul.f32.vlgmr.msrb.gmra.mxu1 %v7082_v29  ;;  %v8583_v29 = vld [vmem:[#allocation74_spill] sm:$0xff] }
 0x616   : > { %4384 = vmatpush.xpose.msra.mxu0 %v7593_v21  ;;  %4431 = vmatpush.xpose.msra.mxu1 %v7530_v47  ;;  %v8584_v21 = vld [vmem:[#allocation68_spill] sm:$0xff]  ;;  %v3350_v47 = vpop.f32.mrf.mxu1 }
 0x617   : > { %4543 = vmatpush.xpose.msra.mxu3 %v7567_v48 }
 0x618   : > { %4480 = vmatpush.xpose.msra.mxu2 %v4289_v8 }
 0x61a   : > { %4387 = vmatpush.xpose.msra.mxu0 %v7604_v31  ;;  %4433 = vmatpush.xpose.msra.mxu1 %v7546_v3  ;;  %v3404_v3 = vpop.f32.mrf.mxu2 }
 0x61b   : > { %4545 = vmatpush.xpose.msra.mxu3 %v7583_v33 }
 0x61c   : > { %4484 = vmatpush.xpose.msra.mxu2 %v8582_v62 }
 0x61e   : > { %4390 = vmatpush.xpose.msra.mxu0 %v7631_v10  ;;  %4435 = vmatpush.xpose.msra.mxu1 %v7567_v48  ;;  %v3549_v1 = vpop.f32.mrf.mxu1 }
 0x61f   : > { %4547 = vmatpush.xpose.msra.mxu3 %v7606_v43 }
 0x620   : > { %4488 = vmatpush.xpose.msra.mxu2 %v4301_v5 }
 0x622   : > { %4393 = vmatpush.xpose.msra.mxu0 %v7641_v58  ;;  %4437 = vmatpush.xpose.msra.mxu1 %v7583_v33  ;;  %v3590_v8 = vpop.f32.mrf.mxu2  ;;  %v3691_v33 = vpop.f32.mrf.mxu3 }
 0x623   : > { %4549 = vmatpush.xpose.msra.mxu3 %v7620_v51 }
 0x624   : > { %4492 = vmatpush.xpose.msra.mxu2 %v4307_v27 }
 0x626   : > { %4396 = vmatpush.xpose.msra.mxu0 %v7663_v61  ;;  %4439 = vmatpush.xpose.msra.mxu1 %v7606_v43  ;;  %v3249_v43 = vpop.f32.mrf.mxu0  ;;  %v3784_v31 = vpop.f32.mrf.mxu1 }
 0x627   : > { %4551 = vmatpush.xpose.msra.mxu3 %v7643_v23  ;;  %v3351_v5 = vadd.f32 %v3350_v47, %v3249_v43 }
 0x628   : > { %4496 = vmatpush.xpose.msra.mxu2 %v4313_v4 }
 0x62a   : > { %4399 = vmatpush.xpose.msra.mxu0 %v7673_v42  ;;  %4441 = vmatpush.xpose.msra.mxu1 %v7620_v51  ;;  %v3853_v10 = vpop.f32.mrf.mxu2  ;;  %v3890_v58 = vpop.f32.mrf.mxu3  ;;  %v3405_v42 = vadd.f32 %v3404_v3, %v3351_v5 }
 0x62b   : > { %4553 = vmatpush.xpose.msra.mxu3 %v7652_v46 }
 0x62c   : > { %4500 = vmatpush.xpose.msra.mxu2 %v4319_v45 }
 0x62e   : > { %4402 = vmatpush.xpose.msra.mxu0 %v7693_v0  ;;  %4443 = vmatpush.xpose.msra.mxu1 %v7643_v23  ;;  %v3512_v48 = vpop.f32.mrf.mxu0 }
 0x62f   : > { %4555 = vmatpush.xpose.msra.mxu3 %v7675_v25 }
 0x630   : > { %4504 = vmatpush.xpose.msra.mxu2 %v4325_v19 }
 0x632   : > { %4405 = vmatpush.xpose.msra.mxu0 %v7708_v38  ;;  %4445 = vmatpush.xpose.msra.mxu1 %v7652_v46 }
 0x633   : > { %4557 = vmatpush.xpose.msra.mxu3 %v7686_v17 }
 0x634   : > { %4508 = vmatpush.xpose.msra.mxu2 %v4331_v55 }
 0x636   : > { %4408 = vmatpush.xpose.msra.mxu0 %v7717_v36  ;;  %4447 = vmatpush.xpose.msra.mxu1 %v7675_v25  ;;  %v3745_v51 = vpop.f32.mrf.mxu0 }
 0x637   : > { %4559 = vmatpush.xpose.msra.mxu3 %v7698_v50 }
 0x638   : > { %4512 = vmatpush.xpose.msra.mxu2 %v4337_v60 }
 0x63a   : > { %4411 = vmatpush.xpose.msra.mxu0 %v7731_v6  ;;  %4449 = vmatpush.xpose.msra.mxu1 %v7686_v17  ;;  %v3444_v17 = vadd.f32 %v3443_v11, %v3405_v42 }
 0x63b   : > { %4561 = vmatpush.xpose.msra.mxu3 %v7713_v44 }
 0x63c   : > { %4516 = vmatpush.xpose.msra.mxu2 %v4343_v49 }
 0x63e   : > { %4414 = vmatpush.xpose.msra.mxu0 %v7753_v9  ;;  %4451 = vmatpush.xpose.msra.mxu1 %v7698_v50  ;;  %v3513_v50 = vadd.f32 %v3512_v48, %v3444_v17 }
 0x63f   : > { %4563 = vmatpush.xpose.msra.mxu3 %v7733_v32 }
 0x640   : > { %4520 = vmatpush.xpose.msra.mxu2 %v4349_v16 }
 0x642   : > { %4417 = vmatpush.xpose.msra.mxu0 %v7768_v56  ;;  %4453 = vmatpush.xpose.msra.mxu1 %v7713_v44  ;;  %v3550_v44 = vadd.f32 %v3549_v1, %v3513_v50 }
 0x643   : > { %4565 = vmatpush.xpose.msra.mxu3 %v7748_v39 }
 0x644   : > { %4524 = vmatpush.xpose.msra.mxu2 %v4355_v26  ;;  %v3591_v60 = vadd.f32 %v3590_v8, %v3550_v44 }
 0x646   : > { %4420 = vmatpush.xpose.msra.mxu0 %v7775_v54  ;;  %4455 = vmatpush.xpose.msra.mxu1 %v7733_v32  ;;  %v3692_v49 = vadd.f32 %v3691_v33, %v3591_v60 }
 0x647   : > { %4567 = vmatpush.xpose.msra.mxu3 %v7762_v52 }
 0x648   : > { %4528 = vmatpush.xpose.msra.mxu2 %v4361_v53  ;;  %v3746_v9 = vadd.f32 %v3745_v51, %v3692_v49 }
 0x64a   : > { %4423 = vmatpush.xpose.msra.mxu0 %v7788_v57  ;;  %4457 = vmatpush.xpose.msra.mxu1 %v7748_v39  ;;  %v3931_v46 = vpop.f32.mrf.mxu0  ;;  %v3785_v16 = vadd.f32 %v3784_v31, %v3746_v9 }
 0x64b   : > { %4569 = vmatpush.xpose.msra.mxu3 %v7777_v22 }
 0x64c   : > { %4532 = vmatpush.xpose.msra.mxu2 %v4367_v59  ;;  %v3854_v53 = vadd.f32 %v3853_v10, %v3785_v16 }
 0x64d   : > { %4426 = vmatmul.f32.vlgmr.msra.gmra.mxu0 %v8583_v29 }
 0x64e   : > { %4459 = vmatpush.xpose.msra.mxu1 %v7762_v52  ;;  %4571 = vmatmul.f32.vlgmr.msra.gmra.mxu3 %v8579_v12  ;;  %v3891_v59 = vadd.f32 %v3890_v58, %v3854_v53 }
 0x64f   : > { %4534 = vmatmul.f32.vlgmr.msra.gmra.mxu2 %v8579_v12 }
 0x652   : > { %4461 = vmatpush.xpose.msra.mxu1 %v7777_v22  ;;  %v4032_v23 = vpop.f32.mrf.mxu1  ;;  %v4086_v61 = vpop.f32.mrf.mxu2 }
 0x653   : > { %v4033_v27 = vadd.f32 %v4032_v23, %v3931_v46  ;;  %v4125_v4 = vpop.f32.mrf.mxu3 }
 0x655   : > { %4465 = vmatmul.f32.vlgmr.msra.gmra.mxu1 %v8584_v21  ;;  %v4087_v25 = vadd.f32 %v4086_v61, %v4033_v27 }
 0x657   : > { %v4126_v45 = vadd.f32 %v4125_v4, %v4087_v25 }
 0x68a   : > { %v4194_v0 = vpop.f32.mrf.mxu0 }
 0x68b   : > { %v4195_v19 = vadd.f32 %v4194_v0, %v4126_v45 }
 0x692   : > { %v4231_v38 = vpop.f32.mrf.mxu1  ;;  %v4272_v55 = vpop.f32.mrf.mxu2 }
 0x693   : > { %v4232_v36 = vadd.f32 %v4231_v38, %v4195_v19  ;;  %v4373_v32 = vpop.f32.mrf.mxu3 }
 0x695   : > { %v4273_v6 = vadd.f32 %v4272_v55, %v4232_v36 }
 0x697   : > { %v4374_v52 = vadd.f32 %v4373_v32, %v4273_v6 }
 0x6ca   : > { %v4427_v39 = vpop.f32.mrf.mxu0 }
 0x6cb   : > { %v4428_v56 = vadd.f32 %v4427_v39, %v4374_v52 }
 0x6d1   : > { %v4572_v57 = vpop.f32.mrf.mxu3 }
 0x6d2   : > { %v4466_v54 = vpop.f32.mrf.mxu1  ;;  %v4535_v22 = vpop.f32.mrf.mxu2 }
 0x6d3   : > { %v4467_v26 = vadd.f32 %v4466_v54, %v4428_v56 }
 0x6d5   : > { %v4536_v35 = vadd.f32 %v4535_v22, %v4467_v26 }
 0x6d7   : > { %v4573_v40 = vadd.f32 %v4572_v57, %v4536_v35 }
 0x6d9   : > { %v4577_v41 = vrot.slane %v4573_v40, 4 }
 0x6db   : > { %v4578_v30 = vsel %vm315_vm0, %v3891_v59, %v4577_v41 }
 0x6dc   : > { %4580 = vst [vmem:[%s143_s20] sm:$0xff] %v4578_v30 }
 0x6dd PF: > { %s12_s9 = sadd.s32 1, %s4856_s9  }
 0x6de   : > { %p9_p4 = scmp.ge.s32.totalorder %s12_s9, 4  }
 0x6e0   :  { %11 = sbr.rel (!%p9_p4) target bundleno = 1 (0x1), region = 58 }

</bundles_post_ra>
